<compile_context>
chip_gen: v5e
topology: v5e:2x2
jax: 0.10.0
libtpu: 0.0.40
codegen_flags: <defaults>
</compile_context>

<pallas_src>
import jax
import jax.numpy as jnp
from jax.experimental import pallas as pl
from jax.experimental.pallas import tpu as pltpu

C_IN, C_OUT, K = 3, 6, 3
H = W = 32
HO = WO = 16
POOLED = HO * WO              # 256 pooled pixels per channel
FLAT = C_OUT * POOLED         # 1536
DENSE_OUT = 768
KTAP = C_IN * K * K           # 27 conv taps
KPAD = 32                     # taps padded to 32 for a clean MXU contraction
CPAD = 8                      # conv output channels padded to 8 sublanes
TN = 256                      # dense-output tile width (weight streamed per tile)
BN_EPS = 1e-5
DROP_P = 0.2
DROP_THRESH = int(round(DROP_P * (1 << 23)))   # keep iff 23-bit rand >= thresh

# Lane offsets inside the single packed (8, 128) f32 parameter operand.
_CB_COL, _GA_COL, _BE_COL = KPAD, KPAD + 1, KPAD + 2


# ----------------------------------------------------------------------------
# Fused kernel: conv(as matmul) -> ReLU -> BN(batch stats) -> maxpool2x2
#               -> flatten (into VMEM scratch) -> Linear tile -> ReLU -> dropout
# ----------------------------------------------------------------------------
def _encoder_kernel(p_ref, par_ref, wd_ref, bd_ref, rb_ref, o_ref, act_ref):
    n_batch = act_ref.shape[0]

    # The whole conv path runs only on the first dense tile; its result lives
    # in the persistent bf16 VMEM scratch `act_ref` for the remaining tiles.
    @pl.when(pl.program_id(0) == 0)
    def _():
        # conv3x3 'same' as one MXU matmul over the 27-tap (padded-to-32)
        # im2col; bf16 operands, f32 accumulation.
        wc = par_ref[:, :KPAD].astype(jnp.bfloat16)                   # (8, 32)
        conv = jnp.dot(wc, p_ref[...], preferred_element_type=jnp.float32)
        conv = jnp.maximum(conv + par_ref[:, _CB_COL:_CB_COL + 1], 0.0)

        # BatchNorm2d (training mode), single pass: var = E[x^2] - mean^2.
        npix = conv.shape[1]
        inv = 1.0 / npix
        mean = jnp.sum(conv, axis=1, keepdims=True) * inv
        ex2 = jnp.sum(conv * conv, axis=1, keepdims=True) * inv
        var = jnp.maximum(ex2 - mean * mean, 0.0)
        scale = par_ref[:, _GA_COL:_GA_COL + 1] * jax.lax.rsqrt(var + BN_EPS)
        y = (conv - mean) * scale + par_ref[:, _BE_COL:_BE_COL + 1]

        # 2x2 max pool: the window phase s is the outermost lane group, so the
        # pool is an elementwise max of four contiguous, 128-aligned chunks.
        q = npix // 4                                   # n * 256
        pooled = jnp.maximum(jnp.maximum(y[:, :q], y[:, q:2 * q]),
                             jnp.maximum(y[:, 2 * q:3 * q], y[:, 3 * q:]))
        # pooled[c, b*256 + ho*16 + wo]

        # Flatten to torch's x.view(-1, 1536) layout (feature = c*256+ho*16+wo)
        # with lane/sublane concats and ONE lane-dense store into scratch.
        rows = []
        for b in range(n_batch):
            rows.append(jnp.concatenate(
                [pooled[c:c + 1, b * POOLED:(b + 1) * POOLED]
                 for c in range(C_OUT)], axis=1))                     # (1, 1536)
        act_ref[...] = jnp.concatenate(rows, axis=0).astype(jnp.bfloat16)

    # dense1 tile j: (N, 1536) x (1536, TN) on the MXU, bf16 operands, f32 acc.
    h = jnp.dot(act_ref[...], wd_ref[...],
                preferred_element_type=jnp.float32) + bd_ref[...]
    h = jnp.maximum(h, 0.0)                                           # ReLU

    # Inverted dropout p=0.2 from host-supplied 23-bit random ints.
    keep = rb_ref[...] >= DROP_THRESH
    o_ref[...] = jnp.where(keep, h * (1.0 / (1.0 - DROP_P)), 0.0)


# ----------------------------------------------------------------------------
# Wrapper
# ----------------------------------------------------------------------------
def _build_patches(x):
    """im2col: (N,3,32,32) -> (32, N*1024) bf16, lane order (s, n, ho, wo)."""
    n = x.shape[0]
    xp = jnp.pad(x, ((0, 0), (0, 0), (1, 1), (1, 1)))                 # 'same'
    taps = [xp[:, ci, dy:dy + H, dx:dx + W]
            for ci in range(C_IN) for dy in range(K) for dx in range(K)]
    s = jnp.stack(taps, axis=0)                                       # (27,n,32,32)
    s = s.reshape(KTAP, n, HO, 2, WO, 2)                              # (k,n,ho,hp,wo,wp)
    s = s.transpose(0, 3, 5, 1, 2, 4)                                 # (k,hp,wp,n,ho,wo)
    s = s.reshape(KTAP, 4 * n * POOLED)
    pad = jnp.zeros((KPAD - KTAP, s.shape[1]), s.dtype)
    # TODO(synk): avoid this XLA-side im2col HBM round trip by building the 27
    # taps in-kernel from a padded (N,3,34,34) input with lane rolls/slices.
    return jnp.concatenate([s, pad], axis=0).astype(jnp.bfloat16)


def _dropout_bits(key, n):
    # 23-bit uniform ints in int32, shared between kernel and reference.
    # TODO(synk): a production-only path could use pltpu.prng_seed /
    # prng_random_bits in-kernel and drop this operand entirely.
    return (jax.random.bits(key, (n, DENSE_OUT), dtype=jnp.uint32) >> 9).astype(jnp.int32)


@jax.jit
def encoder_forward(x, conv_w, conv_b, bn_gamma, bn_beta, dense_w, dense_b, key):
    n = x.shape[0]
    patches = _build_patches(x.astype(jnp.float32))

    # Single packed (8, 128) f32 parameter block: conv weight, bias, gamma, beta.
    params = jnp.zeros((CPAD, 128), jnp.float32)
    params = params.at[:C_OUT, :KTAP].set(
        conv_w.reshape(C_OUT, KTAP).astype(jnp.float32))
    params = params.at[:C_OUT, _CB_COL].set(conv_b)
    params = params.at[:C_OUT, _GA_COL].set(bn_gamma)
    params = params.at[:C_OUT, _BE_COL].set(bn_beta)

    wdt = dense_w.T.astype(jnp.bfloat16)                              # (1536, 768)
    bd = dense_b.reshape(1, DENSE_OUT).astype(jnp.float32)
    rbits = _dropout_bits(key, n)

    n_tiles = DENSE_OUT // TN
    cost = pl.CostEstimate(
        flops=2 * CPAD * KPAD * n * H * W + 2 * n * FLAT * DENSE_OUT,
        transcendentals=0,
        bytes_accessed=(patches.size * 2 + params.size * 4 + wdt.size * 2
                        + bd.size * 4 + rbits.size * 4 + n * DENSE_OUT * 4))

    # TODO(synk): for large batches, add a 'parallel' batch grid axis (with a
    # two-pass cross-tile BN reduction) so v7x's two TensorCores are both used.
    out = pl.pallas_call(
        _encoder_kernel,
        out_shape=jax.ShapeDtypeStruct((n, DENSE_OUT), jnp.float32),
        grid=(n_tiles,),
        in_specs=[
            pl.BlockSpec((KPAD, 4 * n * POOLED), lambda j: (0, 0)),   # im2col (bf16)
            pl.BlockSpec((CPAD, 128), lambda j: (0, 0)),              # packed params
            pl.BlockSpec((FLAT, TN), lambda j: (0, j)),               # dense weight tile
            pl.BlockSpec((1, TN), lambda j: (0, j)),                  # dense bias tile
            pl.BlockSpec((n, TN), lambda j: (0, j)),                  # dropout bits tile
        ],
        out_specs=pl.BlockSpec((n, TN), lambda j: (0, j)),
        scratch_shapes=[pltpu.VMEM((n, FLAT), jnp.bfloat16)],         # flat activations
        compiler_params=pltpu.CompilerParams(
            dimension_semantics=("arbitrary",),
            vmem_limit_bytes=32 * 1024 * 1024),
        cost_estimate=cost,
    )(patches, params, wdt, bd, rbits)
    return out


# ----------------------------------------------------------------------------
# Pure-JAX reference (same dropout mask, f32 everywhere)
# ----------------------------------------------------------------------------
def _reference_encoder(x, conv_w, conv_b, bn_gamma, bn_beta, dense_w, dense_b, key):
    out = jax.lax.conv_general_dilated(
        x, conv_w, window_strides=(1, 1), padding="SAME",
        dimension_numbers=("NCHW", "OIHW", "NCHW"),
        precision=jax.lax.Precision.HIGHEST)
    out = jnp.maximum(out + conv_b[None, :, None, None], 0.0)
    mean = out.mean(axis=(0, 2, 3), keepdims=True)
    var = ((out - mean) ** 2).mean(axis=(0, 2, 3), keepdims=True)
    out = (out - mean) * jax.lax.rsqrt(var + BN_EPS)
    out = out * bn_gamma[None, :, None, None] + bn_beta[None, :, None, None]
    n, c, h, w = out.shape
    pooled = out.reshape(n, c, h // 2, 2, w // 2, 2).max(axis=(3, 5))
    flat = pooled.reshape(n, FLAT)
    dense = jnp.maximum(flat @ dense_w.T + dense_b[None, :], 0.0)
    keep = _dropout_bits(key, n) >= DROP_THRESH
    return jnp.where(keep, dense * (1.0 / (1.0 - DROP_P)), 0.0)


if __name__ == "__main__":
    key = jax.random.PRNGKey(0)
    k1, k2, k3, k4, kx, kd = jax.random.split(key, 6)

    # Deterministic parameter init (shapes from Encoder.__init__).
    conv_w = jax.random.normal(k1, (C_OUT, C_IN, K, K), jnp.float32) * 0.2
    conv_b = jax.random.normal(k2, (C_OUT,), jnp.float32) * 0.05
    bn_gamma = jnp.ones((C_OUT,), jnp.float32)      # BatchNorm2d default init
    bn_beta = jnp.zeros((C_OUT,), jnp.float32)
    dense_w = jax.random.normal(k3, (DENSE_OUT, FLAT), jnp.float32) * 0.02  # torch (out,in)
    dense_b = jax.random.normal(k4, (DENSE_OUT,), jnp.float32) * 0.02

    # Input: the Linear(1536, ...) forces a 3x32x32 (CIFAR) input.
    x = jax.random.normal(kx, (2, C_IN, H, W), jnp.float32)

    out = encoder_forward(x, conv_w, conv_b, bn_gamma, bn_beta,
                          dense_w, dense_b, kd)
    out = jax.block_until_ready(out)
    assert out.shape == (2, DENSE_OUT)
    assert bool(jnp.all(jnp.isfinite(out)))

    ref_out = _reference_encoder(x, conv_w, conv_b, bn_gamma, bn_beta,
                                 dense_w, dense_b, kd)
    # bf16 MXU operands vs f32 HIGHEST reference; identical dropout mask.
    assert bool(jnp.allclose(out, ref_out, rtol=1e-1, atol=1e-1)), "encoder mismatch"

    print("KERNEL_OK")
</pallas_src>

<mosaic_0001>
module attributes {stable_mosaic.version = 11 : i64} {
  func.func @_encoder_kernel(%arg0: i32, %arg1: memref<32x2048xbf16, #tpu.memory_space<vmem>>, %arg2: memref<8x128xf32, #tpu.memory_space<vmem>>, %arg3: memref<1536x256xbf16, #tpu.memory_space<vmem>>, %arg4: memref<1x256xf32, #tpu.memory_space<vmem>>, %arg5: memref<2x256xi32, #tpu.memory_space<vmem>>, %arg6: memref<2x256xf32, #tpu.memory_space<vmem>>, %arg7: memref<2x1536xbf16, #tpu.memory_space<vmem>>) attributes {dimension_semantics = [#tpu.dimension_semantics<arbitrary>], iteration_bounds = array<i64: 3>, scalar_prefetch = 0 : i64, scratch_operands = 1 : i64, tpu.core_type = #tpu.core_type<tc>, window_params = [{pipeline_mode = #tpu.pipeline_mode<synchronous>, transform_indices = @transform_0, window_bounds = array<i64: 32, 2048>}, {pipeline_mode = #tpu.pipeline_mode<synchronous>, transform_indices = @transform_1, window_bounds = array<i64: 8, 128>}, {transform_indices = @transform_2, window_bounds = array<i64: 1536, 256>}, {transform_indices = @transform_3, window_bounds = array<i64: 1, 256>}, {transform_indices = @transform_4, window_bounds = array<i64: 2, 256>}, {transform_indices = @transform_5, window_bounds = array<i64: 2, 256>}]} {
    %c0_i32 = arith.constant 0 : i32
    %0 = arith.cmpi eq, %arg0, %c0_i32 : i32
    %1 = arith.extui %0 : i1 to i32
    %c0_i32_0 = arith.constant 0 : i32
    %2 = arith.cmpi ne, %1, %c0_i32_0 : i32
    scf.if %2 {
      %c0_13 = arith.constant 0 : index
      %c0_14 = arith.constant 0 : index
      %19 = vector.load %arg2[%c0_13, %c0_14] : memref<8x128xf32, #tpu.memory_space<vmem>>, vector<8x32xf32>
      %20 = arith.truncf %19 : vector<8x32xf32> to vector<8x32xbf16>
      %c0_15 = arith.constant 0 : index
      %c0_16 = arith.constant 0 : index
      %21 = vector.load %arg1[%c0_15, %c0_16] : memref<32x2048xbf16, #tpu.memory_space<vmem>>, vector<32x2048xbf16>
      %cst_17 = arith.constant dense<0.000000e+00> : vector<8x2048xf32>
      %22 = tpu.matmul %20, %21, %cst_17 {dimension_numbers = #tpu.dot_dimension_numbers<[1], [0], [0], [1], [0, 0, 1, 1], [], []>} : vector<8x32xbf16>, vector<32x2048xbf16>, vector<8x2048xf32> -> vector<8x2048xf32>
      %c0_18 = arith.constant 0 : index
      %c32 = arith.constant 32 : index
      %23 = vector.load %arg2[%c0_18, %c32] : memref<8x128xf32, #tpu.memory_space<vmem>>, vector<8x1xf32>
      %24 = vector.broadcast %23 : vector<8x1xf32> to vector<8x2048xf32>
      %25 = arith.addf %22, %24 : vector<8x2048xf32>
      %cst_19 = arith.constant 0.000000e+00 : f32
      %26 = vector.broadcast %cst_19 : f32 to vector<8x2048xf32>
      %27 = arith.maximumf %25, %26 : vector<8x2048xf32>
      %cst_20 = arith.constant dense<0.000000e+00> : vector<8xf32>
      %28 = vector.multi_reduction <add>, %27, %cst_20 [1] : vector<8x2048xf32> to vector<8xf32>
      %29 = vector.shape_cast %28 : vector<8xf32> to vector<8x1xf32>
      %cst_21 = arith.constant 4.8828125E-4 : f32
      %30 = vector.broadcast %cst_21 : f32 to vector<8x1xf32>
      %31 = arith.mulf %29, %30 : vector<8x1xf32>
      %32 = arith.mulf %27, %27 : vector<8x2048xf32>
      %cst_22 = arith.constant dense<0.000000e+00> : vector<8xf32>
      %33 = vector.multi_reduction <add>, %32, %cst_22 [1] : vector<8x2048xf32> to vector<8xf32>
      %34 = vector.shape_cast %33 : vector<8xf32> to vector<8x1xf32>
      %cst_23 = arith.constant 4.8828125E-4 : f32
      %35 = vector.broadcast %cst_23 : f32 to vector<8x1xf32>
      %36 = arith.mulf %34, %35 : vector<8x1xf32>
      %37 = arith.mulf %31, %31 : vector<8x1xf32>
      %38 = arith.subf %36, %37 : vector<8x1xf32>
      %cst_24 = arith.constant 0.000000e+00 : f32
      %39 = vector.broadcast %cst_24 : f32 to vector<8x1xf32>
      %40 = arith.maximumf %38, %39 : vector<8x1xf32>
      %c0_25 = arith.constant 0 : index
      %c33 = arith.constant 33 : index
      %41 = vector.load %arg2[%c0_25, %c33] : memref<8x128xf32, #tpu.memory_space<vmem>>, vector<8x1xf32>
      %cst_26 = arith.constant 9.99999974E-6 : f32
      %42 = vector.broadcast %cst_26 : f32 to vector<8x1xf32>
      %43 = arith.addf %40, %42 : vector<8x1xf32>
      %44 = math.rsqrt %43 : vector<8x1xf32>
      %45 = arith.mulf %41, %44 : vector<8x1xf32>
      %46 = vector.broadcast %31 : vector<8x1xf32> to vector<8x2048xf32>
      %47 = arith.subf %27, %46 : vector<8x2048xf32>
      %48 = vector.broadcast %45 : vector<8x1xf32> to vector<8x2048xf32>
      %49 = arith.mulf %47, %48 : vector<8x2048xf32>
      %c0_27 = arith.constant 0 : index
      %c34 = arith.constant 34 : index
      %50 = vector.load %arg2[%c0_27, %c34] : memref<8x128xf32, #tpu.memory_space<vmem>>, vector<8x1xf32>
      %51 = vector.broadcast %50 : vector<8x1xf32> to vector<8x2048xf32>
      %52 = arith.addf %49, %51 : vector<8x2048xf32>
      %53 = vector.extract_strided_slice %52 {offsets = [0, 0], sizes = [8, 512], strides = [1, 1]} : vector<8x2048xf32> to vector<8x512xf32>
      %54 = vector.extract_strided_slice %52 {offsets = [0, 512], sizes = [8, 512], strides = [1, 1]} : vector<8x2048xf32> to vector<8x512xf32>
      %55 = arith.maximumf %53, %54 : vector<8x512xf32>
      %56 = vector.extract_strided_slice %52 {offsets = [0, 1024], sizes = [8, 512], strides = [1, 1]} : vector<8x2048xf32> to vector<8x512xf32>
      %57 = vector.extract_strided_slice %52 {offsets = [0, 1536], sizes = [8, 512], strides = [1, 1]} : vector<8x2048xf32> to vector<8x512xf32>
      %58 = arith.maximumf %56, %57 : vector<8x512xf32>
      %59 = arith.maximumf %55, %58 : vector<8x512xf32>
      %60 = vector.extract_strided_slice %59 {offsets = [0, 0], sizes = [1, 256], strides = [1, 1]} : vector<8x512xf32> to vector<1x256xf32>
      %61 = vector.extract_strided_slice %59 {offsets = [1, 0], sizes = [1, 256], strides = [1, 1]} : vector<8x512xf32> to vector<1x256xf32>
      %62 = vector.extract_strided_slice %59 {offsets = [2, 0], sizes = [1, 256], strides = [1, 1]} : vector<8x512xf32> to vector<1x256xf32>
      %63 = vector.extract_strided_slice %59 {offsets = [3, 0], sizes = [1, 256], strides = [1, 1]} : vector<8x512xf32> to vector<1x256xf32>
      %64 = vector.extract_strided_slice %59 {offsets = [4, 0], sizes = [1, 256], strides = [1, 1]} : vector<8x512xf32> to vector<1x256xf32>
      %65 = vector.extract_strided_slice %59 {offsets = [5, 0], sizes = [1, 256], strides = [1, 1]} : vector<8x512xf32> to vector<1x256xf32>
      %66 = tpu.concatenate %60, %61, %62, %63, %64, %65 in 1 : vector<1x256xf32>, vector<1x256xf32>, vector<1x256xf32>, vector<1x256xf32>, vector<1x256xf32>, vector<1x256xf32> -> vector<1x1536xf32>
      %67 = vector.extract_strided_slice %59 {offsets = [0, 256], sizes = [1, 256], strides = [1, 1]} : vector<8x512xf32> to vector<1x256xf32>
      %68 = vector.extract_strided_slice %59 {offsets = [1, 256], sizes = [1, 256], strides = [1, 1]} : vector<8x512xf32> to vector<1x256xf32>
      %69 = vector.extract_strided_slice %59 {offsets = [2, 256], sizes = [1, 256], strides = [1, 1]} : vector<8x512xf32> to vector<1x256xf32>
      %70 = vector.extract_strided_slice %59 {offsets = [3, 256], sizes = [1, 256], strides = [1, 1]} : vector<8x512xf32> to vector<1x256xf32>
      %71 = vector.extract_strided_slice %59 {offsets = [4, 256], sizes = [1, 256], strides = [1, 1]} : vector<8x512xf32> to vector<1x256xf32>
      %72 = vector.extract_strided_slice %59 {offsets = [5, 256], sizes = [1, 256], strides = [1, 1]} : vector<8x512xf32> to vector<1x256xf32>
      %73 = tpu.concatenate %67, %68, %69, %70, %71, %72 in 1 : vector<1x256xf32>, vector<1x256xf32>, vector<1x256xf32>, vector<1x256xf32>, vector<1x256xf32>, vector<1x256xf32> -> vector<1x1536xf32>
      %74 = tpu.concatenate %66, %73 in 0 : vector<1x1536xf32>, vector<1x1536xf32> -> vector<2x1536xf32>
      %75 = arith.truncf %74 : vector<2x1536xf32> to vector<2x1536xbf16>
      %c0_28 = arith.constant 0 : index
      %c0_29 = arith.constant 0 : index
      %76 = vector.load %arg7[%c0_28, %c0_29] : memref<2x1536xbf16, #tpu.memory_space<vmem>>, vector<2x1536xbf16>
      tpu.vector_store %arg7[%c0_28, %c0_29], %75 {strides = array<i32>} : memref<2x1536xbf16, #tpu.memory_space<vmem>>, vector<2x1536xbf16>,
    } else {
    }
    %c0 = arith.constant 0 : index
    %c0_1 = arith.constant 0 : index
    %3 = vector.load %arg7[%c0, %c0_1] : memref<2x1536xbf16, #tpu.memory_space<vmem>>, vector<2x1536xbf16>
    %c0_2 = arith.constant 0 : index
    %c0_3 = arith.constant 0 : index
    %4 = vector.load %arg3[%c0_2, %c0_3] : memref<1536x256xbf16, #tpu.memory_space<vmem>>, vector<1536x256xbf16>
    %cst = arith.constant dense<0.000000e+00> : vector<2x256xf32>
    %5 = tpu.matmul %3, %4, %cst {dimension_numbers = #tpu.dot_dimension_numbers<[1], [0], [0], [1], [0, 0, 1, 1], [], []>} : vector<2x1536xbf16>, vector<1536x256xbf16>, vector<2x256xf32> -> vector<2x256xf32>
    %c0_4 = arith.constant 0 : index
    %c0_5 = arith.constant 0 : index
    %6 = vector.load %arg4[%c0_4, %c0_5] : memref<1x256xf32, #tpu.memory_space<vmem>>, vector<1x256xf32>
    %7 = vector.broadcast %6 : vector<1x256xf32> to vector<2x256xf32>
    %8 = arith.addf %5, %7 : vector<2x256xf32>
    %cst_6 = arith.constant 0.000000e+00 : f32
    %9 = vector.broadcast %cst_6 : f32 to vector<2x256xf32>
    %10 = arith.maximumf %8, %9 : vector<2x256xf32>
    %c0_7 = arith.constant 0 : index
    %c0_8 = arith.constant 0 : index
    %11 = vector.load %arg5[%c0_7, %c0_8] : memref<2x256xi32, #tpu.memory_space<vmem>>, vector<2x256xi32>
    %c1677722_i32 = arith.constant 1677722 : i32
    %12 = vector.broadcast %c1677722_i32 : i32 to vector<2x256xi32>
    %13 = arith.cmpi sge, %11, %12 : vector<2x256xi32>
    %cst_9 = arith.constant 1.250000e+00 : f32
    %14 = vector.broadcast %cst_9 : f32 to vector<2x256xf32>
    %15 = arith.mulf %10, %14 : vector<2x256xf32>
    %cst_10 = arith.constant 0.000000e+00 : f32
    %16 = vector.broadcast %cst_10 : f32 to vector<2x256xf32>
    %17 = arith.select %13, %15, %16 : vector<2x256xi1>, vector<2x256xf32>
    %c0_11 = arith.constant 0 : index
    %c0_12 = arith.constant 0 : index
    %18 = vector.load %arg6[%c0_11, %c0_12] : memref<2x256xf32, #tpu.memory_space<vmem>>, vector<2x256xf32>
    tpu.vector_store %arg6[%c0_11, %c0_12], %17 {strides = array<i32>} : memref<2x256xf32, #tpu.memory_space<vmem>>, vector<2x256xf32>,
    return
  }
  func.func @transform_0(%arg0: i32) -> (i32, i32) {
    %c0_i32 = arith.constant 0 : i32
    %c0_i32_0 = arith.constant 0 : i32
    %c0_i32_1 = arith.constant 0 : i32
    return %c0_i32, %c0_i32_0 : i32, i32
  }
  func.func @transform_1(%arg0: i32) -> (i32, i32) {
    %c0_i32 = arith.constant 0 : i32
    %c0_i32_0 = arith.constant 0 : i32
    %c0_i32_1 = arith.constant 0 : i32
    return %c0_i32, %c0_i32_0 : i32, i32
  }
  func.func @transform_2(%arg0: i32) -> (i32, i32) {
    %c0_i32 = arith.constant 0 : i32
    %c0_i32_0 = arith.constant 0 : i32
    return %c0_i32, %arg0 : i32, i32
  }
  func.func @transform_3(%arg0: i32) -> (i32, i32) {
    %c0_i32 = arith.constant 0 : i32
    %c0_i32_0 = arith.constant 0 : i32
    return %c0_i32, %arg0 : i32, i32
  }
  func.func @transform_4(%arg0: i32) -> (i32, i32) {
    %c0_i32 = arith.constant 0 : i32
    %c0_i32_0 = arith.constant 0 : i32
    return %c0_i32, %arg0 : i32, i32
  }
  func.func @transform_5(%arg0: i32) -> (i32, i32) {
    %c0_i32 = arith.constant 0 : i32
    %c0_i32_0 = arith.constant 0 : i32
    return %c0_i32, %arg0 : i32, i32
  }
}

</mosaic_0001>

<bundles_post_ra>
// kernel: encoder_forward.1
= control target key start
LH: loop header
LB: loop body
LE: loop exit
PB: predicated region body
PF: predicated region fallthrough
CT: control target
= control target key end

     0   :  { %10 = vsyncpa [#allocation5], 0  ;;  %s6001_s0 = inlined_call_operand.vmem [shape: bf16[32,2048], index: 0, kind: input, shape index: {}]   ;;  %s6002_s1 = inlined_call_operand.vmem [shape: f32[8,128], index: 1, kind: input, shape index: {}]   ;;  %s6003_s2 = inlined_call_operand.vmem [shape: bf16[1536,768], index: 2, kind: input, shape index: {}]   ;;  %s6004_s3 = inlined_call_operand.vmem [shape: f32[1,768], index: 3, kind: input, shape index: {}]   ;;  %s6005_s4 = inlined_call_operand.vmem [shape: s32[2,768], index: 4, kind: input, shape index: {}]   ;;  %s6006_s5 = inlined_call_operand.hbm [shape: f32[2,768], index: 5, kind: output, shape index: {}]  }
   0x1   :  { %12 = vsyncpa [#allocation5 + $0x1], 0  ;;  %s4687_s18 = smov 0   ;;  %s4689_s19 = smov 0  }
   0x2   :  { %s4691_s20 = smov 0   ;;  %s4693_s21 = smov 0  }
   0x3 LB: > { %s4708_s22 = sadd.s32 4294967295, %s4652_s21   ;;  %s3376_s23 = sadd.s32 4294967294, %s4652_s21   ;;  %s4652_s21 = sphi %s4693_s21, %s6013_s21   ;;  %s4648_s20 = sphi %s4691_s20, %s6012_s20   ;;  %s4644_s19 = sphi %s4689_s19, %s6011_s19   ;;  %s4640_s18 = sphi %s4687_s18, %s6010_s18  }
   0x4   : > { %s4712_s24 = sadd.s32 1, %s4652_s21   ;;  %s67_s25 = sadd.s32 1, %s4648_s20 }
   0x5   : > { %s64_s26 = ssub.s32 %s4652_s21, %s4712_s24  ;;  %p74_p0 = scmp.ne.s32.totalorder %s4648_s20, %s4644_s19 }
   0x6   : > { %p65_p1 = scmp.eq.s32.totalorder %s64_s26, 0  ;;  %p75_p2 = scmp.eq.s32.totalorder %s4652_s21, 0 }
   0x7   : > { %p156_p3 = scmp.eq.s32.totalorder %s4708_s22, 2  ;;  %p161_p4 = scmp.ne.s32.totalorder %s4644_s19, %s4640_s18 }
   0x8   : > { %s4724_s27 = scalar_select %p65_p1, %s4648_s20, %s67_s25  }
   0x9   : > { %p76_p5 = por %p75_p2, %p74_p0  ;;  %p4726_p6 = por %p156_p3, %p74_p0 }
   0xa   : > { %p162_p7 = scmp.eq.s32.totalorder %s3376_s23, 2  ;;  %p3378_p9 = scmp.ge.s32.totalorder %s4652_s21, 3 }
   0xc   : > { %p4730_p8 = por %p162_p7, %p161_p4  ;;  %184 = sbr.rel (%p3378_p9) target bundleno = 213 (0xd5), region = 24 }
  0x11   : > { %187 = sbr.rel (!%p76_p5) target bundleno = 213 (0xd5), region = 28  ;;  %s189_s30 = sand.u32 (%p76_p5), 1, %s4648_s20  }
  0x12   : > { %s4314_s6 = sshll.u32 (%p76_p5), %s4652_s21, 3  ;;  %s4540_s7 = smul.u32 (%p76_p5), 1536, %s189_s30 }
  0x13   : > { %s4740_s10 = scalar_lea.vmem (%p76_p5), %s6003_s2, %s4314_s6 }
  0x14   : > { %v605_v0 = vld [vmem:[%s4740_s10] sm:$0xff] (%p76_p5)  ;;  %v607_v1 = vld [vmem:[%s4740_s10 + $0x18] sm:$0xff] (%p76_p5)  ;;  %v609_v2 = vld [vmem:[%s4740_s10 + $0x30] sm:$0xff] (%p76_p5)  ;;  %s4745_s11 = scalar_lea.vmem (%p76_p5), [#allocation3], %s4540_s7 }
  0x15   : > { %606 = vst [vmem:[%s4745_s11] sm:$0xff] (%p76_p5), %v605_v0  ;;  %v611_v3 = vld [vmem:[%s4740_s10 + $0x48] sm:$0xff] (%p76_p5)  ;;  %v613_v4 = vld [vmem:[%s4740_s10 + $0x60] sm:$0xff] (%p76_p5)  ;;  %v615_v5 = vld [vmem:[%s4740_s10 + $0x78] sm:$0xff] (%p76_p5) }
  0x16   : > { %608 = vst [vmem:[%s4745_s11 + $0x8] sm:$0xff] %v607_v1  ;;  %v617_v6 = vld [vmem:[%s4740_s10 + $0x90] sm:$0xff]  ;;  %v619_v7 = vld [vmem:[%s4740_s10 + $0xa8] sm:$0xff]  ;;  %v621_v8 = vld [vmem:[%s4740_s10 + $0xc0] sm:$0xff] }
  0x17   : > { %610 = vst [vmem:[%s4745_s11 + $0x10] sm:$0xff] %v609_v2  ;;  %v623_v9 = vld [vmem:[%s4740_s10 + $0xd8] sm:$0xff]  ;;  %v625_v10 = vld [vmem:[%s4740_s10 + $0xf0] sm:$0xff]  ;;  %v627_v11 = vld [vmem:[%s4740_s10 + $0x108] sm:$0xff] }
  0x18   : > { %612 = vst [vmem:[%s4745_s11 + $0x18] sm:$0xff] %v611_v3  ;;  %v629_v12 = vld [vmem:[%s4740_s10 + $0x120] sm:$0xff]  ;;  %v631_v13 = vld [vmem:[%s4740_s10 + $0x138] sm:$0xff]  ;;  %v633_v14 = vld [vmem:[%s4740_s10 + $0x150] sm:$0xff] }
  0x19   : > { %614 = vst [vmem:[%s4745_s11 + $0x20] sm:$0xff] %v613_v4  ;;  %v635_v15 = vld [vmem:[%s4740_s10 + $0x168] sm:$0xff]  ;;  %v637_v16 = vld [vmem:[%s4740_s10 + $0x180] sm:$0xff]  ;;  %v639_v17 = vld [vmem:[%s4740_s10 + $0x198] sm:$0xff] }
  0x1a   : > { %616 = vst [vmem:[%s4745_s11 + $0x28] sm:$0xff] %v615_v5  ;;  %v641_v18 = vld [vmem:[%s4740_s10 + $0x1b0] sm:$0xff]  ;;  %v643_v19 = vld [vmem:[%s4740_s10 + $0x1c8] sm:$0xff]  ;;  %v645_v20 = vld [vmem:[%s4740_s10 + $0x1e0] sm:$0xff] }
  0x1b   : > { %618 = vst [vmem:[%s4745_s11 + $0x30] sm:$0xff] %v617_v6  ;;  %v647_v21 = vld [vmem:[%s4740_s10 + $0x1f8] sm:$0xff]  ;;  %v649_v22 = vld [vmem:[%s4740_s10 + $0x210] sm:$0xff]  ;;  %v651_v23 = vld [vmem:[%s4740_s10 + $0x228] sm:$0xff] }
  0x1c   : > { %620 = vst [vmem:[%s4745_s11 + $0x38] sm:$0xff] %v619_v7  ;;  %v653_v24 = vld [vmem:[%s4740_s10 + $0x240] sm:$0xff]  ;;  %v655_v25 = vld [vmem:[%s4740_s10 + $0x258] sm:$0xff]  ;;  %v657_v26 = vld [vmem:[%s4740_s10 + $0x270] sm:$0xff] }
  0x1d   : > { %622 = vst [vmem:[%s4745_s11 + $0x40] sm:$0xff] %v621_v8  ;;  %v659_v27 = vld [vmem:[%s4740_s10 + $0x288] sm:$0xff]  ;;  %v661_v28 = vld [vmem:[%s4740_s10 + $0x2a0] sm:$0xff]  ;;  %v663_v29 = vld [vmem:[%s4740_s10 + $0x2b8] sm:$0xff] }
  0x1e   : > { %624 = vst [vmem:[%s4745_s11 + $0x48] sm:$0xff] %v623_v9  ;;  %v665_v30 = vld [vmem:[%s4740_s10 + $0x2d0] sm:$0xff]  ;;  %v667_v31 = vld [vmem:[%s4740_s10 + $0x2e8] sm:$0xff]  ;;  %v669_v32 = vld [vmem:[%s4740_s10 + $0x300] sm:$0xff] }
  0x1f   : > { %626 = vst [vmem:[%s4745_s11 + $0x50] sm:$0xff] %v625_v10  ;;  %v671_v33 = vld [vmem:[%s4740_s10 + $0x318] sm:$0xff]  ;;  %v673_v34 = vld [vmem:[%s4740_s10 + $0x330] sm:$0xff]  ;;  %v675_v35 = vld [vmem:[%s4740_s10 + $0x348] sm:$0xff] }
  0x20   : > { %628 = vst [vmem:[%s4745_s11 + $0x58] sm:$0xff] %v627_v11  ;;  %v677_v36 = vld [vmem:[%s4740_s10 + $0x360] sm:$0xff]  ;;  %v679_v37 = vld [vmem:[%s4740_s10 + $0x378] sm:$0xff]  ;;  %v681_v38 = vld [vmem:[%s4740_s10 + $0x390] sm:$0xff] }
  0x21   : > { %630 = vst [vmem:[%s4745_s11 + $0x60] sm:$0xff] %v629_v12  ;;  %v683_v39 = vld [vmem:[%s4740_s10 + $0x3a8] sm:$0xff]  ;;  %v685_v40 = vld [vmem:[%s4740_s10 + $0x3c0] sm:$0xff]  ;;  %v687_v41 = vld [vmem:[%s4740_s10 + $0x3d8] sm:$0xff] }
  0x22   : > { %632 = vst [vmem:[%s4745_s11 + $0x68] sm:$0xff] %v631_v13  ;;  %v689_v42 = vld [vmem:[%s4740_s10 + $0x3f0] sm:$0xff]  ;;  %v691_v43 = vld [vmem:[%s4740_s10 + $0x408] sm:$0xff]  ;;  %v693_v44 = vld [vmem:[%s4740_s10 + $0x420] sm:$0xff] }
  0x23   : > { %634 = vst [vmem:[%s4745_s11 + $0x70] sm:$0xff] %v633_v14  ;;  %v695_v45 = vld [vmem:[%s4740_s10 + $0x438] sm:$0xff]  ;;  %v697_v46 = vld [vmem:[%s4740_s10 + $0x450] sm:$0xff]  ;;  %v699_v47 = vld [vmem:[%s4740_s10 + $0x468] sm:$0xff] }
  0x24   : > { %636 = vst [vmem:[%s4745_s11 + $0x78] sm:$0xff] %v635_v15  ;;  %v701_v48 = vld [vmem:[%s4740_s10 + $0x480] sm:$0xff]  ;;  %v703_v49 = vld [vmem:[%s4740_s10 + $0x498] sm:$0xff]  ;;  %v705_v50 = vld [vmem:[%s4740_s10 + $0x4b0] sm:$0xff] }
  0x25   : > { %638 = vst [vmem:[%s4745_s11 + $0x80] sm:$0xff] %v637_v16  ;;  %v707_v51 = vld [vmem:[%s4740_s10 + $0x4c8] sm:$0xff]  ;;  %v709_v52 = vld [vmem:[%s4740_s10 + $0x4e0] sm:$0xff]  ;;  %v711_v53 = vld [vmem:[%s4740_s10 + $0x4f8] sm:$0xff] }
  0x26   : > { %640 = vst [vmem:[%s4745_s11 + $0x88] sm:$0xff] %v639_v17  ;;  %v713_v54 = vld [vmem:[%s4740_s10 + $0x510] sm:$0xff]  ;;  %v715_v55 = vld [vmem:[%s4740_s10 + $0x528] sm:$0xff]  ;;  %v717_v56 = vld [vmem:[%s4740_s10 + $0x540] sm:$0xff] }
  0x27   : > { %642 = vst [vmem:[%s4745_s11 + $0x90] sm:$0xff] %v641_v18  ;;  %v719_v57 = vld [vmem:[%s4740_s10 + $0x558] sm:$0xff]  ;;  %v721_v58 = vld [vmem:[%s4740_s10 + $0x570] sm:$0xff]  ;;  %v723_v59 = vld [vmem:[%s4740_s10 + $0x588] sm:$0xff] }
  0x28   : > { %644 = vst [vmem:[%s4745_s11 + $0x98] sm:$0xff] %v643_v19  ;;  %v725_v60 = vld [vmem:[%s4740_s10 + $0x5a0] sm:$0xff]  ;;  %v727_v61 = vld [vmem:[%s4740_s10 + $0x5b8] sm:$0xff]  ;;  %v729_v62 = vld [vmem:[%s4740_s10 + $0x5d0] sm:$0xff] }
  0x29   : > { %646 = vst [vmem:[%s4745_s11 + $0xa0] sm:$0xff] %v645_v20  ;;  %v731_v63 = vld [vmem:[%s4740_s10 + $0x5e8] sm:$0xff]  ;;  %v733_v0 = vld [vmem:[%s4740_s10 + $0x600] sm:$0xff]  ;;  %v735_v1 = vld [vmem:[%s4740_s10 + $0x618] sm:$0xff] }
  0x2a   : > { %648 = vst [vmem:[%s4745_s11 + $0xa8] sm:$0xff] %v647_v21  ;;  %v737_v2 = vld [vmem:[%s4740_s10 + $0x630] sm:$0xff]  ;;  %v739_v3 = vld [vmem:[%s4740_s10 + $0x648] sm:$0xff]  ;;  %v741_v4 = vld [vmem:[%s4740_s10 + $0x660] sm:$0xff] }
  0x2b   : > { %650 = vst [vmem:[%s4745_s11 + $0xb0] sm:$0xff] %v649_v22  ;;  %v743_v5 = vld [vmem:[%s4740_s10 + $0x678] sm:$0xff]  ;;  %v745_v6 = vld [vmem:[%s4740_s10 + $0x690] sm:$0xff]  ;;  %v747_v7 = vld [vmem:[%s4740_s10 + $0x6a8] sm:$0xff] }
  0x2c   : > { %652 = vst [vmem:[%s4745_s11 + $0xb8] sm:$0xff] %v651_v23  ;;  %v749_v8 = vld [vmem:[%s4740_s10 + $0x6c0] sm:$0xff]  ;;  %v751_v9 = vld [vmem:[%s4740_s10 + $0x6d8] sm:$0xff]  ;;  %v753_v10 = vld [vmem:[%s4740_s10 + $0x6f0] sm:$0xff] }
  0x2d   : > { %654 = vst [vmem:[%s4745_s11 + $0xc0] sm:$0xff] %v653_v24  ;;  %v755_v11 = vld [vmem:[%s4740_s10 + $0x708] sm:$0xff]  ;;  %v757_v12 = vld [vmem:[%s4740_s10 + $0x720] sm:$0xff]  ;;  %v759_v13 = vld [vmem:[%s4740_s10 + $0x738] sm:$0xff] }
  0x2e   : > { %656 = vst [vmem:[%s4745_s11 + $0xc8] sm:$0xff] %v655_v25  ;;  %v761_v14 = vld [vmem:[%s4740_s10 + $0x750] sm:$0xff]  ;;  %v763_v15 = vld [vmem:[%s4740_s10 + $0x768] sm:$0xff]  ;;  %v765_v16 = vld [vmem:[%s4740_s10 + $0x780] sm:$0xff] }
  0x2f   : > { %658 = vst [vmem:[%s4745_s11 + $0xd0] sm:$0xff] %v657_v26  ;;  %v767_v17 = vld [vmem:[%s4740_s10 + $0x798] sm:$0xff]  ;;  %v769_v18 = vld [vmem:[%s4740_s10 + $0x7b0] sm:$0xff]  ;;  %v771_v19 = vld [vmem:[%s4740_s10 + $0x7c8] sm:$0xff] }
  0x30   : > { %660 = vst [vmem:[%s4745_s11 + $0xd8] sm:$0xff] %v659_v27  ;;  %v773_v20 = vld [vmem:[%s4740_s10 + $0x7e0] sm:$0xff]  ;;  %v775_v21 = vld [vmem:[%s4740_s10 + $0x7f8] sm:$0xff]  ;;  %v777_v22 = vld [vmem:[%s4740_s10 + $0x810] sm:$0xff] }
  0x31   : > { %662 = vst [vmem:[%s4745_s11 + $0xe0] sm:$0xff] %v661_v28  ;;  %v779_v23 = vld [vmem:[%s4740_s10 + $0x828] sm:$0xff]  ;;  %v781_v24 = vld [vmem:[%s4740_s10 + $0x840] sm:$0xff]  ;;  %v783_v25 = vld [vmem:[%s4740_s10 + $0x858] sm:$0xff] }
  0x32   : > { %664 = vst [vmem:[%s4745_s11 + $0xe8] sm:$0xff] %v663_v29  ;;  %v785_v26 = vld [vmem:[%s4740_s10 + $0x870] sm:$0xff]  ;;  %v787_v27 = vld [vmem:[%s4740_s10 + $0x888] sm:$0xff]  ;;  %v789_v28 = vld [vmem:[%s4740_s10 + $0x8a0] sm:$0xff] }
  0x33   : > { %666 = vst [vmem:[%s4745_s11 + $0xf0] sm:$0xff] %v665_v30  ;;  %v791_v29 = vld [vmem:[%s4740_s10 + $0x8b8] sm:$0xff]  ;;  %v793_v30 = vld [vmem:[%s4740_s10 + $0x8d0] sm:$0xff] }
  0x34   : > { %668 = vst [vmem:[%s4745_s11 + $0xf8] sm:$0xff] %v667_v31  ;;  %v795_v31 = vld [vmem:[%s4740_s10 + $0x8e8] sm:$0xff] }
  0x35   : > { %670 = vst [vmem:[%s4745_s11 + $0x100] sm:$0xff] %v669_v32  ;;  %v797_v32 = vld [vmem:[%s4740_s10 + $0x900] sm:$0xff] }
  0x36   : > { %672 = vst [vmem:[%s4745_s11 + $0x108] sm:$0xff] %v671_v33  ;;  %v799_v33 = vld [vmem:[%s4740_s10 + $0x918] sm:$0xff] }
  0x37   : > { %674 = vst [vmem:[%s4745_s11 + $0x110] sm:$0xff] %v673_v34  ;;  %v801_v34 = vld [vmem:[%s4740_s10 + $0x930] sm:$0xff] }
  0x38   : > { %676 = vst [vmem:[%s4745_s11 + $0x118] sm:$0xff] %v675_v35  ;;  %v803_v35 = vld [vmem:[%s4740_s10 + $0x948] sm:$0xff] }
  0x39   : > { %678 = vst [vmem:[%s4745_s11 + $0x120] sm:$0xff] %v677_v36  ;;  %v805_v36 = vld [vmem:[%s4740_s10 + $0x960] sm:$0xff] }
  0x3a   : > { %680 = vst [vmem:[%s4745_s11 + $0x128] sm:$0xff] %v679_v37  ;;  %v807_v37 = vld [vmem:[%s4740_s10 + $0x978] sm:$0xff] }
  0x3b   : > { %682 = vst [vmem:[%s4745_s11 + $0x130] sm:$0xff] %v681_v38  ;;  %v809_v38 = vld [vmem:[%s4740_s10 + $0x990] sm:$0xff] }
  0x3c   : > { %684 = vst [vmem:[%s4745_s11 + $0x138] sm:$0xff] %v683_v39  ;;  %v811_v39 = vld [vmem:[%s4740_s10 + $0x9a8] sm:$0xff] }
  0x3d   : > { %686 = vst [vmem:[%s4745_s11 + $0x140] sm:$0xff] %v685_v40  ;;  %v813_v40 = vld [vmem:[%s4740_s10 + $0x9c0] sm:$0xff] }
  0x3e   : > { %688 = vst [vmem:[%s4745_s11 + $0x148] sm:$0xff] %v687_v41  ;;  %v815_v41 = vld [vmem:[%s4740_s10 + $0x9d8] sm:$0xff] }
  0x3f   : > { %690 = vst [vmem:[%s4745_s11 + $0x150] sm:$0xff] %v689_v42  ;;  %v817_v42 = vld [vmem:[%s4740_s10 + $0x9f0] sm:$0xff] }
  0x40   : > { %692 = vst [vmem:[%s4745_s11 + $0x158] sm:$0xff] %v691_v43  ;;  %v819_v43 = vld [vmem:[%s4740_s10 + $0xa08] sm:$0xff] }
  0x41   : > { %694 = vst [vmem:[%s4745_s11 + $0x160] sm:$0xff] %v693_v44  ;;  %v821_v44 = vld [vmem:[%s4740_s10 + $0xa20] sm:$0xff] }
  0x42   : > { %696 = vst [vmem:[%s4745_s11 + $0x168] sm:$0xff] %v695_v45  ;;  %v823_v45 = vld [vmem:[%s4740_s10 + $0xa38] sm:$0xff] }
  0x43   : > { %698 = vst [vmem:[%s4745_s11 + $0x170] sm:$0xff] %v697_v46  ;;  %v825_v46 = vld [vmem:[%s4740_s10 + $0xa50] sm:$0xff] }
  0x44   : > { %700 = vst [vmem:[%s4745_s11 + $0x178] sm:$0xff] %v699_v47  ;;  %v827_v47 = vld [vmem:[%s4740_s10 + $0xa68] sm:$0xff] }
  0x45   : > { %702 = vst [vmem:[%s4745_s11 + $0x180] sm:$0xff] %v701_v48  ;;  %v829_v48 = vld [vmem:[%s4740_s10 + $0xa80] sm:$0xff] }
  0x46   : > { %704 = vst [vmem:[%s4745_s11 + $0x188] sm:$0xff] %v703_v49  ;;  %v831_v49 = vld [vmem:[%s4740_s10 + $0xa98] sm:$0xff] }
  0x47   : > { %706 = vst [vmem:[%s4745_s11 + $0x190] sm:$0xff] %v705_v50  ;;  %v833_v50 = vld [vmem:[%s4740_s10 + $0xab0] sm:$0xff] }
  0x48   : > { %708 = vst [vmem:[%s4745_s11 + $0x198] sm:$0xff] %v707_v51  ;;  %v835_v51 = vld [vmem:[%s4740_s10 + $0xac8] sm:$0xff] }
  0x49   : > { %710 = vst [vmem:[%s4745_s11 + $0x1a0] sm:$0xff] %v709_v52  ;;  %v837_v52 = vld [vmem:[%s4740_s10 + $0xae0] sm:$0xff] }
  0x4a   : > { %712 = vst [vmem:[%s4745_s11 + $0x1a8] sm:$0xff] %v711_v53  ;;  %v839_v53 = vld [vmem:[%s4740_s10 + $0xaf8] sm:$0xff] }
  0x4b   : > { %714 = vst [vmem:[%s4745_s11 + $0x1b0] sm:$0xff] %v713_v54  ;;  %v841_v54 = vld [vmem:[%s4740_s10 + $0xb10] sm:$0xff] }
  0x4c   : > { %716 = vst [vmem:[%s4745_s11 + $0x1b8] sm:$0xff] %v715_v55  ;;  %v843_v55 = vld [vmem:[%s4740_s10 + $0xb28] sm:$0xff] }
  0x4d   : > { %718 = vst [vmem:[%s4745_s11 + $0x1c0] sm:$0xff] %v717_v56  ;;  %v845_v56 = vld [vmem:[%s4740_s10 + $0xb40] sm:$0xff] }
  0x4e   : > { %720 = vst [vmem:[%s4745_s11 + $0x1c8] sm:$0xff] %v719_v57  ;;  %v847_v57 = vld [vmem:[%s4740_s10 + $0xb58] sm:$0xff] }
  0x4f   : > { %722 = vst [vmem:[%s4745_s11 + $0x1d0] sm:$0xff] %v721_v58  ;;  %v849_v58 = vld [vmem:[%s4740_s10 + $0xb70] sm:$0xff] }
  0x50   : > { %724 = vst [vmem:[%s4745_s11 + $0x1d8] sm:$0xff] %v723_v59  ;;  %v851_v59 = vld [vmem:[%s4740_s10 + $0xb88] sm:$0xff] }
  0x51   : > { %726 = vst [vmem:[%s4745_s11 + $0x1e0] sm:$0xff] %v725_v60  ;;  %v853_v60 = vld [vmem:[%s4740_s10 + $0xba0] sm:$0xff] }
  0x52   : > { %728 = vst [vmem:[%s4745_s11 + $0x1e8] sm:$0xff] %v727_v61  ;;  %v855_v61 = vld [vmem:[%s4740_s10 + $0xbb8] sm:$0xff] }
  0x53   : > { %730 = vst [vmem:[%s4745_s11 + $0x1f0] sm:$0xff] %v729_v62  ;;  %v857_v62 = vld [vmem:[%s4740_s10 + $0xbd0] sm:$0xff] }
  0x54   : > { %732 = vst [vmem:[%s4745_s11 + $0x1f8] sm:$0xff] %v731_v63  ;;  %v859_v63 = vld [vmem:[%s4740_s10 + $0xbe8] sm:$0xff] }
  0x55   : > { %734 = vst [vmem:[%s4745_s11 + $0x200] sm:$0xff] %v733_v0  ;;  %v861_v0 = vld [vmem:[%s4740_s10 + $0xc00] sm:$0xff] }
  0x56   : > { %736 = vst [vmem:[%s4745_s11 + $0x208] sm:$0xff] %v735_v1  ;;  %v863_v1 = vld [vmem:[%s4740_s10 + $0xc18] sm:$0xff] }
  0x57   : > { %738 = vst [vmem:[%s4745_s11 + $0x210] sm:$0xff] %v737_v2  ;;  %v865_v2 = vld [vmem:[%s4740_s10 + $0xc30] sm:$0xff] }
  0x58   : > { %740 = vst [vmem:[%s4745_s11 + $0x218] sm:$0xff] %v739_v3  ;;  %v867_v3 = vld [vmem:[%s4740_s10 + $0xc48] sm:$0xff] }
  0x59   : > { %742 = vst [vmem:[%s4745_s11 + $0x220] sm:$0xff] %v741_v4  ;;  %v869_v4 = vld [vmem:[%s4740_s10 + $0xc60] sm:$0xff] }
  0x5a   : > { %744 = vst [vmem:[%s4745_s11 + $0x228] sm:$0xff] %v743_v5  ;;  %v871_v5 = vld [vmem:[%s4740_s10 + $0xc78] sm:$0xff] }
  0x5b   : > { %746 = vst [vmem:[%s4745_s11 + $0x230] sm:$0xff] %v745_v6  ;;  %v873_v6 = vld [vmem:[%s4740_s10 + $0xc90] sm:$0xff] }
  0x5c   : > { %748 = vst [vmem:[%s4745_s11 + $0x238] sm:$0xff] %v747_v7  ;;  %v875_v7 = vld [vmem:[%s4740_s10 + $0xca8] sm:$0xff] }
  0x5d   : > { %750 = vst [vmem:[%s4745_s11 + $0x240] sm:$0xff] %v749_v8  ;;  %v877_v8 = vld [vmem:[%s4740_s10 + $0xcc0] sm:$0xff] }
  0x5e   : > { %752 = vst [vmem:[%s4745_s11 + $0x248] sm:$0xff] %v751_v9  ;;  %v879_v9 = vld [vmem:[%s4740_s10 + $0xcd8] sm:$0xff] }
  0x5f   : > { %754 = vst [vmem:[%s4745_s11 + $0x250] sm:$0xff] %v753_v10  ;;  %v881_v10 = vld [vmem:[%s4740_s10 + $0xcf0] sm:$0xff] }
  0x60   : > { %756 = vst [vmem:[%s4745_s11 + $0x258] sm:$0xff] %v755_v11  ;;  %v883_v11 = vld [vmem:[%s4740_s10 + $0xd08] sm:$0xff] }
  0x61   : > { %758 = vst [vmem:[%s4745_s11 + $0x260] sm:$0xff] %v757_v12  ;;  %v885_v12 = vld [vmem:[%s4740_s10 + $0xd20] sm:$0xff] }
  0x62   : > { %760 = vst [vmem:[%s4745_s11 + $0x268] sm:$0xff] %v759_v13  ;;  %v887_v13 = vld [vmem:[%s4740_s10 + $0xd38] sm:$0xff] }
  0x63   : > { %762 = vst [vmem:[%s4745_s11 + $0x270] sm:$0xff] %v761_v14  ;;  %v889_v14 = vld [vmem:[%s4740_s10 + $0xd50] sm:$0xff] }
  0x64   : > { %764 = vst [vmem:[%s4745_s11 + $0x278] sm:$0xff] %v763_v15  ;;  %v891_v15 = vld [vmem:[%s4740_s10 + $0xd68] sm:$0xff] }
  0x65   : > { %766 = vst [vmem:[%s4745_s11 + $0x280] sm:$0xff] %v765_v16  ;;  %v893_v16 = vld [vmem:[%s4740_s10 + $0xd80] sm:$0xff] }
  0x66   : > { %768 = vst [vmem:[%s4745_s11 + $0x288] sm:$0xff] %v767_v17  ;;  %v895_v17 = vld [vmem:[%s4740_s10 + $0xd98] sm:$0xff] }
  0x67   : > { %770 = vst [vmem:[%s4745_s11 + $0x290] sm:$0xff] %v769_v18  ;;  %v897_v18 = vld [vmem:[%s4740_s10 + $0xdb0] sm:$0xff] }
  0x68   : > { %772 = vst [vmem:[%s4745_s11 + $0x298] sm:$0xff] %v771_v19  ;;  %v899_v19 = vld [vmem:[%s4740_s10 + $0xdc8] sm:$0xff] }
  0x69   : > { %774 = vst [vmem:[%s4745_s11 + $0x2a0] sm:$0xff] %v773_v20  ;;  %v901_v20 = vld [vmem:[%s4740_s10 + $0xde0] sm:$0xff] }
  0x6a   : > { %776 = vst [vmem:[%s4745_s11 + $0x2a8] sm:$0xff] %v775_v21  ;;  %v903_v21 = vld [vmem:[%s4740_s10 + $0xdf8] sm:$0xff] }
  0x6b   : > { %778 = vst [vmem:[%s4745_s11 + $0x2b0] sm:$0xff] %v777_v22  ;;  %v905_v22 = vld [vmem:[%s4740_s10 + $0xe10] sm:$0xff] }
  0x6c   : > { %780 = vst [vmem:[%s4745_s11 + $0x2b8] sm:$0xff] %v779_v23  ;;  %v907_v23 = vld [vmem:[%s4740_s10 + $0xe28] sm:$0xff] }
  0x6d   : > { %782 = vst [vmem:[%s4745_s11 + $0x2c0] sm:$0xff] %v781_v24  ;;  %v909_v24 = vld [vmem:[%s4740_s10 + $0xe40] sm:$0xff] }
  0x6e   : > { %784 = vst [vmem:[%s4745_s11 + $0x2c8] sm:$0xff] %v783_v25  ;;  %v911_v25 = vld [vmem:[%s4740_s10 + $0xe58] sm:$0xff] }
  0x6f   : > { %786 = vst [vmem:[%s4745_s11 + $0x2d0] sm:$0xff] %v785_v26  ;;  %v913_v26 = vld [vmem:[%s4740_s10 + $0xe70] sm:$0xff] }
  0x70   : > { %788 = vst [vmem:[%s4745_s11 + $0x2d8] sm:$0xff] %v787_v27  ;;  %v915_v27 = vld [vmem:[%s4740_s10 + $0xe88] sm:$0xff] }
  0x71   : > { %790 = vst [vmem:[%s4745_s11 + $0x2e0] sm:$0xff] %v789_v28  ;;  %v917_v28 = vld [vmem:[%s4740_s10 + $0xea0] sm:$0xff] }
  0x72   : > { %792 = vst [vmem:[%s4745_s11 + $0x2e8] sm:$0xff] %v791_v29  ;;  %v919_v29 = vld [vmem:[%s4740_s10 + $0xeb8] sm:$0xff] }
  0x73   : > { %794 = vst [vmem:[%s4745_s11 + $0x2f0] sm:$0xff] %v793_v30  ;;  %v921_v30 = vld [vmem:[%s4740_s10 + $0xed0] sm:$0xff] }
  0x74   : > { %796 = vst [vmem:[%s4745_s11 + $0x2f8] sm:$0xff] %v795_v31  ;;  %v923_v31 = vld [vmem:[%s4740_s10 + $0xee8] sm:$0xff] }
  0x75   : > { %798 = vst [vmem:[%s4745_s11 + $0x300] sm:$0xff] %v797_v32  ;;  %v925_v32 = vld [vmem:[%s4740_s10 + $0xf00] sm:$0xff] }
  0x76   : > { %800 = vst [vmem:[%s4745_s11 + $0x308] sm:$0xff] %v799_v33  ;;  %v927_v33 = vld [vmem:[%s4740_s10 + $0xf18] sm:$0xff] }
  0x77   : > { %802 = vst [vmem:[%s4745_s11 + $0x310] sm:$0xff] %v801_v34  ;;  %v929_v34 = vld [vmem:[%s4740_s10 + $0xf30] sm:$0xff] }
  0x78   : > { %804 = vst [vmem:[%s4745_s11 + $0x318] sm:$0xff] %v803_v35  ;;  %v931_v35 = vld [vmem:[%s4740_s10 + $0xf48] sm:$0xff] }
  0x79   : > { %806 = vst [vmem:[%s4745_s11 + $0x320] sm:$0xff] %v805_v36  ;;  %v933_v36 = vld [vmem:[%s4740_s10 + $0xf60] sm:$0xff] }
  0x7a   : > { %808 = vst [vmem:[%s4745_s11 + $0x328] sm:$0xff] %v807_v37  ;;  %v935_v37 = vld [vmem:[%s4740_s10 + $0xf78] sm:$0xff] }
  0x7b   : > { %810 = vst [vmem:[%s4745_s11 + $0x330] sm:$0xff] %v809_v38  ;;  %v937_v38 = vld [vmem:[%s4740_s10 + $0xf90] sm:$0xff] }
  0x7c   : > { %812 = vst [vmem:[%s4745_s11 + $0x338] sm:$0xff] %v811_v39  ;;  %v939_v39 = vld [vmem:[%s4740_s10 + $0xfa8] sm:$0xff] }
  0x7d   : > { %814 = vst [vmem:[%s4745_s11 + $0x340] sm:$0xff] %v813_v40  ;;  %v941_v40 = vld [vmem:[%s4740_s10 + $0xfc0] sm:$0xff] }
  0x7e   : > { %816 = vst [vmem:[%s4745_s11 + $0x348] sm:$0xff] %v815_v41  ;;  %v943_v41 = vld [vmem:[%s4740_s10 + $0xfd8] sm:$0xff] }
  0x7f   : > { %818 = vst [vmem:[%s4745_s11 + $0x350] sm:$0xff] %v817_v42  ;;  %v945_v42 = vld [vmem:[%s4740_s10 + $0xff0] sm:$0xff] }
  0x80   : > { %820 = vst [vmem:[%s4745_s11 + $0x358] sm:$0xff] %v819_v43  ;;  %v947_v43 = vld [vmem:[%s4740_s10 + $0x1008] sm:$0xff] }
  0x81   : > { %822 = vst [vmem:[%s4745_s11 + $0x360] sm:$0xff] %v821_v44  ;;  %v949_v44 = vld [vmem:[%s4740_s10 + $0x1020] sm:$0xff] }
  0x82   : > { %824 = vst [vmem:[%s4745_s11 + $0x368] sm:$0xff] %v823_v45  ;;  %v951_v45 = vld [vmem:[%s4740_s10 + $0x1038] sm:$0xff] }
  0x83   : > { %826 = vst [vmem:[%s4745_s11 + $0x370] sm:$0xff] %v825_v46  ;;  %v953_v46 = vld [vmem:[%s4740_s10 + $0x1050] sm:$0xff] }
  0x84   : > { %828 = vst [vmem:[%s4745_s11 + $0x378] sm:$0xff] %v827_v47  ;;  %v955_v47 = vld [vmem:[%s4740_s10 + $0x1068] sm:$0xff] }
  0x85   : > { %830 = vst [vmem:[%s4745_s11 + $0x380] sm:$0xff] %v829_v48  ;;  %v957_v48 = vld [vmem:[%s4740_s10 + $0x1080] sm:$0xff] }
  0x86   : > { %832 = vst [vmem:[%s4745_s11 + $0x388] sm:$0xff] %v831_v49  ;;  %v959_v49 = vld [vmem:[%s4740_s10 + $0x1098] sm:$0xff] }
  0x87   : > { %834 = vst [vmem:[%s4745_s11 + $0x390] sm:$0xff] %v833_v50  ;;  %v961_v50 = vld [vmem:[%s4740_s10 + $0x10b0] sm:$0xff] }
  0x88   : > { %836 = vst [vmem:[%s4745_s11 + $0x398] sm:$0xff] %v835_v51  ;;  %v963_v51 = vld [vmem:[%s4740_s10 + $0x10c8] sm:$0xff] }
  0x89   : > { %838 = vst [vmem:[%s4745_s11 + $0x3a0] sm:$0xff] %v837_v52  ;;  %v965_v52 = vld [vmem:[%s4740_s10 + $0x10e0] sm:$0xff] }
  0x8a   : > { %840 = vst [vmem:[%s4745_s11 + $0x3a8] sm:$0xff] %v839_v53  ;;  %v967_v53 = vld [vmem:[%s4740_s10 + $0x10f8] sm:$0xff] }
  0x8b   : > { %842 = vst [vmem:[%s4745_s11 + $0x3b0] sm:$0xff] %v841_v54  ;;  %v969_v54 = vld [vmem:[%s4740_s10 + $0x1110] sm:$0xff] }
  0x8c   : > { %844 = vst [vmem:[%s4745_s11 + $0x3b8] sm:$0xff] %v843_v55  ;;  %v971_v55 = vld [vmem:[%s4740_s10 + $0x1128] sm:$0xff] }
  0x8d   : > { %846 = vst [vmem:[%s4745_s11 + $0x3c0] sm:$0xff] %v845_v56  ;;  %v973_v56 = vld [vmem:[%s4740_s10 + $0x1140] sm:$0xff] }
  0x8e   : > { %848 = vst [vmem:[%s4745_s11 + $0x3c8] sm:$0xff] %v847_v57  ;;  %v975_v57 = vld [vmem:[%s4740_s10 + $0x1158] sm:$0xff] }
  0x8f   : > { %850 = vst [vmem:[%s4745_s11 + $0x3d0] sm:$0xff] %v849_v58  ;;  %v977_v58 = vld [vmem:[%s4740_s10 + $0x1170] sm:$0xff] }
  0x90   : > { %852 = vst [vmem:[%s4745_s11 + $0x3d8] sm:$0xff] %v851_v59  ;;  %v979_v59 = vld [vmem:[%s4740_s10 + $0x1188] sm:$0xff] }
  0x91   : > { %854 = vst [vmem:[%s4745_s11 + $0x3e0] sm:$0xff] %v853_v60  ;;  %v981_v60 = vld [vmem:[%s4740_s10 + $0x11a0] sm:$0xff] }
  0x92   : > { %856 = vst [vmem:[%s4745_s11 + $0x3e8] sm:$0xff] %v855_v61  ;;  %v983_v61 = vld [vmem:[%s4740_s10 + $0x11b8] sm:$0xff] }
  0x93   : > { %858 = vst [vmem:[%s4745_s11 + $0x3f0] sm:$0xff] %v857_v62  ;;  %v985_v62 = vld [vmem:[%s4740_s10 + $0x11d0] sm:$0xff] }
  0x94   : > { %860 = vst [vmem:[%s4745_s11 + $0x3f8] sm:$0xff] %v859_v63  ;;  %v987_v63 = vld [vmem:[%s4740_s10 + $0x11e8] sm:$0xff] }
  0x95   : > { %862 = vst [vmem:[%s4745_s11 + $0x400] sm:$0xff] %v861_v0 }
  0x96   : > { %864 = vst [vmem:[%s4745_s11 + $0x408] sm:$0xff] %v863_v1 }
  0x97   : > { %866 = vst [vmem:[%s4745_s11 + $0x410] sm:$0xff] %v865_v2 }
  0x98   : > { %868 = vst [vmem:[%s4745_s11 + $0x418] sm:$0xff] %v867_v3 }
  0x99   : > { %870 = vst [vmem:[%s4745_s11 + $0x420] sm:$0xff] %v869_v4 }
  0x9a   : > { %872 = vst [vmem:[%s4745_s11 + $0x428] sm:$0xff] %v871_v5 }
  0x9b   : > { %874 = vst [vmem:[%s4745_s11 + $0x430] sm:$0xff] %v873_v6 }
  0x9c   : > { %876 = vst [vmem:[%s4745_s11 + $0x438] sm:$0xff] %v875_v7 }
  0x9d   : > { %878 = vst [vmem:[%s4745_s11 + $0x440] sm:$0xff] %v877_v8 }
  0x9e   : > { %880 = vst [vmem:[%s4745_s11 + $0x448] sm:$0xff] %v879_v9 }
  0x9f   : > { %882 = vst [vmem:[%s4745_s11 + $0x450] sm:$0xff] %v881_v10 }
  0xa0   : > { %884 = vst [vmem:[%s4745_s11 + $0x458] sm:$0xff] %v883_v11 }
  0xa1   : > { %886 = vst [vmem:[%s4745_s11 + $0x460] sm:$0xff] %v885_v12 }
  0xa2   : > { %888 = vst [vmem:[%s4745_s11 + $0x468] sm:$0xff] %v887_v13 }
  0xa3   : > { %890 = vst [vmem:[%s4745_s11 + $0x470] sm:$0xff] %v889_v14 }
  0xa4   : > { %892 = vst [vmem:[%s4745_s11 + $0x478] sm:$0xff] %v891_v15 }
  0xa5   : > { %894 = vst [vmem:[%s4745_s11 + $0x480] sm:$0xff] %v893_v16 }
  0xa6   : > { %896 = vst [vmem:[%s4745_s11 + $0x488] sm:$0xff] %v895_v17 }
  0xa7   : > { %898 = vst [vmem:[%s4745_s11 + $0x490] sm:$0xff] %v897_v18 }
  0xa8   : > { %900 = vst [vmem:[%s4745_s11 + $0x498] sm:$0xff] %v899_v19 }
  0xa9   : > { %902 = vst [vmem:[%s4745_s11 + $0x4a0] sm:$0xff] %v901_v20 }
  0xaa   : > { %904 = vst [vmem:[%s4745_s11 + $0x4a8] sm:$0xff] %v903_v21 }
  0xab   : > { %906 = vst [vmem:[%s4745_s11 + $0x4b0] sm:$0xff] %v905_v22 }
  0xac   : > { %908 = vst [vmem:[%s4745_s11 + $0x4b8] sm:$0xff] %v907_v23 }
  0xad   : > { %910 = vst [vmem:[%s4745_s11 + $0x4c0] sm:$0xff] %v909_v24 }
  0xae   : > { %912 = vst [vmem:[%s4745_s11 + $0x4c8] sm:$0xff] %v911_v25 }
  0xaf   : > { %914 = vst [vmem:[%s4745_s11 + $0x4d0] sm:$0xff] %v913_v26 }
  0xb0   : > { %916 = vst [vmem:[%s4745_s11 + $0x4d8] sm:$0xff] %v915_v27 }
  0xb1   : > { %918 = vst [vmem:[%s4745_s11 + $0x4e0] sm:$0xff] %v917_v28 }
  0xb2   : > { %920 = vst [vmem:[%s4745_s11 + $0x4e8] sm:$0xff] %v919_v29 }
  0xb3   : > { %922 = vst [vmem:[%s4745_s11 + $0x4f0] sm:$0xff] %v921_v30 }
  0xb4   : > { %924 = vst [vmem:[%s4745_s11 + $0x4f8] sm:$0xff] %v923_v31 }
  0xb5   : > { %926 = vst [vmem:[%s4745_s11 + $0x500] sm:$0xff] %v925_v32 }
  0xb6   : > { %928 = vst [vmem:[%s4745_s11 + $0x508] sm:$0xff] %v927_v33 }
  0xb7   : > { %930 = vst [vmem:[%s4745_s11 + $0x510] sm:$0xff] %v929_v34 }
  0xb8   : > { %932 = vst [vmem:[%s4745_s11 + $0x518] sm:$0xff] %v931_v35 }
  0xb9   : > { %934 = vst [vmem:[%s4745_s11 + $0x520] sm:$0xff] %v933_v36 }
  0xba   : > { %936 = vst [vmem:[%s4745_s11 + $0x528] sm:$0xff] %v935_v37 }
  0xbb   : > { %938 = vst [vmem:[%s4745_s11 + $0x530] sm:$0xff] %v937_v38 }
  0xbc   : > { %940 = vst [vmem:[%s4745_s11 + $0x538] sm:$0xff] %v939_v39 }
  0xbd   : > { %942 = vst [vmem:[%s4745_s11 + $0x540] sm:$0xff] %v941_v40 }
  0xbe   : > { %944 = vst [vmem:[%s4745_s11 + $0x548] sm:$0xff] %v943_v41 }
  0xbf   : > { %946 = vst [vmem:[%s4745_s11 + $0x550] sm:$0xff] %v945_v42 }
  0xc0   : > { %948 = vst [vmem:[%s4745_s11 + $0x558] sm:$0xff] %v947_v43 }
  0xc1   : > { %950 = vst [vmem:[%s4745_s11 + $0x560] sm:$0xff] %v949_v44 }
  0xc2   : > { %952 = vst [vmem:[%s4745_s11 + $0x568] sm:$0xff] %v951_v45 }
  0xc3   : > { %954 = vst [vmem:[%s4745_s11 + $0x570] sm:$0xff] %v953_v46 }
  0xc4   : > { %956 = vst [vmem:[%s4745_s11 + $0x578] sm:$0xff] %v955_v47 }
  0xc5   : > { %958 = vst [vmem:[%s4745_s11 + $0x580] sm:$0xff] %v957_v48 }
  0xc6   : > { %960 = vst [vmem:[%s4745_s11 + $0x588] sm:$0xff] %v959_v49 }
  0xc7   : > { %962 = vst [vmem:[%s4745_s11 + $0x590] sm:$0xff] %v961_v50 }
  0xc8   : > { %964 = vst [vmem:[%s4745_s11 + $0x598] sm:$0xff] %v963_v51 }
  0xc9   : > { %966 = vst [vmem:[%s4745_s11 + $0x5a0] sm:$0xff] %v965_v52 }
  0xca   : > { %968 = vst [vmem:[%s4745_s11 + $0x5a8] sm:$0xff] %v967_v53 }
  0xcb   : > { %970 = vst [vmem:[%s4745_s11 + $0x5b0] sm:$0xff] %v969_v54 }
  0xcc   : > { %972 = vst [vmem:[%s4745_s11 + $0x5b8] sm:$0xff] %v971_v55 }
  0xcd   : > { %974 = vst [vmem:[%s4745_s11 + $0x5c0] sm:$0xff] %v973_v56 }
  0xce   : > { %976 = vst [vmem:[%s4745_s11 + $0x5c8] sm:$0xff] %v975_v57 }
  0xcf   : > { %978 = vst [vmem:[%s4745_s11 + $0x5d0] sm:$0xff] %v977_v58 }
  0xd0   : > { %980 = vst [vmem:[%s4745_s11 + $0x5d8] sm:$0xff] %v979_v59 }
  0xd1   : > { %982 = vst [vmem:[%s4745_s11 + $0x5e0] sm:$0xff] %v981_v60 }
  0xd2   : > { %984 = vst [vmem:[%s4745_s11 + $0x5e8] sm:$0xff] %v983_v61 }
  0xd3   : > { %986 = vst [vmem:[%s4745_s11 + $0x5f0] sm:$0xff] %v985_v62 }
  0xd4   : > { %988 = vst [vmem:[%s4745_s11 + $0x5f8] sm:$0xff] %v987_v63 }
  0xd5 PF: > { %p3381_p10 = scmp.ge.s32.totalorder %s4652_s21, 1  ;;  %p1010_p11 = scmp.lt.s32.totalorder %s4652_s21, 4 }
  0xd7   : > { %p1011_p12 = pnand %p3381_p10, %p1010_p11 }
  0xd8   : > { %s5131_s12 = sand.u32 (!%p1011_p12), 1, %s4644_s19   ;;  %s3383_s13 = sshll.u32 (!%p1011_p12), %s4708_s22, 1 }
  0xd9   : > { %1014 = sbr.rel (%p1011_p12) target bundleno = 1062 (0x426), region = 74  ;;  %s3382_s15 = sshll.u32 (!%p1011_p12), %s5131_s12, 2 }
  0xda   : > { %s4541_s14 = smul.u32 (!%p1011_p12), 1536, %s5131_s12  ;;  %p1055_p13 = scmp.lt.s32.totalorder (!%p1011_p12), %s3383_s13, 5 }
  0xdb   : > { %s5150_s8 = scalar_lea.vmem (!%p1011_p12), [#allocation4], %s3382_s15  ;;  %p3386_p0 = scmp.ne.s32.totalorder (!%p1011_p12), %s4708_s22, 0 }
  0xdc   : > { %s5148_s7 = scalar_lea.vmem (!%p1011_p12), [#allocation3], %s4541_s14 }
  0xde   : > { %s6015_s13 = smov (!%p1055_p13, %s3383_s13), 5  ;;  %1070 = sbr.rel (%p3386_p0) target bundleno = 719 (0x2cf), region = 82 }
  0xdf   : > { %s3385_s25 = sshll.u32 %s6015_s13, 1 }
  0xe0   : > { %s5146_s6 = scalar_lea.vmem %s6005_s4, %s3385_s25 }
  0xe3   : > { %v3453_v0 = vld [vmem:[%s6001_s0 + $0x80] sm:$0xf]  ;;  %v4331_v2 = vld [vmem:[%s6001_s0 + $0x84] sm:$0xf]  ;;  %v3461_v5 = vld [vmem:[%s6001_s0 + $0x88] sm:$0xf] }
  0xe4   : > { %v4339_v1 = vld [vmem:[%s6001_s0 + $0xbc] sm:$0xf0]  ;;  %v3455_v4 = vld [vmem:[%s6001_s0 + $0xc0] sm:$0xf0]  ;;  %v4340_v6 = vld [vmem:[%s6001_s0 + $0xc4] sm:$0xf0] }
  0xe5   : > { %v3454_v3 = vor.u32 %v4339_v1, %v3453_v0  ;;  %v3458_v7 = vor.u32 %v4331_v2, %v3455_v4  ;;  %v3462_v8 = vor.u32 %v4340_v6, %v3461_v5  ;;  %v4332_v9 = vld [vmem:[%s6001_s0 + $0x8c] sm:$0xf]  ;;  %v3389_v11 = vld [vmem:[%s6001_s0] sm:$0xf]  ;;  %v4315_v14 = vld [vmem:[%s6001_s0 + $0x4] sm:$0xf] }
  0xe6   : > { %v3463_v10 = vld [vmem:[%s6001_s0 + $0xc8] sm:$0xf0]  ;;  %v4323_v13 = vld [vmem:[%s6001_s0 + $0x3c] sm:$0xf0]  ;;  %v3391_v15 = vld [vmem:[%s6001_s0 + $0x40] sm:$0xf0] }
  0xe7   : > { %1280 = vmatpush.bf16.msra.mxu0 %v3454_v3  ;;  %v3466_v12 = vor.u32 %v4332_v9, %v3463_v10  ;;  %1293 = vmatpush.bf16.msra.mxu1 %v3458_v7  ;;  %v3390_v16 = vor.u32 %v4323_v13, %v3389_v11  ;;  %v3394_v17 = vor.u32 %v4315_v14, %v3391_v15  ;;  %v3397_v18 = vld [vmem:[%s6001_s0 + $0x8] sm:$0xf]  ;;  %v4316_v20 = vld [vmem:[%s6001_s0 + $0xc] sm:$0xf]  ;;  %v5204_v23 = vld [vmem:[%s6002_s1] sm:$0xff]  ;;  %vm1270_vm0 = vcmask 261120  }
  0xe8   : > { %1306 = vmatpush.bf16.msra.mxu2 %v3462_v8  ;;  %v4324_v19 = vld [vmem:[%s6001_s0 + $0x44] sm:$0xf0]  ;;  %v3399_v22 = vld [vmem:[%s6001_s0 + $0x48] sm:$0xf0]  ;;  %v3477_v24 = vld [vmem:[%s6001_s0 + $0x98] sm:$0xf]  ;;  %v5211_v26 = vpack.c.bf16 %v5204_v23, %v5204_v23 }
  0xe9   : > { %1319 = vmatpush.bf16.msra.mxu3 %v3466_v12  ;;  %v3398_v21 = vor.u32 %v4324_v19, %v3397_v18  ;;  %v3402_v25 = vor.u32 %v4316_v20, %v3399_v22  ;;  %v4342_v27 = vld [vmem:[%s6001_s0 + $0xd4] sm:$0xf0]  ;;  %v3469_v28 = vld [vmem:[%s6001_s0 + $0x90] sm:$0xf]  ;;  %v4334_v31 = vld [vmem:[%s6001_s0 + $0x9c] sm:$0xf] }
  0xea   : > { %v4341_v29 = vld [vmem:[%s6001_s0 + $0xcc] sm:$0xf0]  ;;  %v3478_v30 = vor.u32 %v4342_v27, %v3477_v24  ;;  %v3479_v32 = vld [vmem:[%s6001_s0 + $0xd8] sm:$0xf0]  ;;  %v4333_v33 = vld [vmem:[%s6001_s0 + $0x94] sm:$0xf] }
  0xeb   : > { %1281 = vmatpush.bf16.msra.mxu0 %v3390_v16  ;;  %1294 = vmatpush.bf16.msra.mxu1 %v3394_v17  ;;  %v3470_v34 = vor.u32 %v4341_v29, %v3469_v28  ;;  %v3482_v35 = vor.u32 %v4334_v31, %v3479_v32  ;;  %v3471_v36 = vld [vmem:[%s6001_s0 + $0xd0] sm:$0xf0]  ;;  %v3413_v37 = vld [vmem:[%s6001_s0 + $0x18] sm:$0xf]  ;;  %v3405_v41 = vld [vmem:[%s6001_s0 + $0x10] sm:$0xf] }
  0xec   : > { %1307 = vmatpush.bf16.msra.mxu2 %v3398_v21  ;;  %v4326_v38 = vld [vmem:[%s6001_s0 + $0x54] sm:$0xf0]  ;;  %v3474_v39 = vor.u32 %v4333_v33, %v3471_v36  ;;  %v4325_v42 = vld [vmem:[%s6001_s0 + $0x4c] sm:$0xf0]  ;;  %v4318_v43 = vld [vmem:[%s6001_s0 + $0x1c] sm:$0xf] }
  0xed   : > { %1320 = vmatpush.bf16.msra.mxu3 %v3402_v25  ;;  %v3414_v40 = vor.u32 %v4326_v38, %v3413_v37  ;;  %v3415_v44 = vld [vmem:[%s6001_s0 + $0x58] sm:$0xf0]  ;;  %v4317_v45 = vld [vmem:[%s6001_s0 + $0x14] sm:$0xf]  ;;  %v3493_v48 = vld [vmem:[%s6001_s0 + $0xa8] sm:$0xf]  ;;  %v3406_v50 = vor.u32 %v4325_v42, %v3405_v41 }
  0xee   : > { %3515 = vmatmul.msk.bf16.vlgmr.msra.gmra.mxu0 %vm1270_vm0, %v5211_v26  ;;  %3516 = vmatmul.msk.bf16.vlgmr.msra.gmra.mxu1 %vm1270_vm0, %v5211_v26  ;;  %v3418_v46 = vor.u32 %v4318_v43, %v3415_v44  ;;  %v3407_v47 = vld [vmem:[%s6001_s0 + $0x50] sm:$0xf0]  ;;  %v4344_v49 = vld [vmem:[%s6001_s0 + $0xe4] sm:$0xf0]  ;;  %v3485_v52 = vld [vmem:[%s6001_s0 + $0xa0] sm:$0xf] }
  0xef   : > { %3517 = vmatmul.msk.bf16.vlgmr.msra.gmra.mxu2 %vm1270_vm0, %v5211_v26  ;;  %1332 = vmatpush.bf16.msrb.mxu0 %v3470_v34  ;;  %v3494_v51 = vor.u32 %v4344_v49, %v3493_v48  ;;  %v4343_v53 = vld [vmem:[%s6001_s0 + $0xdc] sm:$0xf0]  ;;  %v4336_v54 = vld [vmem:[%s6001_s0 + $0xac] sm:$0xf]  ;;  %v3410_v55 = vor.u32 %v4317_v45, %v3407_v47  ;;  %v4335_v58 = vld [vmem:[%s6001_s0 + $0xa4] sm:$0xf] }
  0xf0   : > { %1358 = vmatpush.bf16.msrb.mxu2 %v3478_v30  ;;  %3518 = vmatmul.msk.bf16.vlgmr.msra.gmra.mxu3 %vm1270_vm0, %v5211_v26  ;;  %v3486_v56 = vor.u32 %v4343_v53, %v3485_v52  ;;  %v3495_v57 = vld [vmem:[%s6001_s0 + $0xe8] sm:$0xf0]  ;;  %v3487_v59 = vld [vmem:[%s6001_s0 + $0xe0] sm:$0xf0]  ;;  %v4654_v60 = vmov 32   ;;  %vm1692_vm4 = vcmask 1040384  }
  0xf1   : > { %1371 = vmatpush.bf16.msrb.mxu3 %v3482_v35  ;;  %1345 = vmatpush.bf16.msrb.mxu1 %v3474_v39  ;;  %v3498_v61 = vor.u32 %v4336_v54, %v3495_v57  ;;  %v3490_v62 = vor.u32 %v4335_v58, %v3487_v59  ;;  %v3429_v63 = vld [vmem:[%s6001_s0 + $0x28] sm:$0xf]  ;;  %v3421_v1 = vld [vmem:[%s6001_s0 + $0x20] sm:$0xf]  ;;  %v4320_v4 = vld [vmem:[%s6001_s0 + $0x2c] sm:$0xf] }
  0xf2   : > { %4584 = vset.pattern.permute.xlu0 %v4654_v60  ;;  %v4328_v0 = vld [vmem:[%s6001_s0 + $0x64] sm:$0xf0]  ;;  %v4327_v3 = vld [vmem:[%s6001_s0 + $0x5c] sm:$0xf0]  ;;  %v3431_v5 = vld [vmem:[%s6001_s0 + $0x68] sm:$0xf0] }
  0xf3   : > { %1107 = vperm.xlu0 %4584, %v5204_v23   ;;  %v3430_v2 = vor.u32 %v4328_v0, %v3429_v63  ;;  %1333 = vmatpush.bf16.msrb.mxu0 %v3406_v50  ;;  %v3434_v6 = vor.u32 %v4320_v4, %v3431_v5  ;;  %v4319_v7 = vld [vmem:[%s6001_s0 + $0x24] sm:$0xf]  ;;  %v3422_v9 = vor.u32 %v4327_v3, %v3421_v1  ;;  %v3509_v11 = vld [vmem:[%s6001_s0 + $0xb8] sm:$0xf]  ;;  %v3501_v13 = vld [vmem:[%s6001_s0 + $0xb0] sm:$0xf] }
  0xf4   : > { %1359 = vmatpush.bf16.msrb.mxu2 %v3414_v40  ;;  %v3423_v8 = vld [vmem:[%s6001_s0 + $0x60] sm:$0xf0]  ;;  %v4346_v12 = vld [vmem:[%s6001_s0 + $0xf4] sm:$0xf0]  ;;  %v4345_v14 = vld [vmem:[%s6001_s0 + $0xec] sm:$0xf0] }
  0xf5   : > { %1372 = vmatpush.bf16.msrb.mxu3 %v3418_v46  ;;  %1346 = vmatpush.bf16.msrb.mxu1 %v3410_v55  ;;  %v3426_v10 = vor.u32 %v4319_v7, %v3423_v8  ;;  %v4338_v15 = vld [vmem:[%s6001_s0 + $0xbc] sm:$0xf]  ;;  %v4337_v17 = vld [vmem:[%s6001_s0 + $0xb4] sm:$0xf]  ;;  %v3510_v19 = vor.u32 %v4346_v12, %v3509_v11  ;;  %v3502_v20 = vor.u32 %v4345_v14, %v3501_v13  ;;  %v3445_v22 = vld [vmem:[%s6001_s0 + $0x38] sm:$0xf] }
  0xf6   : > { %v3511_v16 = vld [vmem:[%s6001_s0 + $0xf8] sm:$0xf0]  ;;  %v3503_v18 = vld [vmem:[%s6001_s0 + $0xf0] sm:$0xf0]  ;;  %v4330_v24 = vld [vmem:[%s6001_s0 + $0x74] sm:$0xf0] }
  0xf7   : > { %1384 = vmatpush.bf16.msra.mxu0 %v3486_v56  ;;  %v3514_v21 = vor.u32 %v4338_v15, %v3511_v16  ;;  %v3437_v25 = vld [vmem:[%s6001_s0 + $0x30] sm:$0xf]  ;;  %v3506_v27 = vor.u32 %v4337_v17, %v3503_v18  ;;  %v4322_v29 = vld [vmem:[%s6001_s0 + $0x3c] sm:$0xf]  ;;  %v4321_v31 = vld [vmem:[%s6001_s0 + $0x34] sm:$0xf]  ;;  %v3446_v33 = vor.u32 %v4330_v24, %v3445_v22 }
  0xf8   : > { %1410 = vmatpush.bf16.msra.mxu2 %v3494_v51  ;;  %v4329_v28 = vld [vmem:[%s6001_s0 + $0x6c] sm:$0xf0]  ;;  %v3447_v30 = vld [vmem:[%s6001_s0 + $0x78] sm:$0xf0]  ;;  %v3439_v32 = vld [vmem:[%s6001_s0 + $0x70] sm:$0xf0] }
  0xf9   : > { %1423 = vmatpush.bf16.msra.mxu3 %v3498_v61  ;;  %1397 = vmatpush.bf16.msra.mxu1 %v3490_v62  ;;  %v3438_v34 = vor.u32 %v4329_v28, %v3437_v25  ;;  %v3450_v35 = vor.u32 %v4322_v29, %v3447_v30  ;;  %v3442_v36 = vor.u32 %v4321_v31, %v3439_v32  ;;  %vm1730_vm5 = vcmask 1042434  }
  0xfa   : > { %vm1734_vm6 = vcmask 1041408   ;;  %vm1736_vm7 = vcmask 1044484   ;;  %vm1740_vm8 = vcmask 1046534   ;;  %vm1744_vm9 = vcmask 1045508  }
  0xfb   : > { %1385 = vmatpush.bf16.msra.mxu0 %v3422_v9  ;;  %vm1746_vm10 = vcmask 1043456  }
  0xfc   : > { %1411 = vmatpush.bf16.msra.mxu2 %v3430_v2 }
  0xfd   : > { %1424 = vmatpush.bf16.msra.mxu3 %v3434_v6  ;;  %1398 = vmatpush.bf16.msra.mxu1 %v3426_v10 }
  0xfe   : > { %3519 = vmatmul.msk.bf16.vlgmr.msrb.gmra.mxu0 %vm1270_vm0, %v5211_v26  ;;  %3520 = vmatmul.msk.bf16.vlgmr.msrb.gmra.mxu1 %vm1270_vm0, %v5211_v26 }
  0xff   : > { %3521 = vmatmul.msk.bf16.vlgmr.msrb.gmra.mxu2 %vm1270_vm0, %v5211_v26  ;;  %1436 = vmatpush.bf16.msrb.mxu0 %v3502_v20 }
 0x100   : > { %3522 = vmatmul.msk.bf16.vlgmr.msrb.gmra.mxu3 %vm1270_vm0, %v5211_v26  ;;  %1462 = vmatpush.bf16.msrb.mxu2 %v3510_v19 }
 0x101   : > { %1475 = vmatpush.bf16.msrb.mxu3 %v3514_v21  ;;  %1449 = vmatpush.bf16.msrb.mxu1 %v3506_v27 }
 0x103   : > { %1437 = vmatpush.bf16.msrb.mxu0 %v3438_v34 }
 0x104   : > { %1463 = vmatpush.bf16.msrb.mxu2 %v3446_v33 }
 0x105   : > { %1476 = vmatpush.bf16.msrb.mxu3 %v3450_v35  ;;  %1450 = vmatpush.bf16.msrb.mxu1 %v3442_v36 }
 0x10e   : > { %3523 = vmatmul.msk.bf16.vlgmr.msra.gmra.mxu0 %vm1270_vm0, %v5211_v26  ;;  %3524 = vmatmul.msk.bf16.vlgmr.msra.gmra.mxu1 %vm1270_vm0, %v5211_v26 }
 0x10f   : > { %3525 = vmatmul.msk.bf16.vlgmr.msra.gmra.mxu2 %vm1270_vm0, %v5211_v26 }
 0x110   : > { %3526 = vmatmul.msk.bf16.vlgmr.msra.gmra.mxu3 %vm1270_vm0, %v5211_v26 }
 0x11e   : > { %3527 = vmatmul.msk.bf16.vlgmr.msrb.gmra.mxu0 %vm1270_vm0, %v5211_v26  ;;  %3528 = vmatmul.msk.bf16.vlgmr.msrb.gmra.mxu1 %vm1270_vm0, %v5211_v26 }
 0x11f   : > { %3529 = vmatmul.msk.bf16.vlgmr.msrb.gmra.mxu2 %vm1270_vm0, %v5211_v26 }
 0x120   : > { %3530 = vmatmul.msk.bf16.vlgmr.msrb.gmra.mxu3 %vm1270_vm0, %v5211_v26 }
 0x165   : > { %v5387_v42 = vpop.permute.xlu0 %1107 }
 0x16b   : > { %v1283_v37 = vpop.f32.mrf.mxu0  ;;  %v1296_v38 = vpop.f32.mrf.mxu1 }
 0x16c   : > { %v1284_v44 = vadd.f32 %v1283_v37, %v5387_v42  ;;  %v1297_v45 = vadd.f32 %v1296_v38, %v5387_v42 }
 0x16e   : > { %v5392_v48 = vmax.f32 %v1284_v44, 0.0  ;;  %v5394_v49 = vmax.f32 %v1297_v45, 0.0 }
 0x170   : > { %v1516_v54 = vmul.f32 %v5392_v48, %v5392_v48  ;;  %v1517_v55 = vmul.f32 %v5394_v49, %v5394_v49  ;;  %v1498_v57 = vadd.f32 %v5394_v49, %v5392_v48 }
 0x172   : > { %v1309_v39 = vpop.f32.mrf.mxu2  ;;  %v1532_v62 = vadd.f32 %v1517_v55, %v1516_v54 }
 0x173   : > { %v1322_v40 = vpop.f32.mrf.mxu3  ;;  %v1285_v41 = vpop.f32.mrf.mxu0  ;;  %v1310_v46 = vadd.f32 %v1309_v39, %v5387_v42 }
 0x174   : > { %v1298_v43 = vpop.f32.mrf.mxu1  ;;  %v1323_v53 = vadd.f32 %v1322_v40, %v5387_v42 }
 0x175   : > { %v5396_v52 = vmax.f32 %v1310_v46, 0.0 }
 0x176   : > { %v5408_v59 = vmax.f32 %v1323_v53, 0.0 }
 0x177   : > { %v1518_v58 = vmul.f32 %v5396_v52, %v5396_v52  ;;  %v1499_v61 = vadd.f32 %v1498_v57, %v5396_v52 }
 0x178   : > { %v1519_v5 = vmul.f32 %v5408_v59, %v5408_v59 }
 0x179   : > { %v1533_v4 = vadd.f32 %v1532_v62, %v1518_v58  ;;  %v1500_v7 = vadd.f32 %v1499_v61, %v5408_v59 }
 0x17a   : > { %v1311_v47 = vpop.f32.mrf.mxu2 }
 0x17b   : > { %v1324_v26 = vpop.f32.mrf.mxu3  ;;  %v1335_v50 = vpop.f32.mrf.mxu0  ;;  %v1534_v10 = vadd.f32 %v1533_v4, %v1519_v5 }
 0x17c   : > { %v1348_v51 = vpop.f32.mrf.mxu1  ;;  %v1336_v56 = vadd.f32 %v1335_v50, %v5387_v42 }
 0x17d   : > { %v1349_v0 = vadd.f32 %v1348_v51, %v5387_v42 }
 0x17e   : > { %v5411_v63 = vmax.f32 %v1336_v56, 0.0 }
 0x17f   : > { %v5420_v9 = vmax.f32 %v1349_v0, 0.0 }
 0x180   : > { %v1520_v8 = vmul.f32 %v5411_v63, %v5411_v63  ;;  %v1501_v11 = vadd.f32 %v1500_v7, %v5411_v63 }
 0x181   : > { %v1521_v16 = vmul.f32 %v5420_v9, %v5420_v9 }
 0x182   : > { %v1361_v60 = vpop.f32.mrf.mxu2  ;;  %v1535_v15 = vadd.f32 %v1534_v10, %v1520_v8  ;;  %v1502_v21 = vadd.f32 %v1501_v11, %v5420_v9 }
 0x183   : > { %v1374_v1 = vpop.f32.mrf.mxu3  ;;  %v1337_v2 = vpop.f32.mrf.mxu0  ;;  %v1362_v6 = vadd.f32 %v1361_v60, %v5387_v42 }
 0x184   : > { %v1350_v3 = vpop.f32.mrf.mxu1  ;;  %v1375_v13 = vadd.f32 %v1374_v1, %v5387_v42  ;;  %v1536_v25 = vadd.f32 %v1535_v15, %v1521_v16 }
 0x185   : > { %v5423_v12 = vmax.f32 %v1362_v6, 0.0 }
 0x186   : > { %v5432_v24 = vmax.f32 %v1375_v13, 0.0 }
 0x187   : > { %v1522_v22 = vmul.f32 %v5423_v12, %v5423_v12  ;;  %v1503_v27 = vadd.f32 %v1502_v21, %v5423_v12 }
 0x188   : > { %v1523_v30 = vmul.f32 %v5432_v24, %v5432_v24 }
 0x189   : > { %v1537_v29 = vadd.f32 %v1536_v25, %v1522_v22  ;;  %v1504_v33 = vadd.f32 %v1503_v27, %v5432_v24 }
 0x18a   : > { %v1363_v14 = vpop.f32.mrf.mxu2 }
 0x18b   : > { %v1376_v17 = vpop.f32.mrf.mxu3  ;;  %v1387_v18 = vpop.f32.mrf.mxu0  ;;  %v1538_v39 = vadd.f32 %v1537_v29, %v1523_v30 }
 0x18c   : > { %v1388_v19 = vadd.f32 %v1387_v18, %v5387_v42  ;;  %v1400_v20 = vpop.f32.mrf.mxu1 }
 0x18d   : > { %v1401_v31 = vadd.f32 %v1400_v20, %v5387_v42 }
 0x18e   : > { %v5435_v28 = vmax.f32 %v1388_v19, 0.0 }
 0x18f   : > { %v5445_v41 = vmax.f32 %v1401_v31, 0.0  ;;  %v4655_v31 = vmov 33  }
 0x190   : > { %v1524_v34 = vmul.f32 %v5435_v28, %v5435_v28  ;;  %v1505_v40 = vadd.f32 %v1504_v33, %v5435_v28  ;;  %4585 = vset.pattern.permute.xlu1 %v4655_v31  ;;  %v4656_v33 = vmov 34  }
 0x191   : > { %v1525_v47 = vmul.f32 %v5445_v41, %v5445_v41  ;;  %4586 = vset.pattern.permute.xlu2 %v4656_v33  ;;  %4587 = vset.pattern.permute.xlu0 %v4656_v33 }
 0x192   : > { %v1413_v32 = vpop.f32.mrf.mxu2  ;;  %v1539_v44 = vadd.f32 %v1538_v39, %v1524_v34  ;;  %v1506_v46 = vadd.f32 %v1505_v40, %v5445_v41  ;;  %1603 = vperm.xlu2 %4586, %v5204_v23  }
 0x193   : > { %v1414_v35 = vadd.f32 %v1413_v32, %v5387_v42  ;;  %v1426_v36 = vpop.f32.mrf.mxu3  ;;  %v1389_v37 = vpop.f32.mrf.mxu0 }
 0x194   : > { %v1402_v38 = vpop.f32.mrf.mxu1  ;;  %v1427_v45 = vadd.f32 %v1426_v36, %v5387_v42  ;;  %v1540_v51 = vadd.f32 %v1539_v44, %v1525_v47 }
 0x195   : > { %v5447_v43 = vmax.f32 %v1414_v35, 0.0 }
 0x196   : > { %v5456_v54 = vmax.f32 %v1427_v45, 0.0 }
 0x197   : > { %v1526_v26 = vmul.f32 %v5447_v43, %v5447_v43  ;;  %v1507_v53 = vadd.f32 %v1506_v46, %v5447_v43 }
 0x198   : > { %v1527_v1 = vmul.f32 %v5456_v54, %v5456_v54 }
 0x199   : > { %v1541_v60 = vadd.f32 %v1540_v51, %v1526_v26  ;;  %v1508_v0 = vadd.f32 %v1507_v53, %v5456_v54 }
 0x19a   : > { %v1415_v50 = vpop.f32.mrf.mxu2 }
 0x19b   : > { %v1428_v55 = vpop.f32.mrf.mxu3  ;;  %v1439_v56 = vpop.f32.mrf.mxu0  ;;  %v1542_v3 = vadd.f32 %v1541_v60, %v1527_v1 }
 0x19c   : > { %v1440_v57 = vadd.f32 %v1439_v56, %v5387_v42  ;;  %v1452_v58 = vpop.f32.mrf.mxu1 }
 0x19d   : > { %v1453_v61 = vadd.f32 %v1452_v58, %v5387_v42 }
 0x19e   : > { %v5460_v62 = vmax.f32 %v1440_v57, 0.0 }
 0x19f   : > { %v5468_v5 = vmax.f32 %v1453_v61, 0.0 }
 0x1a0   : > { %v1528_v2 = vmul.f32 %v5460_v62, %v5460_v62  ;;  %v1509_v4 = vadd.f32 %v1508_v0, %v5460_v62 }
 0x1a1   : > { %v1529_v15 = vmul.f32 %v5468_v5, %v5468_v5 }
 0x1a2   : > { %v1465_v6 = vpop.f32.mrf.mxu2  ;;  %v1543_v11 = vadd.f32 %v1542_v3, %v1528_v2  ;;  %v1510_v17 = vadd.f32 %v1509_v4, %v5468_v5 }
 0x1a3   : > { %v1466_v7 = vadd.f32 %v1465_v6, %v5387_v42  ;;  %v1478_v8 = vpop.f32.mrf.mxu3  ;;  %v1441_v10 = vpop.f32.mrf.mxu0 }
 0x1a4   : > { %v1479_v13 = vadd.f32 %v1478_v8, %v5387_v42  ;;  %v1454_v14 = vpop.f32.mrf.mxu1  ;;  %v1544_v21 = vadd.f32 %v1543_v11, %v1529_v15 }
 0x1a5   : > { %v5474_v16 = vmax.f32 %v1466_v7, 0.0 }
 0x1a6   : > { %v5477_v18 = vmax.f32 %v1479_v13, 0.0 }
 0x1a7   : > { %v1511_v19 = vadd.f32 %v1510_v17, %v5474_v16  ;;  %v1530_v20 = vmul.f32 %v5474_v16, %v5474_v16 }
 0x1a8   : > { %v1531_v42 = vmul.f32 %v5477_v18, %v5477_v18 }
 0x1a9   : > { %v1512_v22 = vadd.f32 %v1511_v19, %v5477_v18  ;;  %v1545_v25 = vadd.f32 %v1544_v21, %v1530_v20 }
 0x1aa   : > { %v1467_v27 = vpop.f32.mrf.mxu2 }
 0x1ab   : > { %v1480_v29 = vpop.f32.mrf.mxu3  ;;  %1513 = vadd.xlane.f32.xlu0 %v1512_v22  ;;  %v1546_v30 = vadd.f32 %v1545_v25, %v1531_v42 }
 0x1ad   : > { %1547 = vadd.xlane.f32.xlu1 %v1546_v30 }
 0x21e   : > { %v1514_v32 = vpop.xlane.xlu0 %1513 }
 0x21f   : > { %v1515_v34 = vmul.f32 0.00048828125, %v1514_v32 }
 0x220   : > { %v1548_v35 = vpop.xlane.xlu1 %1547 }
 0x221   : > { %v1549_v36 = vmul.f32 0.00048828125, %v1548_v35  ;;  %v1550_v37 = vmul.f32 %v1515_v34, %v1515_v34  ;;  %v1565_v55 = vsub.f32 %v5392_v48, %v1515_v34  ;;  %v1566_v56 = vsub.f32 %v5394_v49, %v1515_v34 }
 0x222   : > { %v1567_v57 = vsub.f32 %v5396_v52, %v1515_v34  ;;  %v1568_v58 = vsub.f32 %v5408_v59, %v1515_v34  ;;  %v1569_v60 = vsub.f32 %v5411_v63, %v1515_v34  ;;  %v1570_v61 = vsub.f32 %v5420_v9, %v1515_v34 }
 0x223   : > { %v1551_v38 = vsub.f32 %v1549_v36, %v1550_v37  ;;  %v1571_v0 = vsub.f32 %v5423_v12, %v1515_v34  ;;  %v1572_v1 = vsub.f32 %v5432_v24, %v1515_v34  ;;  %v1573_v2 = vsub.f32 %v5435_v28, %v1515_v34 }
 0x224   : > { %v1575_v48 = vsub.f32 %v5447_v43, %v1515_v34  ;;  %v1576_v49 = vsub.f32 %v5456_v54, %v1515_v34  ;;  %v1577_v52 = vsub.f32 %v5460_v62, %v1515_v34  ;;  %v1578_v59 = vsub.f32 %v5468_v5, %v1515_v34  ;;  %v1604_v43 = vpop.permute.xlu2 %1603 }
 0x225   : > { %v1552_v39 = vmax.f32 %v1551_v38, 0.0  ;;  %v1579_v63 = vsub.f32 %v5474_v16, %v1515_v34  ;;  %v1580_v9 = vsub.f32 %v5477_v18, %v1515_v34 }
 0x227   : > { %v1553_v40 = vadd.f32 1e-05, %v1552_v39 }
 0x229   : > { %4588 = vrsqrt.f32 %v1553_v40  ;;  %vm1560_vm2 = vweird.f32 %v1553_v40 }
 0x22f   : > { %v4589_v44 = vpop.eup %4588 }
 0x230   : > { %v1555_v45 = vmul.f32 %v4589_v44, %v1553_v40  ;;  %vm1561_vm1 = vweird.f32 %v4589_v44 }
 0x231   : > { %vm1562_vm3 = vmor %vm1560_vm2, %vm1561_vm1 }
 0x232   : > { %v1556_v46 = vmul.f32 %v4589_v44, %v1555_v45 }
 0x234   : > { %v1557_v47 = vmul.f32 0.5, %v1556_v46 }
 0x236   : > { %v1558_v26 = vsub.f32 1.5, %v1557_v47 }
 0x238   : > { %v1559_v50 = vmul.f32 %v4589_v44, %v1558_v26 }
 0x23a   : > { %v1563_v51 = vsel %vm1562_vm3, %v4589_v44, %v1559_v50 }
 0x23b   : > { %v1564_v53 = vmul.f32 %v1563_v51, %v5204_v23  ;;  %v1574_v23 = vsub.f32 %v5445_v41, %v1515_v34 }
 0x23d   : > { %1583 = vperm.xlu1 %4585, %v1564_v53  }
 0x2af   : > { %v1584_v3 = vpop.permute.xlu1 %1583 }
 0x2b0   : > { %v1586_v12 = vmul.f32 %v1584_v3, %v1565_v55  ;;  %v1587_v4 = vmul.f32 %v1584_v3, %v1566_v56  ;;  %v1588_v24 = vmul.f32 %v1584_v3, %v1567_v57  ;;  %v1589_v6 = vmul.f32 %v1584_v3, %v1568_v58 }
 0x2b1   : > { %v1590_v28 = vmul.f32 %v1584_v3, %v1569_v60  ;;  %v1591_v7 = vmul.f32 %v1584_v3, %v1570_v61  ;;  %v1592_v41 = vmul.f32 %v1584_v3, %v1571_v0  ;;  %v1593_v8 = vmul.f32 %v1584_v3, %v1572_v1 }
 0x2b2   : > { %v1594_v10 = vmul.f32 %v1584_v3, %v1573_v2  ;;  %v1595_v54 = vmul.f32 %v1584_v3, %v1574_v23  ;;  %v1596_v11 = vmul.f32 %v1584_v3, %v1575_v48  ;;  %v1597_v62 = vmul.f32 %v1584_v3, %v1576_v49 }
 0x2b3   : > { %v1598_v13 = vmul.f32 %v1584_v3, %v1577_v52  ;;  %v1599_v5 = vmul.f32 %v1584_v3, %v1578_v59  ;;  %v1600_v14 = vmul.f32 %v1584_v3, %v1579_v63  ;;  %v1601_v15 = vmul.f32 %v1584_v3, %v1580_v9 }
 0x2b4   : > { %v1606_v16 = vadd.f32 %v1604_v43, %v1586_v12  ;;  %v1607_v17 = vadd.f32 %v1604_v43, %v1587_v4  ;;  %v1608_v18 = vadd.f32 %v1604_v43, %v1588_v24  ;;  %v1609_v19 = vadd.f32 %v1604_v43, %v1589_v6 }
 0x2b5   : > { %v1610_v20 = vadd.f32 %v1604_v43, %v1590_v28  ;;  %v1611_v21 = vadd.f32 %v1604_v43, %v1591_v7  ;;  %v1612_v22 = vadd.f32 %v1604_v43, %v1592_v41  ;;  %v1613_v42 = vadd.f32 %v1604_v43, %v1593_v8 }
 0x2b6   : > { %v1614_v25 = vadd.f32 %v1604_v43, %v1594_v10  ;;  %v1615_v27 = vadd.f32 %v1604_v43, %v1595_v54  ;;  %v1616_v29 = vadd.f32 %v1604_v43, %v1596_v11  ;;  %v1617_v30 = vadd.f32 %v1604_v43, %v1597_v62 }
 0x2b7   : > { %v1618_v31 = vadd.f32 %v1604_v43, %v1598_v13  ;;  %v1619_v32 = vadd.f32 %v1604_v43, %v1599_v5  ;;  %v1620_v33 = vadd.f32 %v1604_v43, %v1600_v14  ;;  %v1621_v34 = vadd.f32 %v1604_v43, %v1601_v15 }
 0x2b8   : > { %v1622_v35 = vmax.f32 %v1606_v16, %v1610_v20  ;;  %v1623_v36 = vmax.f32 %v1607_v17, %v1611_v21  ;;  %v1624_v37 = vmax.f32 %v1608_v18, %v1612_v22  ;;  %v1625_v38 = vmax.f32 %v1609_v19, %v1613_v42 }
 0x2b9   : > { %v1626_v39 = vmax.f32 %v1614_v25, %v1618_v31  ;;  %v1627_v40 = vmax.f32 %v1615_v27, %v1619_v32  ;;  %v1628_v44 = vmax.f32 %v1616_v29, %v1620_v33  ;;  %v1629_v45 = vmax.f32 %v1617_v30, %v1621_v34 }
 0x2bb   : > { %v1630_v46 = vmax.f32 %v1622_v35, %v1626_v39  ;;  %v1631_v47 = vmax.f32 %v1623_v36, %v1627_v40  ;;  %v1632_v26 = vmax.f32 %v1624_v37, %v1628_v44  ;;  %v1633_v50 = vmax.f32 %v1625_v38, %v1629_v45 }
 0x2bd   : > { %v1636_v51 = vrot.slane %v1630_v46, 1  ;;  %v1637_v53 = vrot.slane %v1631_v47, 1  ;;  %v1640_v55 = vrot.slane %v1630_v46, 2  ;;  %v1641_v56 = vrot.slane %v1631_v47, 2 }
 0x2be   : > { %v1644_v57 = vrot.slane %v1630_v46, 3  ;;  %v1645_v58 = vrot.slane %v1631_v47, 3  ;;  %v1648_v60 = vrot.slane %v1630_v46, 4  ;;  %v1649_v61 = vrot.slane %v1631_v47, 4 }
 0x2bf   : > { %v1652_v0 = vrot.slane %v1630_v46, 5  ;;  %v1653_v1 = vrot.slane %v1631_v47, 5  ;;  %v1668_v2 = vrot.slane %v1632_v26, 7  ;;  %v1669_v23 = vrot.slane %v1633_v50, 7 }
 0x2c0   : > { %v3533_v48 = vrot.slane %v1632_v26, 9  ;;  %v3534_v49 = vrot.slane %v1633_v50, 9  ;;  %v3535_v52 = vrot.slane %v1632_v26, 10  ;;  %v3536_v59 = vrot.slane %v1633_v50, 10 }
 0x2c1   : > { %v3537_v63 = vrot.slane %v1632_v26, 11  ;;  %v3538_v9 = vrot.slane %v1633_v50, 11  ;;  %v3539_v3 = vrot.slane %v1632_v26, 12  ;;  %v3540_v12 = vrot.slane %v1633_v50, 12 }
 0x2c2   : > { %v1693_v4 = vsel %vm1692_vm4, %v1630_v46, %v1668_v2  ;;  %v1694_v24 = vsel %vm1692_vm4, %v1631_v47, %v1669_v23  ;;  %v1695_v6 = vsel %vm1692_vm4, %v1636_v51, %v1632_v26  ;;  %v1696_v28 = vsel %vm1692_vm4, %v1637_v53, %v1633_v50 }
 0x2c3   : > { %v1697_v7 = vsel %vm1692_vm4, %v1640_v55, %v3533_v48  ;;  %v1698_v41 = vsel %vm1692_vm4, %v1641_v56, %v3534_v49  ;;  %v1699_v8 = vsel %vm1692_vm4, %v1644_v57, %v3535_v52  ;;  %v1700_v43 = vsel %vm1692_vm4, %v1645_v58, %v3536_v59 }
 0x2c4   : > { %v1701_v10 = vsel %vm1692_vm4, %v1648_v60, %v3537_v63  ;;  %v1702_v54 = vsel %vm1692_vm4, %v1649_v61, %v3538_v9  ;;  %v1703_v11 = vsel %vm1692_vm4, %v1652_v0, %v3539_v3  ;;  %v1704_v62 = vsel %vm1692_vm4, %v1653_v1, %v3540_v12 }
 0x2c5   : > { %v1705_v13 = vpack.c.bf16 %v1694_v24, %v1693_v4  ;;  %v1706_v5 = vpack.c.bf16 %v1696_v28, %v1695_v6  ;;  %v1707_v14 = vpack.c.bf16 %v1698_v41, %v1697_v7  ;;  %v1708_v15 = vpack.c.bf16 %v1700_v43, %v1699_v8 }
 0x2c6   : > { %v1709_v16 = vpack.c.bf16 %v1702_v54, %v1701_v10  ;;  %v1710_v17 = vpack.c.bf16 %v1704_v62, %v1703_v11 }
 0x2c7   : > { %v1717_v18 = vrot.slane %v1705_v13, 3  ;;  %v1718_v19 = vrot.slane %v1706_v5, 6  ;;  %v1719_v20 = vrot.slane %v1706_v5, 1  ;;  %v1720_v21 = vrot.slane %v1707_v14, 4 }
 0x2c8   : > { %v1721_v22 = vrot.slane %v1707_v14, 7  ;;  %v1722_v42 = vrot.slane %v1708_v15, 2  ;;  %v1723_v25 = vrot.slane %v1708_v15, 5  ;;  %v1724_v27 = vrot.slane %v1709_v16, 3 }
 0x2c9   : > { %v1725_v29 = vrot.slane %v1710_v17, 6  ;;  %v1726_v30 = vrot.slane %v1710_v17, 1  ;;  %v1729_v31 = vsel %vm1692_vm4, %v1705_v13, %v1717_v18  ;;  %v1733_v32 = vsel %vm1730_vm5, %v1718_v19, %v1719_v20 }
 0x2ca   : > { %v1735_v33 = vsel %vm1734_vm6, %v1729_v31, %v1733_v32  ;;  %v1739_v34 = vsel %vm1736_vm7, %v1720_v21, %v1721_v22  ;;  %v1743_v35 = vsel %vm1740_vm8, %v1722_v42, %v1723_v25  ;;  %v1750_v36 = vsel %vm1692_vm4, %v1709_v16, %v1724_v27 }
 0x2cb   : > { %v1745_v37 = vsel %vm1744_vm9, %v1739_v34, %v1743_v35  ;;  %v1753_v38 = vsel %vm1730_vm5, %v1725_v29, %v1726_v30 }
 0x2cc   : > { %v1747_v39 = vsel %vm1746_vm10, %v1735_v33, %v1745_v37  ;;  %v1754_v40 = vsel %vm1734_vm6, %v1750_v36, %v1753_v38 }
 0x2cd   : > { %1757 = vst [vmem:[#allocation2] sm:$0xff] %v1747_v39 }
 0x2ce   : > { %1758 = vst [vmem:[#allocation2 + $0x8] sm:$0xf] %v1754_v40 }
 0x2cf PF: > { %v3599_v44 = vld [vmem:[%s5148_s7 + $0x70] sm:$0xf]  ;;  %v4362_v45 = vld [vmem:[%s5148_s7 + $0x74] sm:$0xf0]  ;;  %v3591_v58 = vld [vmem:[%s5148_s7 + $0x60] sm:$0xf]  ;;  %s6009_s9 = scalar_lea.vmem %s6004_s3, %s6015_s13 }
 0x2d0   : > { %v3663_v46 = vld [vmem:[%s5148_s7 + $0xf0] sm:$0xf]  ;;  %v3600_v47 = vor.u32 %v4362_v45, %v3599_v44  ;;  %v4378_v26 = vld [vmem:[%s5148_s7 + $0xf4] sm:$0xf0]  ;;  %v4360_v61 = vld [vmem:[%s5148_s7 + $0x64] sm:$0xf0] }
 0x2d1   : > { %v3727_v50 = vld [vmem:[%s5148_s7 + $0x170] sm:$0xf]  ;;  %v4394_v51 = vld [vmem:[%s5148_s7 + $0x174] sm:$0xf0]  ;;  %v3664_v53 = vor.u32 %v4378_v26, %v3663_v46  ;;  %v3655_v0 = vld [vmem:[%s5148_s7 + $0xe0] sm:$0xf]  ;;  %v3592_v2 = vor.u32 %v4360_v61, %v3591_v58 }
 0x2d2   : > { %v3728_v55 = vor.u32 %v4394_v51, %v3727_v50  ;;  %v3791_v56 = vld [vmem:[%s5148_s7 + $0x1f0] sm:$0xf]  ;;  %v4410_v57 = vld [vmem:[%s5148_s7 + $0x1f4] sm:$0xf0]  ;;  %2947 = vmatpush.bf16.msra.mxu0 %v3600_v47  ;;  %v4376_v1 = vld [vmem:[%s5148_s7 + $0xe4] sm:$0xf0] }
 0x2d3   : > { %v3792_v60 = vor.u32 %v4410_v57, %v3791_v56  ;;  %2960 = vmatpush.bf16.msra.mxu1 %v3664_v53  ;;  %v3656_v23 = vor.u32 %v4376_v1, %v3655_v0  ;;  %v3719_v48 = vld [vmem:[%s5148_s7 + $0x160] sm:$0xf]  ;;  %v4392_v49 = vld [vmem:[%s5148_s7 + $0x164] sm:$0xf0]  ;;  %v3583_v9 = vld [vmem:[%s5148_s7 + $0x50] sm:$0xf] }
 0x2d4   : > { %2973 = vmatpush.bf16.msra.mxu2 %v3728_v55  ;;  %v3783_v52 = vld [vmem:[%s5148_s7 + $0x1e0] sm:$0xf]  ;;  %v3720_v59 = vor.u32 %v4392_v49, %v3719_v48  ;;  %v4408_v63 = vld [vmem:[%s5148_s7 + $0x1e4] sm:$0xf0]  ;;  %v4358_v3 = vld [vmem:[%s5148_s7 + $0x54] sm:$0xf0] }
 0x2d5   : > { %2986 = vmatpush.bf16.msra.mxu3 %v3792_v60  ;;  %v3784_v12 = vor.u32 %v4408_v63, %v3783_v52  ;;  %v3647_v4 = vld [vmem:[%s5148_s7 + $0xd0] sm:$0xf]  ;;  %v4374_v24 = vld [vmem:[%s5148_s7 + $0xd4] sm:$0xf0]  ;;  %v3584_v28 = vor.u32 %v4358_v3, %v3583_v9  ;;  %v3575_v54 = vld [vmem:[%s5148_s7 + $0x40] sm:$0xf] }
 0x2d6   : > { %v3711_v6 = vld [vmem:[%s5148_s7 + $0x150] sm:$0xf]  ;;  %2948 = vmatpush.bf16.msra.mxu0 %v3592_v2  ;;  %v4390_v7 = vld [vmem:[%s5148_s7 + $0x154] sm:$0xf0]  ;;  %v3648_v43 = vor.u32 %v4374_v24, %v3647_v4  ;;  %v4356_v11 = vld [vmem:[%s5148_s7 + $0x44] sm:$0xf0] }
 0x2d7   : > { %v3775_v41 = vld [vmem:[%s5148_s7 + $0x1d0] sm:$0xf]  ;;  %v4406_v8 = vld [vmem:[%s5148_s7 + $0x1d4] sm:$0xf0]  ;;  %2961 = vmatpush.bf16.msra.mxu1 %v3656_v23  ;;  %v3712_v10 = vor.u32 %v4390_v7, %v3711_v6  ;;  %v3639_v62 = vld [vmem:[%s5148_s7 + $0xc0] sm:$0xf]  ;;  %v3576_v18 = vor.u32 %v4356_v11, %v3575_v54 }
 0x2d8   : > { %2974 = vmatpush.bf16.msra.mxu2 %v3720_v59  ;;  %v3776_v13 = vor.u32 %v4406_v8, %v3775_v41  ;;  %v4372_v5 = vld [vmem:[%s5148_s7 + $0xc4] sm:$0xf0]  ;;  %v3703_v14 = vld [vmem:[%s5148_s7 + $0x140] sm:$0xf]  ;;  %v3567_v21 = vld [vmem:[%s5148_s7 + $0x30] sm:$0xf] }
 0x2d9   : > { %2987 = vmatpush.bf16.msra.mxu3 %v3784_v12  ;;  %v4388_v15 = vld [vmem:[%s5148_s7 + $0x144] sm:$0xf0]  ;;  %v3767_v16 = vld [vmem:[%s5148_s7 + $0x1c0] sm:$0xf]  ;;  %v3640_v19 = vor.u32 %v4372_v5, %v3639_v62  ;;  %v4354_v22 = vld [vmem:[%s5148_s7 + $0x34] sm:$0xf0] }
 0x2da   : > { %v4404_v17 = vld [vmem:[%s5148_s7 + $0x1c4] sm:$0xf0]  ;;  %2949 = vmatpush.bf16.msra.mxu0 %v3584_v28  ;;  %v3704_v20 = vor.u32 %v4388_v15, %v3703_v14  ;;  %v3631_v42 = vld [vmem:[%s5148_s7 + $0xb0] sm:$0xf]  ;;  %v4370_v27 = vld [vmem:[%s5148_s7 + $0xb4] sm:$0xf0]  ;;  %v3568_v33 = vor.u32 %v4354_v22, %v3567_v21 }
 0x2db   : > { %2962 = vmatpush.bf16.msra.mxu1 %v3648_v43  ;;  %v3768_v25 = vor.u32 %v4404_v17, %v3767_v16  ;;  %v3695_v29 = vld [vmem:[%s5148_s7 + $0x130] sm:$0xf]  ;;  %v4386_v30 = vld [vmem:[%s5148_s7 + $0x134] sm:$0xf0]  ;;  %v3632_v34 = vor.u32 %v4370_v27, %v3631_v42  ;;  %v3559_v36 = vld [vmem:[%s5148_s7 + $0x20] sm:$0xf] }
 0x2dc   : > { %2975 = vmatpush.bf16.msra.mxu2 %v3712_v10  ;;  %v3759_v31 = vld [vmem:[%s5148_s7 + $0x1b0] sm:$0xf]  ;;  %v4402_v32 = vld [vmem:[%s5148_s7 + $0x1b4] sm:$0xf0]  ;;  %v3696_v35 = vor.u32 %v4386_v30, %v3695_v29  ;;  %v4352_v37 = vld [vmem:[%s5148_s7 + $0x24] sm:$0xf0] }
 0x2dd   : > { %2988 = vmatpush.bf16.msra.mxu3 %v3776_v13  ;;  %v3623_v38 = vld [vmem:[%s5148_s7 + $0xa0] sm:$0xf]  ;;  %v3760_v39 = vor.u32 %v4402_v32, %v3759_v31  ;;  %v4368_v40 = vld [vmem:[%s5148_s7 + $0xa4] sm:$0xf0]  ;;  %v3560_v26 = vor.u32 %v4352_v37, %v3559_v36  ;;  %v3551_v53 = vld [vmem:[%s5148_s7 + $0x10] sm:$0xf] }
 0x2de   : > { %2950 = vmatpush.bf16.msra.mxu0 %v3576_v18  ;;  %v3687_v44 = vld [vmem:[%s5148_s7 + $0x120] sm:$0xf]  ;;  %v4384_v45 = vld [vmem:[%s5148_s7 + $0x124] sm:$0xf0]  ;;  %v3624_v50 = vor.u32 %v4368_v40, %v3623_v38  ;;  %v4350_v55 = vld [vmem:[%s5148_s7 + $0x14] sm:$0xf0] }
 0x2df   : > { %2963 = vmatpush.bf16.msra.mxu1 %v3640_v19  ;;  %v3751_v46 = vld [vmem:[%s5148_s7 + $0x1a0] sm:$0xf]  ;;  %v4400_v47 = vld [vmem:[%s5148_s7 + $0x1a4] sm:$0xf0]  ;;  %v3688_v51 = vor.u32 %v4384_v45, %v3687_v44  ;;  %v3615_v56 = vld [vmem:[%s5148_s7 + $0x90] sm:$0xf]  ;;  %v3552_v2 = vor.u32 %v4350_v55, %v3551_v53 }
 0x2e0   : > { %2976 = vmatpush.bf16.msra.mxu2 %v3704_v20  ;;  %v3752_v57 = vor.u32 %v4400_v47, %v3751_v46  ;;  %v4366_v58 = vld [vmem:[%s5148_s7 + $0x94] sm:$0xf0]  ;;  %v3679_v60 = vld [vmem:[%s5148_s7 + $0x110] sm:$0xf]  ;;  %v3543_v23 = vld [vmem:[%s5148_s7] sm:$0xf] }
 0x2e1   : > { %2989 = vmatpush.bf16.msra.mxu3 %v3768_v25  ;;  %v4382_v61 = vld [vmem:[%s5148_s7 + $0x114] sm:$0xf0]  ;;  %v3743_v0 = vld [vmem:[%s5148_s7 + $0x190] sm:$0xf]  ;;  %v4348_v48 = vld [vmem:[%s5148_s7 + $0x4] sm:$0xf0]  ;;  %v3616_v49 = vor.u32 %v4366_v58, %v3615_v56 }
 0x2e2   : > { %2951 = vmatpush.bf16.msra.mxu0 %v3568_v33  ;;  %v4398_v1 = vld [vmem:[%s5148_s7 + $0x194] sm:$0xf0]  ;;  %v3680_v52 = vor.u32 %v4382_v61, %v3679_v60  ;;  %v3607_v59 = vld [vmem:[%s5148_s7 + $0x80] sm:$0xf]  ;;  %v4364_v63 = vld [vmem:[%s5148_s7 + $0x84] sm:$0xf0]  ;;  %v3544_v41 = vor.u32 %v4348_v48, %v3543_v23 }
 0x2e3   : > { %2964 = vmatpush.bf16.msra.mxu1 %v3632_v34  ;;  %v3671_v9 = vld [vmem:[%s5148_s7 + $0x100] sm:$0xf]  ;;  %v3744_v3 = vor.u32 %v4398_v1, %v3743_v0  ;;  %v4380_v12 = vld [vmem:[%s5148_s7 + $0x104] sm:$0xf0]  ;;  %v3855_v6 = vld [vmem:[%s5148_s7 + $0x270] sm:$0xf]  ;;  %v3608_v54 = vor.u32 %v4364_v63, %v3607_v59 }
 0x2e4   : > { %2977 = vmatpush.bf16.msra.mxu2 %v3696_v35  ;;  %v3735_v4 = vld [vmem:[%s5148_s7 + $0x180] sm:$0xf]  ;;  %v4396_v24 = vld [vmem:[%s5148_s7 + $0x184] sm:$0xf0]  ;;  %v4426_v28 = vld [vmem:[%s5148_s7 + $0x274] sm:$0xf0]  ;;  %v3672_v11 = vor.u32 %v4380_v12, %v3671_v9 }
 0x2e5   : > { %2990 = vmatpush.bf16.msra.mxu3 %v3760_v39  ;;  %v3919_v7 = vld [vmem:[%s5148_s7 + $0x2f0] sm:$0xf]  ;;  %v4442_v8 = vld [vmem:[%s5148_s7 + $0x2f4] sm:$0xf0]  ;;  %v3736_v5 = vor.u32 %v4396_v24, %v3735_v4  ;;  %v3856_v14 = vor.u32 %v4426_v28, %v3855_v6  ;;  %v3847_v17 = vld [vmem:[%s5148_s7 + $0x260] sm:$0xf] }
 0x2e6   : > { %2952 = vmatpush.bf16.msra.mxu0 %v3560_v26  ;;  %v3983_v43 = vld [vmem:[%s5148_s7 + $0x370] sm:$0xf]  ;;  %v4458_v10 = vld [vmem:[%s5148_s7 + $0x374] sm:$0xf0]  ;;  %v3920_v15 = vor.u32 %v4442_v8, %v3919_v7  ;;  %v4424_v18 = vld [vmem:[%s5148_s7 + $0x264] sm:$0xf0] }
 0x2e7   : > { %2965 = vmatpush.bf16.msra.mxu1 %v3624_v50  ;;  %v4047_v62 = vld [vmem:[%s5148_s7 + $0x3f0] sm:$0xf]  ;;  %v4474_v13 = vld [vmem:[%s5148_s7 + $0x3f4] sm:$0xf0]  ;;  %v3984_v16 = vor.u32 %v4458_v10, %v3983_v43  ;;  %v3911_v19 = vld [vmem:[%s5148_s7 + $0x2e0] sm:$0xf]  ;;  %v3848_v29 = vor.u32 %v4424_v18, %v3847_v17 }
 0x2e8   : > { %2978 = vmatpush.bf16.msra.mxu2 %v3688_v51  ;;  %v4048_v20 = vor.u32 %v4474_v13, %v4047_v62  ;;  %v4440_v21 = vld [vmem:[%s5148_s7 + $0x2e4] sm:$0xf0]  ;;  %v3975_v22 = vld [vmem:[%s5148_s7 + $0x360] sm:$0xf]  ;;  %v3839_v32 = vld [vmem:[%s5148_s7 + $0x250] sm:$0xf] }
 0x2e9   : > { %2991 = vmatpush.bf16.msra.mxu3 %v3752_v57  ;;  %v4456_v42 = vld [vmem:[%s5148_s7 + $0x364] sm:$0xf0]  ;;  %v4039_v25 = vld [vmem:[%s5148_s7 + $0x3e0] sm:$0xf]  ;;  %v3912_v30 = vor.u32 %v4440_v21, %v3911_v19  ;;  %v4422_v33 = vld [vmem:[%s5148_s7 + $0x254] sm:$0xf0] }
 0x2ea   : > { %2953 = vmatpush.bf16.msra.mxu0 %v3552_v2  ;;  %v4472_v27 = vld [vmem:[%s5148_s7 + $0x3e4] sm:$0xf0]  ;;  %v3976_v31 = vor.u32 %v4456_v42, %v3975_v22  ;;  %v3903_v34 = vld [vmem:[%s5148_s7 + $0x2d0] sm:$0xf]  ;;  %v4438_v36 = vld [vmem:[%s5148_s7 + $0x2d4] sm:$0xf0]  ;;  %v3840_v44 = vor.u32 %v4422_v33, %v3839_v32 }
 0x2eb   : > { %2966 = vmatpush.bf16.msra.mxu1 %v3616_v49  ;;  %v4040_v35 = vor.u32 %v4472_v27, %v4039_v25  ;;  %v3967_v37 = vld [vmem:[%s5148_s7 + $0x350] sm:$0xf]  ;;  %v4454_v38 = vld [vmem:[%s5148_s7 + $0x354] sm:$0xf0]  ;;  %v3831_v45 = vld [vmem:[%s5148_s7 + $0x240] sm:$0xf]  ;;  %v3904_v47 = vor.u32 %v4438_v36, %v3903_v34 }
 0x2ec   : > { %2979 = vmatpush.bf16.msra.mxu2 %v3680_v52  ;;  %v4031_v39 = vld [vmem:[%s5148_s7 + $0x3d0] sm:$0xf]  ;;  %v4470_v40 = vld [vmem:[%s5148_s7 + $0x3d4] sm:$0xf0]  ;;  %v3968_v26 = vor.u32 %v4454_v38, %v3967_v37  ;;  %v4420_v50 = vld [vmem:[%s5148_s7 + $0x244] sm:$0xf0] }
 0x2ed   : > { %2992 = vmatpush.bf16.msra.mxu3 %v3744_v3  ;;  %v1759_v46 = vld [vmem:[#allocation2] sm:$0xff]  ;;  %v3895_v51 = vld [vmem:[%s5148_s7 + $0x2c0] sm:$0xf]  ;;  %v4032_v53 = vor.u32 %v4470_v40, %v4031_v39  ;;  %v4436_v55 = vld [vmem:[%s5148_s7 + $0x2c4] sm:$0xf0]  ;;  %v3832_v61 = vor.u32 %v4420_v50, %v3831_v45  ;;  %s4539_s13 = sshll.u32 %s4708_s22, 2 }
 0x2ee   : > { %2954 = vmatpush.bf16.msra.mxu0 %v3544_v41  ;;  %1960 = vst [vmem:[#allocation1] ss:$9 sm:$0xff] %v1759_v46  ;;  %v3959_v56 = vld [vmem:[%s5148_s7 + $0x340] sm:$0xf]  ;;  %v4452_v57 = vld [vmem:[%s5148_s7 + $0x344] sm:$0xf0]  ;;  %v3896_v0 = vor.u32 %v4436_v55, %v3895_v51  ;;  %s3285_s11 = scalar_lea.hbm %s6006_s5, %s4539_s13 }
 0x2ef   : > { %2967 = vmatpush.bf16.msra.mxu1 %v3608_v54  ;;  %v4023_v58 = vld [vmem:[%s5148_s7 + $0x3c0] sm:$0xf]  ;;  %v4468_v60 = vld [vmem:[%s5148_s7 + $0x3c4] sm:$0xf0]  ;;  %v3960_v1 = vor.u32 %v4452_v57, %v3959_v56  ;;  %v3823_v2 = vld [vmem:[%s5148_s7 + $0x230] sm:$0xf] }
 0x2f0   : > { %2980 = vmatpush.bf16.msra.mxu2 %v3672_v11  ;;  %v4418_v23 = vld [vmem:[%s5148_s7 + $0x234] sm:$0xf0]  ;;  %v3887_v48 = vld [vmem:[%s5148_s7 + $0x2b0] sm:$0xf]  ;;  %v4024_v49 = vor.u32 %v4468_v60, %v4023_v58  ;;  %v3815_v12 = vld [vmem:[%s5148_s7 + $0x220] sm:$0xf] }
 0x2f1   : > { %2993 = vmatpush.bf16.msra.mxu3 %v3736_v5  ;;  %v4434_v52 = vld [vmem:[%s5148_s7 + $0x2b4] sm:$0xf0]  ;;  %v3951_v59 = vld [vmem:[%s5148_s7 + $0x330] sm:$0xf]  ;;  %v3824_v4 = vor.u32 %v4418_v23, %v3823_v2  ;;  %v4416_v8 = vld [vmem:[%s5148_s7 + $0x224] sm:$0xf0] }
 0x2f2   : > { %2999 = vmatpush.bf16.msrb.mxu0 %v3856_v14  ;;  %v4450_v63 = vld [vmem:[%s5148_s7 + $0x334] sm:$0xf0]  ;;  %v4015_v9 = vld [vmem:[%s5148_s7 + $0x3b0] sm:$0xf]  ;;  %v3888_v7 = vor.u32 %v4434_v52, %v3887_v48  ;;  %v3879_v43 = vld [vmem:[%s5148_s7 + $0x2a0] sm:$0xf] }
 0x2f3   : > { %3012 = vmatpush.bf16.msrb.mxu1 %v3920_v15  ;;  %v4466_v3 = vld [vmem:[%s5148_s7 + $0x3b4] sm:$0xf0]  ;;  %v3952_v41 = vor.u32 %v4450_v63, %v3951_v59  ;;  %v4432_v11 = vld [vmem:[%s5148_s7 + $0x2a4] sm:$0xf0]  ;;  %v3943_v62 = vld [vmem:[%s5148_s7 + $0x320] sm:$0xf]  ;;  %v3816_v15 = vor.u32 %v4416_v8, %v3815_v12 }
 0x2f4   : > { %3025 = vmatpush.bf16.msrb.mxu2 %v3984_v16  ;;  %v4016_v54 = vor.u32 %v4466_v3, %v4015_v9  ;;  %v4448_v13 = vld [vmem:[%s5148_s7 + $0x324] sm:$0xf0]  ;;  %v4007_v5 = vld [vmem:[%s5148_s7 + $0x3a0] sm:$0xf]  ;;  %v3807_v16 = vld [vmem:[%s5148_s7 + $0x210] sm:$0xf]  ;;  %v3880_v17 = vor.u32 %v4432_v11, %v3879_v43 }
 0x2f5   : > { %3038 = vmatpush.bf16.msrb.mxu3 %v4048_v20  ;;  %v5630_v24 = vld [vmem:[#allocation1 + $0x12] sm:$0xff]  ;;  %v5632_v6 = vld [vmem:[#allocation1] sm:$0xff]  ;;  %v5638_v10 = vld [vmem:[#allocation1 + $0x9] sm:$0xff]  ;;  %v3944_v18 = vor.u32 %v4448_v13, %v3943_v62  ;;  %vm3268_vm11 = vcmask 1041408   ;;  %s3287_s23 = sshll.u32 %s5150_s8, 4  ;;  %s3289_s16 = sshll.u32 %s3285_s11, 4  ;;  %s3288_s23 = int_to_ptr.vmem [resolvable:$true] %s3287_s23  ;;  %s3290_s16 = int_to_ptr.hbm [resolvable:$true] %s3289_s16 }
 0x2f6   : > { %3000 = vmatpush.bf16.msrb.mxu0 %v3848_v29  ;;  %v5634_v28 = vld [vmem:[#allocation1 + $0x1b] sm:$0xff]  ;;  %2981 = vmatmul.bf16.vlgmr.msra.gmra.mxu2 %v5630_v24  ;;  %v4414_v19 = vld [vmem:[%s5148_s7 + $0x214] sm:$0xf0]  ;;  %v3871_v20 = vld [vmem:[%s5148_s7 + $0x290] sm:$0xf]  ;;  %s3274_s22 = scalar_lea.sflag [#allocation5], %s5131_s12 }
 0x2f7   : > { %3013 = vmatpush.bf16.msrb.mxu1 %v3912_v30  ;;  %v4464_v14 = vld [vmem:[%s5148_s7 + $0x3a4] sm:$0xf0]  ;;  %2955 = vmatmul.bf16.vlgmr.msra.gmra.mxu0 %v5632_v6  ;;  %v4430_v21 = vld [vmem:[%s5148_s7 + $0x294] sm:$0xf0]  ;;  %v3935_v42 = vld [vmem:[%s5148_s7 + $0x310] sm:$0xf]  ;;  %v3808_v32 = vor.u32 %v4414_v19, %v3807_v16 }
 0x2f8   : > { %3026 = vmatpush.bf16.msrb.mxu2 %v3976_v31  ;;  %2994 = vmatmul.bf16.vlgmr.msra.gmra.mxu3 %v5634_v28  ;;  %v4008_v22 = vor.u32 %v4464_v14, %v4007_v5  ;;  %v4446_v25 = vld [vmem:[%s5148_s7 + $0x314] sm:$0xf0]  ;;  %v3999_v27 = vld [vmem:[%s5148_s7 + $0x390] sm:$0xf]  ;;  %v3799_v30 = vld [vmem:[%s5148_s7 + $0x200] sm:$0xf]  ;;  %v3872_v39 = vor.u32 %v4430_v21, %v3871_v20 }
 0x2f9   : > { %3039 = vmatpush.bf16.msrb.mxu3 %v4040_v35  ;;  %2968 = vmatmul.bf16.vlgmr.msra.gmra.mxu1 %v5638_v10  ;;  %v4462_v29 = vld [vmem:[%s5148_s7 + $0x394] sm:$0xf0]  ;;  %v4412_v31 = vld [vmem:[%s5148_s7 + $0x204] sm:$0xf0]  ;;  %v3863_v33 = vld [vmem:[%s5148_s7 + $0x280] sm:$0xf]  ;;  %v3936_v40 = vor.u32 %v4446_v25, %v3935_v42 }
 0x2fa   : > { %3001 = vmatpush.bf16.msrb.mxu0 %v3840_v44  ;;  %v4428_v34 = vld [vmem:[%s5148_s7 + $0x284] sm:$0xf0]  ;;  %v3927_v35 = vld [vmem:[%s5148_s7 + $0x300] sm:$0xf]  ;;  %v1760_v38 = vld [vmem:[#allocation2 + $0x8] sm:$0xf]  ;;  %v3800_v56 = vor.u32 %v4412_v31, %v3799_v30 }
 0x2fb   : > { %3014 = vmatpush.bf16.msrb.mxu1 %v3904_v47  ;;  %v4444_v36 = vld [vmem:[%s5148_s7 + $0x304] sm:$0xf0]  ;;  %v5665_v44 = vld [vmem:[#allocation1 + $0x24] sm:$0xff]  ;;  %v5669_v46 = vld [vmem:[#allocation1 + $0x2d] sm:$0xff]  ;;  %v4000_v47 = vor.u32 %v4462_v29, %v3999_v27  ;;  %s4604_s17 = sshra.s32 %s3290_s16, 4  ;;  %s4610_s15 = scalar_lea.hbm %s6006_s5, 12  ;;  %s4605_s17 = int_to_ptr.hbm [resolvable:$true] %s4604_s17 }
 0x2fc   : > { %3027 = vmatpush.bf16.msrb.mxu2 %v3968_v26  ;;  %v5663_v37 = vld [vmem:[#allocation1 + $0x36] sm:$0xff]  ;;  %v5667_v45 = vld [vmem:[#allocation1 + $0x3f] sm:$0xff]  ;;  %v4506_v57 = vld [vmem:[%s5148_s7 + $0x4f4] sm:$0xf0]  ;;  %s4606_s14 = scalar_lea.hbm %s4605_s17, 4  ;;  %p4611_p4 = scmp.lt.s32.totalorder %s4605_s17, %s6006_s5 }
 0x2fd   : > { %3040 = vmatpush.bf16.msrb.mxu3 %v4032_v53  ;;  %v3991_v26 = vld [vmem:[%s5148_s7 + $0x380] sm:$0xf]  ;;  %v4460_v50 = vld [vmem:[%s5148_s7 + $0x384] sm:$0xf0]  ;;  %1970 = vst [vmem:[#allocation1] ss:$9 sm:$0xff] %v1760_v38  ;;  %p4607_p1 = scmp.ne.s32.totalorder %s4605_s17, %s4606_s14  ;;  %p4612_p5 = scmp.lt.s32.totalorder %s4610_s15, %s4606_s14 }
 0x2fe   : > { %3002 = vmatpush.bf16.msrb.mxu0 %v3832_v61  ;;  %v4111_v51 = vld [vmem:[%s5148_s7 + $0x470] sm:$0xf]  ;;  %v4490_v53 = vld [vmem:[%s5148_s7 + $0x474] sm:$0xf0]  ;;  %v3864_v61 = vor.u32 %v4428_v34, %v3863_v33  ;;  %v3992_v23 = vor.u32 %v4460_v50, %v3991_v26  ;;  %v4103_v59 = vld [vmem:[%s5148_s7 + $0x460] sm:$0xf] }
 0x2ff   : > { %3015 = vmatpush.bf16.msrb.mxu1 %v3896_v0  ;;  %v4175_v55 = vld [vmem:[%s5148_s7 + $0x4f0] sm:$0xf]  ;;  %v4522_v60 = vld [vmem:[%s5148_s7 + $0x574] sm:$0xf0]  ;;  %v3928_v0 = vor.u32 %v4444_v36, %v3927_v35  ;;  %v4112_v48 = vor.u32 %v4490_v53, %v4111_v51  ;;  %v4488_v63 = vld [vmem:[%s5148_s7 + $0x464] sm:$0xf0]  ;;  %p4608_p2 = pnand %p4607_p1, %p4726_p6  ;;  %p4613_p7 = por %p4612_p5, %p4611_p4 }
 0x300   : > { %3028 = vmatpush.bf16.msrb.mxu2 %v3960_v1  ;;  %v4239_v58 = vld [vmem:[%s5148_s7 + $0x570] sm:$0xf]  ;;  %v4538_v2 = vld [vmem:[%s5148_s7 + $0x5f4] sm:$0xf0]  ;;  %v4167_v9 = vld [vmem:[%s5148_s7 + $0x4e0] sm:$0xf]  ;;  %v4104_v43 = vor.u32 %v4488_v63, %v4103_v59 }
 0x301   : > { %3041 = vmatpush.bf16.msrb.mxu3 %v4024_v49  ;;  %v4303_v1 = vld [vmem:[%s5148_s7 + $0x5f0] sm:$0xf]  ;;  %v4176_v49 = vor.u32 %v4506_v57, %v4175_v55  ;;  %v4240_v52 = vor.u32 %v4522_v60, %v4239_v58  ;;  %v4504_v12 = vld [vmem:[%s5148_s7 + $0x4e4] sm:$0xf0]  ;;  %v4486_v13 = vld [vmem:[%s5148_s7 + $0x454] sm:$0xf0]  ;;  %p4609_p3 = pneg %p4608_p2 }
 0x302   : > { %3003 = vmatpush.bf16.msrb.mxu0 %v3824_v4  ;;  %v4304_v3 = vor.u32 %v4538_v2, %v4303_v1  ;;  %v4231_v4 = vld [vmem:[%s5148_s7 + $0x560] sm:$0xf]  ;;  %v4536_v8 = vld [vmem:[%s5148_s7 + $0x5e4] sm:$0xf0]  ;;  %v4095_v62 = vld [vmem:[%s5148_s7 + $0x450] sm:$0xf] }
 0x303   : > { %3016 = vmatpush.bf16.msrb.mxu1 %v3888_v7  ;;  %v4520_v7 = vld [vmem:[%s5148_s7 + $0x564] sm:$0xf0]  ;;  %v4159_v5 = vld [vmem:[%s5148_s7 + $0x4d0] sm:$0xf]  ;;  %v4534_v19 = vld [vmem:[%s5148_s7 + $0x5d4] sm:$0xf0]  ;;  %v4096_v20 = vor.u32 %v4486_v13, %v4095_v62  ;;  %p4614_p9 = pnand %p4613_p7, %p4609_p3 }
 0x304   : > { %3029 = vmatpush.bf16.msrb.mxu2 %v3952_v41  ;;  %v4295_v41 = vld [vmem:[%s5148_s7 + $0x5e0] sm:$0xf]  ;;  %v4232_v11 = vor.u32 %v4520_v7, %v4231_v4  ;;  %v4223_v16 = vld [vmem:[%s5148_s7 + $0x550] sm:$0xf]  ;;  %v4484_v25 = vld [vmem:[%s5148_s7 + $0x444] sm:$0xf0] }
 0x305   : > { %3042 = vmatpush.bf16.msrb.mxu3 %v4016_v54  ;;  %v4168_v54 = vor.u32 %v4504_v12, %v4167_v9  ;;  %v4296_v14 = vor.u32 %v4536_v8, %v4295_v41  ;;  %v4087_v42 = vld [vmem:[%s5148_s7 + $0x440] sm:$0xf]  ;;  %v4500_v30 = vld [vmem:[%s5148_s7 + $0x4c4] sm:$0xf0]  ;;  %v4498_v50 = vld [vmem:[%s5148_s7 + $0x4b4] sm:$0xf0] }
 0x306   : > { %3004 = vmatpush.bf16.msrb.mxu0 %v3816_v15  ;;  %v4502_v15 = vld [vmem:[%s5148_s7 + $0x4d4] sm:$0xf0]  ;;  %v4151_v27 = vld [vmem:[%s5148_s7 + $0x4c0] sm:$0xf]  ;;  %v4532_v34 = vld [vmem:[%s5148_s7 + $0x5c4] sm:$0xf0]  ;;  %v4088_v35 = vor.u32 %v4484_v25, %v4087_v42 }
 0x307   : > { %3017 = vmatpush.bf16.msrb.mxu1 %v3880_v17  ;;  %v4518_v17 = vld [vmem:[%s5148_s7 + $0x554] sm:$0xf0]  ;;  %v4160_v21 = vor.u32 %v4502_v15, %v4159_v5  ;;  %v4215_v31 = vld [vmem:[%s5148_s7 + $0x540] sm:$0xf]  ;;  %v4152_v36 = vor.u32 %v4500_v30, %v4151_v27  ;;  %v4207_v51 = vld [vmem:[%s5148_s7 + $0x530] sm:$0xf] }
 0x308   : > { %3030 = vmatpush.bf16.msrb.mxu2 %v3944_v18  ;;  %v4287_v18 = vld [vmem:[%s5148_s7 + $0x5d0] sm:$0xf]  ;;  %v4279_v33 = vld [vmem:[%s5148_s7 + $0x5c0] sm:$0xf]  ;;  %v4514_v53 = vld [vmem:[%s5148_s7 + $0x534] sm:$0xf0] }
 0x309   : > { %3043 = vmatpush.bf16.msrb.mxu3 %v4008_v22  ;;  %v4224_v22 = vor.u32 %v4518_v17, %v4223_v16  ;;  %v4288_v29 = vor.u32 %v4534_v19, %v4287_v18  ;;  %v4280_v26 = vor.u32 %v4532_v34, %v4279_v33  ;;  %v4271_v55 = vld [vmem:[%s5148_s7 + $0x5b0] sm:$0xf]  ;;  %v4208_v60 = vor.u32 %v4514_v53, %v4207_v51  ;;  %v4135_v1 = vld [vmem:[%s5148_s7 + $0x4a0] sm:$0xf]  ;;  %v4528_v59 = vld [vmem:[%s5148_s7 + $0x5a4] sm:$0xf0] }
 0x30a   : > { %3005 = vmatpush.bf16.msrb.mxu0 %v3808_v32  ;;  %v4516_v32 = vld [vmem:[%s5148_s7 + $0x544] sm:$0xf0]  ;;  %v4063_v12 = vld [vmem:[%s5148_s7 + $0x410] sm:$0xf]  ;;  %v4478_v4 = vld [vmem:[%s5148_s7 + $0x414] sm:$0xf0] }
 0x30b   : > { %3018 = vmatpush.bf16.msrb.mxu1 %v3872_v39  ;;  %v4216_v38 = vor.u32 %v4516_v32, %v4215_v31  ;;  %v4079_v39 = vld [vmem:[%s5148_s7 + $0x430] sm:$0xf]  ;;  %v4494_v8 = vld [vmem:[%s5148_s7 + $0x494] sm:$0xf0]  ;;  %v4064_v13 = vor.u32 %v4478_v4, %v4063_v12  ;;  %v4055_v5 = vld [vmem:[%s5148_s7 + $0x400] sm:$0xf] }
 0x30c   : > { %3031 = vmatpush.bf16.msrb.mxu2 %v3936_v40  ;;  %v4482_v40 = vld [vmem:[%s5148_s7 + $0x434] sm:$0xf0]  ;;  %v4127_v7 = vld [vmem:[%s5148_s7 + $0x490] sm:$0xf]  ;;  %v4119_v17 = vld [vmem:[%s5148_s7 + $0x480] sm:$0xf] }
 0x30d   : > { %3044 = vmatpush.bf16.msrb.mxu3 %v4000_v47  ;;  %v4143_v47 = vld [vmem:[%s5148_s7 + $0x4b0] sm:$0xf]  ;;  %v4080_v57 = vor.u32 %v4482_v40, %v4079_v39  ;;  %v4526_v62 = vld [vmem:[%s5148_s7 + $0x594] sm:$0xf0]  ;;  %v4128_v15 = vor.u32 %v4494_v8, %v4127_v7  ;;  %v4492_v18 = vld [vmem:[%s5148_s7 + $0x484] sm:$0xf0] }
 0x30e   : > { %3006 = vmatpush.bf16.msrb.mxu0 %v3800_v56  ;;  %v4530_v56 = vld [vmem:[%s5148_s7 + $0x5b4] sm:$0xf0]  ;;  %v4144_v58 = vor.u32 %v4498_v50, %v4143_v47  ;;  %v4183_v19 = vld [vmem:[%s5148_s7 + $0x500] sm:$0xf]  ;;  %v4524_v42 = vld [vmem:[%s5148_s7 + $0x584] sm:$0xf0]  ;;  %v4120_v34 = vor.u32 %v4492_v18, %v4119_v17 }
 0x30f   : > { %3019 = vmatpush.bf16.msrb.mxu1 %v3864_v61  ;;  %v4071_v61 = vld [vmem:[%s5148_s7 + $0x420] sm:$0xf]  ;;  %v4272_v2 = vor.u32 %v4530_v56, %v4271_v55  ;;  %v4361_v25 = vld [vmem:[%s5148_s7 + $0x74] sm:$0xf]  ;;  %v3601_v27 = vld [vmem:[%s5148_s7 + $0x78] sm:$0xf0] }
 0x310   : > { %3032 = vmatpush.bf16.msrb.mxu2 %v3928_v0  ;;  %v4480_v0 = vld [vmem:[%s5148_s7 + $0x424] sm:$0xf0]  ;;  %v3665_v31 = vld [vmem:[%s5148_s7 + $0xf8] sm:$0xf0]  ;;  %v4393_v32 = vld [vmem:[%s5148_s7 + $0x174] sm:$0xf]  ;;  %v3604_v40 = vor.u32 %v4361_v25, %v3601_v27 }
 0x311   : > { %3045 = vmatpush.bf16.msrb.mxu3 %v3992_v23  ;;  %3007 = vmatmul.bf16.vlgmr.msrb.gmra.mxu0 %v5665_v44  ;;  %v4496_v23 = vld [vmem:[%s5148_s7 + $0x4a4] sm:$0xf0]  ;;  %v4072_v63 = vor.u32 %v4480_v0, %v4071_v61  ;;  %v3729_v33 = vld [vmem:[%s5148_s7 + $0x178] sm:$0xf0]  ;;  %v4359_v50 = vld [vmem:[%s5148_s7 + $0x64] sm:$0xf] }
 0x312   : > { %3051 = vmatpush.bf16.msra.mxu0 %v4112_v48  ;;  %3020 = vmatmul.bf16.vlgmr.msrb.gmra.mxu1 %v5669_v46  ;;  %v4199_v48 = vld [vmem:[%s5148_s7 + $0x520] sm:$0xf]  ;;  %v4136_v9 = vor.u32 %v4496_v23, %v4135_v1  ;;  %v3593_v51 = vld [vmem:[%s5148_s7 + $0x68] sm:$0xf0]  ;;  %v4375_v53 = vld [vmem:[%s5148_s7 + $0xe4] sm:$0xf] }
 0x313   : > { %3064 = vmatpush.bf16.msra.mxu1 %v4176_v49  ;;  %3033 = vmatmul.bf16.vlgmr.msrb.gmra.mxu2 %v5663_v37  ;;  %v4512_v49 = vld [vmem:[%s5148_s7 + $0x524] sm:$0xf0]  ;;  %v3657_v56 = vld [vmem:[%s5148_s7 + $0xe8] sm:$0xf0]  ;;  %v4407_v61 = vld [vmem:[%s5148_s7 + $0x1e4] sm:$0xf] }
 0x314   : > { %3077 = vmatpush.bf16.msra.mxu2 %v4240_v52  ;;  %3046 = vmatmul.bf16.vlgmr.msrb.gmra.mxu3 %v5667_v45  ;;  %v4263_v52 = vld [vmem:[%s5148_s7 + $0x5a0] sm:$0xf]  ;;  %v3785_v0 = vld [vmem:[%s5148_s7 + $0x1e8] sm:$0xf0]  ;;  %v3649_v12 = vld [vmem:[%s5148_s7 + $0xd8] sm:$0xf0] }
 0x315   : > { %3090 = vmatpush.bf16.msra.mxu3 %v4304_v3  ;;  %v4200_v3 = vor.u32 %v4512_v49, %v4199_v48  ;;  %v4264_v41 = vor.u32 %v4528_v59, %v4263_v52  ;;  %v5759_v1 = vld [vmem:[#allocation1 + $0x12] sm:$0xff]  ;;  %v5763_v23 = vld [vmem:[#allocation1 + $0x1b] sm:$0xff]  ;;  %v3596_v48 = vor.u32 %v4359_v50, %v3593_v51  ;;  %v3660_v49 = vor.u32 %v4375_v53, %v3657_v56  ;;  %v4357_v59 = vld [vmem:[%s5148_s7 + $0x54] sm:$0xf] }
 0x316   : > { %3052 = vmatpush.bf16.msra.mxu0 %v4104_v43  ;;  %v4191_v43 = vld [vmem:[%s5148_s7 + $0x510] sm:$0xf]  ;;  %v4389_v4 = vld [vmem:[%s5148_s7 + $0x154] sm:$0xf]  ;;  %v3713_v7 = vld [vmem:[%s5148_s7 + $0x158] sm:$0xf0] }
 0x317   : > { %3065 = vmatpush.bf16.msra.mxu1 %v4168_v54  ;;  %v4510_v54 = vld [vmem:[%s5148_s7 + $0x514] sm:$0xf0]  ;;  %v3777_v8 = vld [vmem:[%s5148_s7 + $0x1d8] sm:$0xf0]  ;;  %v3705_v17 = vld [vmem:[%s5148_s7 + $0x148] sm:$0xf0] }
 0x318   : > { %3078 = vmatpush.bf16.msra.mxu2 %v4232_v11  ;;  %v4255_v11 = vld [vmem:[%s5148_s7 + $0x590] sm:$0xf]  ;;  %v4192_v16 = vor.u32 %v4510_v54, %v4191_v43  ;;  %v4403_v18 = vld [vmem:[%s5148_s7 + $0x1c4] sm:$0xf]  ;;  %v3569_v25 = vld [vmem:[%s5148_s7 + $0x38] sm:$0xf0] }
 0x319   : > { %3091 = vmatpush.bf16.msra.mxu3 %v4296_v14  ;;  %v4476_v14 = vld [vmem:[%s5148_s7 + $0x404] sm:$0xf0]  ;;  %v4369_v27 = vld [vmem:[%s5148_s7 + $0xb4] sm:$0xf]  ;;  %v3625_v50 = vld [vmem:[%s5148_s7 + $0xa8] sm:$0xf0] }
 0x31a   : > { %3053 = vmatpush.bf16.msra.mxu0 %v4096_v20  ;;  %v4256_v20 = vor.u32 %v4526_v62, %v4255_v11  ;;  %v4056_v30 = vor.u32 %v4476_v14, %v4055_v5  ;;  %v3716_v11 = vor.u32 %v4389_v4, %v3713_v7  ;;  %v4355_v62 = vld [vmem:[%s5148_s7 + $0x44] sm:$0xf]  ;;  %v3689_v53 = vld [vmem:[%s5148_s7 + $0x128] sm:$0xf0] }
 0x31b   : > { %3066 = vmatpush.bf16.msra.mxu1 %v4160_v21  ;;  %v4508_v21 = vld [vmem:[%s5148_s7 + $0x504] sm:$0xf0]  ;;  %v4371_v5 = vld [vmem:[%s5148_s7 + $0xc4] sm:$0xf]  ;;  %v3753_v56 = vld [vmem:[%s5148_s7 + $0x1a8] sm:$0xf0] }
 0x31c   : > { %3079 = vmatpush.bf16.msra.mxu2 %v4224_v22  ;;  %v4247_v22 = vld [vmem:[%s5148_s7 + $0x580] sm:$0xf]  ;;  %v4383_v51 = vld [vmem:[%s5148_s7 + $0x124] sm:$0xf] }
 0x31d   : > { %3092 = vmatpush.bf16.msra.mxu3 %v4288_v29  ;;  %v4377_v29 = vld [vmem:[%s5148_s7 + $0xf4] sm:$0xf]  ;;  %v4248_v39 = vor.u32 %v4524_v42, %v4247_v22  ;;  %v4347_v7 = vld [vmem:[%s5148_s7 + $0x4] sm:$0xf] }
 0x31e   : > { %3054 = vmatpush.bf16.msra.mxu0 %v4088_v35  ;;  %v4184_v35 = vor.u32 %v4508_v21, %v4183_v19  ;;  %v3668_v47 = vor.u32 %v4377_v29, %v3665_v31  ;;  %v3769_v19 = vld [vmem:[%s5148_s7 + $0x1c8] sm:$0xf0]  ;;  %v4353_v42 = vld [vmem:[%s5148_s7 + $0x34] sm:$0xf] }
 0x31f   : > { %3067 = vmatpush.bf16.msra.mxu1 %v4152_v36  ;;  %v4409_v36 = vld [vmem:[%s5148_s7 + $0x1f4] sm:$0xf]  ;;  %v3772_v29 = vor.u32 %v4403_v18, %v3769_v19 }
 0x320   : > { %3080 = vmatpush.bf16.msra.mxu2 %v4216_v38  ;;  %v3793_v38 = vld [vmem:[%s5148_s7 + $0x1f8] sm:$0xf0]  ;;  %v4385_v31 = vld [vmem:[%s5148_s7 + $0x134] sm:$0xf] }
 0x321   : > { %3093 = vmatpush.bf16.msra.mxu3 %v4280_v26  ;;  %v3732_v26 = vor.u32 %v4393_v32, %v3729_v33  ;;  %v3796_v55 = vor.u32 %v4409_v36, %v3793_v38  ;;  %v3697_v32 = vld [vmem:[%s5148_s7 + $0x138] sm:$0xf0]  ;;  %v4401_v33 = vld [vmem:[%s5148_s7 + $0x1b4] sm:$0xf] }
 0x322   : > { %3055 = vmatpush.bf16.msra.mxu0 %v4080_v57  ;;  %v4391_v57 = vld [vmem:[%s5148_s7 + $0x164] sm:$0xf]  ;;  %v3700_v38 = vor.u32 %v4385_v31, %v3697_v32  ;;  %v4441_v18 = vld [vmem:[%s5148_s7 + $0x2f4] sm:$0xf] }
 0x323   : > { %3068 = vmatpush.bf16.msra.mxu1 %v4144_v58  ;;  %v3721_v58 = vld [vmem:[%s5148_s7 + $0x168] sm:$0xf0] }
 0x324   : > { %3081 = vmatpush.bf16.msra.mxu2 %v4208_v60  ;;  %v5755_v60 = vld [vmem:[#allocation1] sm:$0xff]  ;;  %v3724_v52 = vor.u32 %v4391_v57, %v3721_v58 }
 0x325   : > { %3094 = vmatpush.bf16.msra.mxu3 %v4272_v2  ;;  %v5761_v2 = vld [vmem:[#allocation1 + $0x9] sm:$0xff] }
 0x326   : > { %3056 = vmatpush.bf16.msra.mxu0 %v4072_v63  ;;  %v3585_v63 = vld [vmem:[%s5148_s7 + $0x58] sm:$0xf0] }
 0x327   : > { %3069 = vmatpush.bf16.msra.mxu1 %v4136_v9  ;;  %v4373_v9 = vld [vmem:[%s5148_s7 + $0xd4] sm:$0xf]  ;;  %v3588_v43 = vor.u32 %v4357_v59, %v3585_v63  ;;  %v3617_v59 = vld [vmem:[%s5148_s7 + $0x98] sm:$0xf0] }
 0x328   : > { %3082 = vmatpush.bf16.msra.mxu2 %v4200_v3  ;;  %v3788_v3 = vor.u32 %v4407_v61, %v3785_v0  ;;  %v3652_v54 = vor.u32 %v4373_v9, %v3649_v12  ;;  %v3692_v61 = vor.u32 %v4383_v51, %v3689_v53  ;;  %v4349_v0 = vld [vmem:[%s5148_s7 + $0x14] sm:$0xf]  ;;  %v3681_v9 = vld [vmem:[%s5148_s7 + $0x118] sm:$0xf0] }
 0x329   : > { %3095 = vmatpush.bf16.msra.mxu3 %v4264_v41  ;;  %v4405_v41 = vld [vmem:[%s5148_s7 + $0x1d4] sm:$0xf]  ;;  %v3745_v12 = vld [vmem:[%s5148_s7 + $0x198] sm:$0xf0] }
 0x32a   : > { %3057 = vmatpush.bf16.msra.mxu0 %v4064_v13  ;;  %v3577_v13 = vld [vmem:[%s5148_s7 + $0x48] sm:$0xf0]  ;;  %v3780_v14 = vor.u32 %v4405_v41, %v3777_v8  ;;  %v4381_v63 = vld [vmem:[%s5148_s7 + $0x114] sm:$0xf] }
 0x32b   : > { %3070 = vmatpush.bf16.msra.mxu1 %v4128_v15  ;;  %v3641_v15 = vld [vmem:[%s5148_s7 + $0xc8] sm:$0xf0] }
 0x32c   : > { %3083 = vmatpush.bf16.msra.mxu2 %v4192_v16  ;;  %v4387_v16 = vld [vmem:[%s5148_s7 + $0x144] sm:$0xf]  ;;  %v3644_v21 = vor.u32 %v4371_v5, %v3641_v15  ;;  %v3545_v41 = vld [vmem:[%s5148_s7 + $0x8] sm:$0xf0] }
 0x32d   : > { %3096 = vmatpush.bf16.msra.mxu3 %v4256_v20  ;;  %v3580_v20 = vor.u32 %v4355_v62, %v3577_v13  ;;  %v3708_v22 = vor.u32 %v4387_v16, %v3705_v17  ;;  %v4379_v62 = vld [vmem:[%s5148_s7 + $0x104] sm:$0xf]  ;;  %v3673_v5 = vld [vmem:[%s5148_s7 + $0x108] sm:$0xf0]  ;;  %v4425_v16 = vld [vmem:[%s5148_s7 + $0x274] sm:$0xf]  ;;  %v3548_v19 = vor.u32 %v4347_v7, %v3545_v41 }
 0x32e   : > { %3058 = vmatpush.bf16.msra.mxu0 %v4056_v30  ;;  %v3633_v30 = vld [vmem:[%s5148_s7 + $0xb8] sm:$0xf0]  ;;  %v3737_v15 = vld [vmem:[%s5148_s7 + $0x188] sm:$0xf0] }
 0x32f   : > { %3071 = vmatpush.bf16.msra.mxu1 %v4120_v34  ;;  %v3761_v34 = vld [vmem:[%s5148_s7 + $0x1b8] sm:$0xf0]  ;;  %v3636_v36 = vor.u32 %v4369_v27, %v3633_v30  ;;  %v4473_v27 = vld [vmem:[%s5148_s7 + $0x3f4] sm:$0xf]  ;;  %v3897_v7 = vld [vmem:[%s5148_s7 + $0x2c8] sm:$0xf0] }
 0x330   : > { %3084 = vmatpush.bf16.msra.mxu2 %v4184_v35  ;;  %v3572_v35 = vor.u32 %v4353_v42, %v3569_v25  ;;  %v3857_v17 = vld [vmem:[%s5148_s7 + $0x278] sm:$0xf0]  ;;  %v3676_v25 = vor.u32 %v4379_v62, %v3673_v5  ;;  %v3961_v41 = vld [vmem:[%s5148_s7 + $0x348] sm:$0xf0]  ;;  %v4417_v62 = vld [vmem:[%s5148_s7 + $0x234] sm:$0xf] }
 0x331   : > { %3097 = vmatpush.bf16.msra.mxu3 %v4248_v39  ;;  %3059 = vmatmul.bf16.vlgmr.msra.gmra.mxu0 %v5755_v60  ;;  %v4351_v39 = vld [vmem:[%s5148_s7 + $0x24] sm:$0xf]  ;;  %v3860_v31 = vor.u32 %v4425_v16, %v3857_v17  ;;  %v4433_v5 = vld [vmem:[%s5148_s7 + $0x2b4] sm:$0xf]  ;;  %v3953_v17 = vld [vmem:[%s5148_s7 + $0x338] sm:$0xf0] }
 0x332   : > { %3103 = vmatpush.bf16.msrb.mxu0 %v3604_v40  ;;  %3072 = vmatmul.bf16.vlgmr.msra.gmra.mxu1 %v5761_v2  ;;  %v3561_v40 = vld [vmem:[%s5148_s7 + $0x28] sm:$0xf0]  ;;  %v4449_v16 = vld [vmem:[%s5148_s7 + $0x334] sm:$0xf] }
 0x333   : > { %3116 = vmatpush.bf16.msrb.mxu1 %v3668_v47  ;;  %3085 = vmatmul.bf16.vlgmr.msra.gmra.mxu2 %v5759_v1  ;;  %v4367_v47 = vld [vmem:[%s5148_s7 + $0xa4] sm:$0xf]  ;;  %v3564_v57 = vor.u32 %v4351_v39, %v3561_v40  ;;  %v3913_v39 = vld [vmem:[%s5148_s7 + $0x2e8] sm:$0xf0] }
 0x334   : > { %3129 = vmatpush.bf16.msrb.mxu2 %v3732_v26  ;;  %3098 = vmatmul.bf16.vlgmr.msra.gmra.mxu3 %v5763_v23  ;;  %v3764_v26 = vor.u32 %v4401_v33, %v3761_v34  ;;  %v3628_v58 = vor.u32 %v4367_v47, %v3625_v50  ;;  %v4423_v34 = vld [vmem:[%s5148_s7 + $0x264] sm:$0xf]  ;;  %v3977_v47 = vld [vmem:[%s5148_s7 + $0x368] sm:$0xf0] }
 0x335   : > { %3142 = vmatpush.bf16.msrb.mxu3 %v3796_v55  ;;  %v4399_v55 = vld [vmem:[%s5148_s7 + $0x1a4] sm:$0xf]  ;;  %v4041_v50 = vld [vmem:[%s5148_s7 + $0x3e8] sm:$0xf0] }
 0x336   : > { %3104 = vmatpush.bf16.msrb.mxu0 %v3596_v48  ;;  %v3553_v48 = vld [vmem:[%s5148_s7 + $0x18] sm:$0xf0]  ;;  %v4455_v40 = vld [vmem:[%s5148_s7 + $0x364] sm:$0xf] }
 0x337   : > { %3117 = vmatpush.bf16.msrb.mxu1 %v3660_v49  ;;  %v4365_v49 = vld [vmem:[%s5148_s7 + $0x94] sm:$0xf]  ;;  %v3556_v4 = vor.u32 %v4349_v0, %v3553_v48  ;;  %v3905_v0 = vld [vmem:[%s5148_s7 + $0x2d8] sm:$0xf0] }
 0x338   : > { %3130 = vmatpush.bf16.msrb.mxu2 %v3724_v52  ;;  %v3756_v52 = vor.u32 %v4399_v55, %v3753_v56  ;;  %v3620_v8 = vor.u32 %v4365_v49, %v3617_v59  ;;  %v3980_v55 = vor.u32 %v4455_v40, %v3977_v47  ;;  %v4421_v56 = vld [vmem:[%s5148_s7 + $0x254] sm:$0xf]  ;;  %v3969_v49 = vld [vmem:[%s5148_s7 + $0x358] sm:$0xf0] }
 0x339   : > { %3143 = vmatpush.bf16.msrb.mxu3 %v3788_v3  ;;  %v4397_v3 = vld [vmem:[%s5148_s7 + $0x194] sm:$0xf]  ;;  %v4033_v59 = vld [vmem:[%s5148_s7 + $0x3d8] sm:$0xf0] }
 0x33a   : > { %3105 = vmatpush.bf16.msrb.mxu0 %v3588_v43  ;;  %v3684_v43 = vor.u32 %v4381_v63, %v3681_v9  ;;  %v3748_v13 = vor.u32 %v4397_v3, %v3745_v12  ;;  %v4453_v48 = vld [vmem:[%s5148_s7 + $0x354] sm:$0xf]  ;;  %v3833_v12 = vld [vmem:[%s5148_s7 + $0x248] sm:$0xf0]  ;;  %v3809_v40 = vld [vmem:[%s5148_s7 + $0x218] sm:$0xf0] }
 0x33b   : > { %3118 = vmatpush.bf16.msrb.mxu1 %v3652_v54  ;;  %v4363_v54 = vld [vmem:[%s5148_s7 + $0x84] sm:$0xf]  ;;  %v3972_v3 = vor.u32 %v4453_v48, %v3969_v49  ;;  %v4429_v47 = vld [vmem:[%s5148_s7 + $0x294] sm:$0xf] }
 0x33c   : > { %3131 = vmatpush.bf16.msrb.mxu2 %v3716_v11  ;;  %v3609_v11 = vld [vmem:[%s5148_s7 + $0x88] sm:$0xf0]  ;;  %v4427_v49 = vld [vmem:[%s5148_s7 + $0x284] sm:$0xf] }
 0x33d   : > { %3144 = vmatpush.bf16.msrb.mxu3 %v3780_v14  ;;  %v4395_v14 = vld [vmem:[%s5148_s7 + $0x184] sm:$0xf]  ;;  %v3612_v42 = vor.u32 %v4363_v54, %v3609_v11 }
 0x33e   : > { %3106 = vmatpush.bf16.msrb.mxu0 %v3580_v20  ;;  %v3921_v20 = vld [vmem:[%s5148_s7 + $0x2f8] sm:$0xf0]  ;;  %v3740_v30 = vor.u32 %v4395_v14, %v3737_v15 }
 0x33f   : > { %3119 = vmatpush.bf16.msrb.mxu1 %v3644_v21  ;;  %v4457_v21 = vld [vmem:[%s5148_s7 + $0x374] sm:$0xf]  ;;  %v3924_v32 = vor.u32 %v4441_v18, %v3921_v20  ;;  %v3889_v15 = vld [vmem:[%s5148_s7 + $0x2b8] sm:$0xf0] }
 0x340   : > { %3132 = vmatpush.bf16.msrb.mxu2 %v3708_v22  ;;  %v3985_v22 = vld [vmem:[%s5148_s7 + $0x378] sm:$0xf0]  ;;  %v4465_v18 = vld [vmem:[%s5148_s7 + $0x3b4] sm:$0xf] }
 0x341   : > { %3145 = vmatpush.bf16.msrb.mxu3 %v3772_v29  ;;  %v4049_v29 = vld [vmem:[%s5148_s7 + $0x3f8] sm:$0xf0]  ;;  %v3988_v33 = vor.u32 %v4457_v21, %v3985_v22  ;;  %v3892_v21 = vor.u32 %v4433_v5, %v3889_v15  ;;  %v3956_v22 = vor.u32 %v4449_v16, %v3953_v17  ;;  %v4487_v15 = vld [vmem:[%s5148_s7 + $0x464] sm:$0xf]  ;;  %v4105_v16 = vld [vmem:[%s5148_s7 + $0x468] sm:$0xf0] }
 0x342   : > { %3107 = vmatpush.bf16.msrb.mxu0 %v3572_v35  ;;  %v3849_v35 = vld [vmem:[%s5148_s7 + $0x268] sm:$0xf0]  ;;  %v4503_v17 = vld [vmem:[%s5148_s7 + $0x4e4] sm:$0xf] }
 0x343   : > { %3120 = vmatpush.bf16.msrb.mxu1 %v3636_v36  ;;  %v4439_v36 = vld [vmem:[%s5148_s7 + $0x2e4] sm:$0xf]  ;;  %v3852_v51 = vor.u32 %v4423_v34, %v3849_v35  ;;  %v4009_v34 = vld [vmem:[%s5148_s7 + $0x3a8] sm:$0xf0] }
 0x344   : > { %3133 = vmatpush.bf16.msrb.mxu2 %v3700_v38  ;;  %v4052_v38 = vor.u32 %v4473_v27, %v4049_v29  ;;  %v3916_v53 = vor.u32 %v4439_v36, %v3913_v39  ;;  %v4431_v27 = vld [vmem:[%s5148_s7 + $0x2a4] sm:$0xf]  ;;  %v4413_v39 = vld [vmem:[%s5148_s7 + $0x214] sm:$0xf] }
 0x345   : > { %3146 = vmatpush.bf16.msrb.mxu3 %v3764_v26  ;;  %v4471_v26 = vld [vmem:[%s5148_s7 + $0x3e4] sm:$0xf] }
 0x346   : > { %3108 = vmatpush.bf16.msrb.mxu0 %v3564_v57  ;;  %v3841_v57 = vld [vmem:[%s5148_s7 + $0x258] sm:$0xf0] }
 0x347   : > { %3121 = vmatpush.bf16.msrb.mxu1 %v3628_v58  ;;  %v4437_v58 = vld [vmem:[%s5148_s7 + $0x2d4] sm:$0xf]  ;;  %v3844_v63 = vor.u32 %v4421_v56, %v3841_v57  ;;  %v4001_v56 = vld [vmem:[%s5148_s7 + $0x398] sm:$0xf0]  ;;  %v3812_v57 = vor.u32 %v4413_v39, %v3809_v40 }
 0x348   : > { %3134 = vmatpush.bf16.msrb.mxu2 %v3692_v61  ;;  %v4044_v61 = vor.u32 %v4471_v26, %v4041_v50  ;;  %v3908_v9 = vor.u32 %v4437_v58, %v3905_v0  ;;  %v3873_v50 = vld [vmem:[%s5148_s7 + $0x298] sm:$0xf0]  ;;  %v4411_v58 = vld [vmem:[%s5148_s7 + $0x204] sm:$0xf] }
 0x349   : > { %3147 = vmatpush.bf16.msrb.mxu3 %v3756_v52  ;;  %v4469_v52 = vld [vmem:[%s5148_s7 + $0x3d4] sm:$0xf]  ;;  %v3876_v0 = vor.u32 %v4429_v47, %v3873_v50  ;;  %v4289_v39 = vld [vmem:[%s5148_s7 + $0x5d8] sm:$0xf0]  ;;  %v4089_v50 = vld [vmem:[%s5148_s7 + $0x448] sm:$0xf0] }
 0x34a   : > { %3109 = vmatpush.bf16.msrb.mxu0 %v3556_v4  ;;  %v4435_v4 = vld [vmem:[%s5148_s7 + $0x2c4] sm:$0xf] }
 0x34b   : > { %3122 = vmatpush.bf16.msrb.mxu1 %v3620_v8  ;;  %v4467_v8 = vld [vmem:[%s5148_s7 + $0x3c4] sm:$0xf]  ;;  %v3900_v54 = vor.u32 %v4435_v4, %v3897_v7  ;;  %v4113_v4 = vld [vmem:[%s5148_s7 + $0x478] sm:$0xf0] }
 0x34c   : > { %3135 = vmatpush.bf16.msrb.mxu2 %v3684_v43 }
 0x34d   : > { %3148 = vmatpush.bf16.msrb.mxu3 %v3748_v13  ;;  %v3825_v13 = vld [vmem:[%s5148_s7 + $0x238] sm:$0xf0] }
 0x34e   : > { %3110 = vmatpush.bf16.msrb.mxu0 %v3548_v19  ;;  %v4017_v19 = vld [vmem:[%s5148_s7 + $0x3b8] sm:$0xf0]  ;;  %v3828_v20 = vor.u32 %v4417_v62, %v3825_v13 }
 0x34f   : > { %3123 = vmatpush.bf16.msrb.mxu1 %v3612_v42  ;;  %v4415_v42 = vld [vmem:[%s5148_s7 + $0x224] sm:$0xf]  ;;  %v4020_v29 = vor.u32 %v4465_v18, %v4017_v19  ;;  %v4169_v19 = vld [vmem:[%s5148_s7 + $0x4e8] sm:$0xf0] }
 0x350   : > { %3136 = vmatpush.bf16.msrb.mxu2 %v3676_v25  ;;  %v3817_v25 = vld [vmem:[%s5148_s7 + $0x228] sm:$0xf0] }
 0x351   : > { %3149 = vmatpush.bf16.msrb.mxu3 %v3740_v30  ;;  %3111 = vmatmul.bf16.vlgmr.msrb.gmra.mxu0 %v5632_v6  ;;  %v4036_v6 = vor.u32 %v4469_v52, %v4033_v59  ;;  %v3881_v30 = vld [vmem:[%s5148_s7 + $0x2a8] sm:$0xf0]  ;;  %v3820_v35 = vor.u32 %v4415_v42, %v3817_v25  ;;  %v4443_v59 = vld [vmem:[%s5148_s7 + $0x304] sm:$0xf]  ;;  %v4108_v25 = vor.u32 %v4487_v15, %v4105_v16 }
 0x352   : > { %3155 = vmatpush.bf16.msra.mxu0 %v3860_v31  ;;  %3124 = vmatmul.bf16.vlgmr.msrb.gmra.mxu1 %v5638_v10  ;;  %v4025_v10 = vld [vmem:[%s5148_s7 + $0x3c8] sm:$0xf0]  ;;  %v4447_v31 = vld [vmem:[%s5148_s7 + $0x324] sm:$0xf]  ;;  %v3884_v36 = vor.u32 %v4431_v27, %v3881_v30  ;;  %v4172_v27 = vor.u32 %v4503_v17, %v4169_v19  ;;  %v4485_v30 = vld [vmem:[%s5148_s7 + $0x454] sm:$0xf] }
 0x353   : > { %3168 = vmatpush.bf16.msra.mxu1 %v3924_v32  ;;  %3137 = vmatmul.bf16.vlgmr.msrb.gmra.mxu2 %v5630_v24  ;;  %v4419_v24 = vld [vmem:[%s5148_s7 + $0x244] sm:$0xf]  ;;  %v4028_v14 = vor.u32 %v4467_v8, %v4025_v10  ;;  %v3945_v32 = vld [vmem:[%s5148_s7 + $0x328] sm:$0xf0]  ;;  %v4241_v8 = vld [vmem:[%s5148_s7 + $0x578] sm:$0xf0] }
 0x354   : > { %3181 = vmatpush.bf16.msra.mxu2 %v3988_v33  ;;  %3150 = vmatmul.bf16.vlgmr.msrb.gmra.mxu3 %v5634_v28  ;;  %v4451_v28 = vld [vmem:[%s5148_s7 + $0x344] sm:$0xf]  ;;  %v3836_v43 = vor.u32 %v4419_v24, %v3833_v12  ;;  %v3865_v52 = vld [vmem:[%s5148_s7 + $0x288] sm:$0xf0]  ;;  %v4489_v12 = vld [vmem:[%s5148_s7 + $0x474] sm:$0xf] }
 0x355   : > { %3194 = vmatpush.bf16.msra.mxu3 %v4052_v38  ;;  %v3964_v11 = vor.u32 %v4451_v28, %v3961_v41  ;;  %v4463_v33 = vld [vmem:[%s5148_s7 + $0x3a4] sm:$0xf]  ;;  %v3948_v38 = vor.u32 %v4447_v31, %v3945_v32  ;;  %v3993_v24 = vld [vmem:[%s5148_s7 + $0x388] sm:$0xf0]  ;;  %v4177_v28 = vld [vmem:[%s5148_s7 + $0x4f8] sm:$0xf0]  ;;  %v3868_v10 = vor.u32 %v4427_v49, %v3865_v52  ;;  %v4116_v13 = vor.u32 %v4489_v12, %v4113_v4 }
 0x356   : > { %3156 = vmatpush.bf16.msra.mxu0 %v3852_v51  ;;  %v4012_v26 = vor.u32 %v4463_v33, %v4009_v34  ;;  %v4445_v51 = vld [vmem:[%s5148_s7 + $0x314] sm:$0xf]  ;;  %v4297_v42 = vld [vmem:[%s5148_s7 + $0x5e8] sm:$0xf0]  ;;  %v4097_v31 = vld [vmem:[%s5148_s7 + $0x458] sm:$0xf0] }
 0x357   : > { %3169 = vmatpush.bf16.msra.mxu1 %v3916_v53  ;;  %v3937_v53 = vld [vmem:[%s5148_s7 + $0x318] sm:$0xf0]  ;;  %v4521_v41 = vld [vmem:[%s5148_s7 + $0x574] sm:$0xf]  ;;  %v4100_v40 = vor.u32 %v4485_v30, %v4097_v31  ;;  %v4479_v4 = vld [vmem:[%s5148_s7 + $0x424] sm:$0xf] }
 0x358   : > { %3182 = vmatpush.bf16.msra.mxu2 %v3980_v55  ;;  %v4461_v55 = vld [vmem:[%s5148_s7 + $0x394] sm:$0xf]  ;;  %v3940_v48 = vor.u32 %v4445_v51, %v3937_v53  ;;  %v4161_v34 = vld [vmem:[%s5148_s7 + $0x4d8] sm:$0xf0]  ;;  %v4499_v51 = vld [vmem:[%s5148_s7 + $0x4c4] sm:$0xf] }
 0x359   : > { %3195 = vmatpush.bf16.msra.mxu3 %v4044_v61  ;;  %v3801_v61 = vld [vmem:[%s5148_s7 + $0x208] sm:$0xf0]  ;;  %v4501_v32 = vld [vmem:[%s5148_s7 + $0x4d4] sm:$0xf]  ;;  %v4065_v17 = vld [vmem:[%s5148_s7 + $0x418] sm:$0xf0] }
 0x35a   : > { %3157 = vmatpush.bf16.msra.mxu0 %v3844_v63  ;;  %v4004_v63 = vor.u32 %v4461_v55, %v4001_v56  ;;  %v3804_v7 = vor.u32 %v4411_v58, %v3801_v61  ;;  %v4153_v53 = vld [vmem:[%s5148_s7 + $0x4c8] sm:$0xf0]  ;;  %v4531_v56 = vld [vmem:[%s5148_s7 + $0x5c4] sm:$0xf]  ;;  %v4497_v49 = vld [vmem:[%s5148_s7 + $0x4b4] sm:$0xf] }
 0x35b   : > { %3170 = vmatpush.bf16.msra.mxu1 %v3908_v9  ;;  %v3929_v9 = vld [vmem:[%s5148_s7 + $0x308] sm:$0xf0]  ;;  %v4156_v58 = vor.u32 %v4499_v51, %v4153_v53 }
 0x35c   : > { %3183 = vmatpush.bf16.msra.mxu2 %v3972_v3  ;;  %v4459_v3 = vld [vmem:[%s5148_s7 + $0x384] sm:$0xf]  ;;  %v4217_v55 = vld [vmem:[%s5148_s7 + $0x548] sm:$0xf0] }
 0x35d   : > { %3196 = vmatpush.bf16.msra.mxu3 %v4036_v6  ;;  %v4505_v6 = vld [vmem:[%s5148_s7 + $0x4f4] sm:$0xf]  ;;  %v3996_v62 = vor.u32 %v4459_v3, %v3993_v24  ;;  %v4273_v24 = vld [vmem:[%s5148_s7 + $0x5b8] sm:$0xf0] }
 0x35e   : > { %3158 = vmatpush.bf16.msra.mxu0 %v3836_v43  ;;  %v3932_v43 = vor.u32 %v4443_v59, %v3929_v9  ;;  %v4180_v5 = vor.u32 %v4505_v6, %v4177_v28  ;;  %v4145_v59 = vld [vmem:[%s5148_s7 + $0x4b8] sm:$0xf0]  ;;  %v4529_v3 = vld [vmem:[%s5148_s7 + $0x5b4] sm:$0xf]  ;;  %v4073_v28 = vld [vmem:[%s5148_s7 + $0x428] sm:$0xf0] }
 0x35f   : > { %3171 = vmatpush.bf16.msra.mxu1 %v3900_v54  ;;  %v4537_v54 = vld [vmem:[%s5148_s7 + $0x5f4] sm:$0xf]  ;;  %v4209_v9 = vld [vmem:[%s5148_s7 + $0x538] sm:$0xf0]  ;;  %v4148_v6 = vor.u32 %v4497_v49, %v4145_v59 }
 0x360   : > { %3184 = vmatpush.bf16.msra.mxu2 %v3964_v11  ;;  %v4305_v11 = vld [vmem:[%s5148_s7 + $0x5f8] sm:$0xf0] }
 0x361   : > { %3197 = vmatpush.bf16.msra.mxu3 %v4028_v14  ;;  %v4244_v14 = vor.u32 %v4521_v41, %v4241_v8  ;;  %v4308_v18 = vor.u32 %v4537_v54, %v4305_v11  ;;  %v4495_v41 = vld [vmem:[%s5148_s7 + $0x4a4] sm:$0xf]  ;;  %v4137_v8 = vld [vmem:[%s5148_s7 + $0x4a8] sm:$0xf0] }
 0x362   : > { %3159 = vmatpush.bf16.msra.mxu0 %v3828_v20  ;;  %v4519_v20 = vld [vmem:[%s5148_s7 + $0x564] sm:$0xf]  ;;  %v4201_v54 = vld [vmem:[%s5148_s7 + $0x528] sm:$0xf0]  ;;  %v4140_v15 = vor.u32 %v4495_v41, %v4137_v8 }
 0x363   : > { %3172 = vmatpush.bf16.msra.mxu1 %v3892_v21  ;;  %v4233_v21 = vld [vmem:[%s5148_s7 + $0x568] sm:$0xf0] }
 0x364   : > { %3185 = vmatpush.bf16.msra.mxu2 %v3956_v22  ;;  %v4535_v22 = vld [vmem:[%s5148_s7 + $0x5e4] sm:$0xf]  ;;  %v5940_v11 = vld [vmem:[%s6009_s9] sm:$0x3] }
 0x365   : > { %3198 = vmatpush.bf16.msra.mxu3 %v4020_v29  ;;  %v4236_v29 = vor.u32 %v4519_v20, %v4233_v21  ;;  %v4300_v33 = vor.u32 %v4535_v22, %v4297_v42  ;;  %v1955_v19 = vperm.slane %v5940_v11, 0  ;;  %v4129_v21 = vld [vmem:[%s5148_s7 + $0x498] sm:$0xf0]  ;;  %v4509_v22 = vld [vmem:[%s5148_s7 + $0x514] sm:$0xf] }
 0x366   : > { %3160 = vmatpush.bf16.msra.mxu0 %v3820_v35  ;;  %v4517_v35 = vld [vmem:[%s5148_s7 + $0x554] sm:$0xf]  ;;  %v4193_v42 = vld [vmem:[%s5148_s7 + $0x518] sm:$0xf0] }
 0x367   : > { %3173 = vmatpush.bf16.msra.mxu1 %v3884_v36  ;;  %v4225_v36 = vld [vmem:[%s5148_s7 + $0x558] sm:$0xf0] }
 0x368   : > { %3186 = vmatpush.bf16.msra.mxu2 %v3948_v38  ;;  %v4533_v38 = vld [vmem:[%s5148_s7 + $0x5d4] sm:$0xf]  ;;  %v4228_v47 = vor.u32 %v4517_v35, %v4225_v36  ;;  %v4491_v35 = vld [vmem:[%s5148_s7 + $0x484] sm:$0xf] }
 0x369   : > { %3199 = vmatpush.bf16.msra.mxu3 %v4012_v26  ;;  %v4483_v26 = vld [vmem:[%s5148_s7 + $0x444] sm:$0xf] }
 0x36a   : > { %3161 = vmatpush.bf16.msra.mxu0 %v3812_v57  ;;  %v4092_v57 = vor.u32 %v4483_v26, %v4089_v50  ;;  %v4523_v26 = vld [vmem:[%s5148_s7 + $0x584] sm:$0xf]  ;;  %v4249_v50 = vld [vmem:[%s5148_s7 + $0x588] sm:$0xf0] }
 0x36b   : > { %3174 = vmatpush.bf16.msra.mxu1 %v3876_v0  ;;  %v4481_v0 = vld [vmem:[%s5148_s7 + $0x434] sm:$0xf] }
 0x36c   : > { %3187 = vmatpush.bf16.msra.mxu2 %v3940_v48  ;;  %v4081_v48 = vld [vmem:[%s5148_s7 + $0x438] sm:$0xf0] }
 0x36d   : > { %3200 = vmatpush.bf16.msra.mxu3 %v4004_v63  ;;  %v4513_v63 = vld [vmem:[%s5148_s7 + $0x534] sm:$0xf]  ;;  %v4084_v12 = vor.u32 %v4481_v0, %v4081_v48 }
 0x36e   : > { %3162 = vmatpush.bf16.msra.mxu0 %v3804_v7  ;;  %v4212_v7 = vor.u32 %v4513_v63, %v4209_v9 }
 0x36f   : > { %3175 = vmatpush.bf16.msra.mxu1 %v3868_v10  ;;  %v4276_v10 = vor.u32 %v4529_v3, %v4273_v24 }
 0x370   : > { %3188 = vmatpush.bf16.msra.mxu2 %v3932_v43  ;;  %v4511_v43 = vld [vmem:[%s5148_s7 + $0x524] sm:$0xf] }
 0x371   : > { %3201 = vmatpush.bf16.msra.mxu3 %v3996_v62  ;;  %3163 = vmatmul.bf16.vlgmr.msra.gmra.mxu0 %v5665_v44  ;;  %v4292_v44 = vor.u32 %v4533_v38, %v4289_v39  ;;  %v4527_v62 = vld [vmem:[%s5148_s7 + $0x5a4] sm:$0xf]  ;;  %v4204_v16 = vor.u32 %v4511_v43, %v4201_v54 }
 0x372   : > { %3207 = vmatpush.bf16.msrb.mxu0 %v4116_v13  ;;  %3176 = vmatmul.bf16.vlgmr.msra.gmra.mxu1 %v5669_v46  ;;  %v4281_v46 = vld [vmem:[%s5148_s7 + $0x5c8] sm:$0xf0] }
 0x373   : > { %3220 = vmatpush.bf16.msrb.mxu1 %v4180_v5  ;;  %3189 = vmatmul.bf16.vlgmr.msra.gmra.mxu2 %v5663_v37  ;;  %v4164_v37 = vor.u32 %v4501_v32, %v4161_v34  ;;  %v4284_v52 = vor.u32 %v4531_v56, %v4281_v46  ;;  %v4265_v13 = vld [vmem:[%s5148_s7 + $0x5a8] sm:$0xf0]  ;;  %v4076_v5 = vor.u32 %v4479_v4, %v4073_v28 }
 0x374   : > { %3233 = vmatpush.bf16.msrb.mxu2 %v4244_v14  ;;  %3202 = vmatmul.bf16.vlgmr.msra.gmra.mxu3 %v5667_v45  ;;  %v4515_v45 = vld [vmem:[%s5148_s7 + $0x544] sm:$0xf]  ;;  %v4477_v14 = vld [vmem:[%s5148_s7 + $0x414] sm:$0xf]  ;;  %v4268_v20 = vor.u32 %v4527_v62, %v4265_v13  ;;  %v2956_v30 = vpop.f32.mrf.mxu0  ;;  %v4196_v32 = vor.u32 %v4509_v22, %v4193_v42  ;;  %v4057_v34 = vld [vmem:[%s5148_s7 + $0x408] sm:$0xf0]  ;;  %v4252_v56 = vor.u32 %v4523_v26, %v4249_v50 }
 0x375   : > { %3246 = vmatpush.bf16.msrb.mxu3 %v4308_v18  ;;  %v4220_v61 = vor.u32 %v4515_v45, %v4217_v55  ;;  %v4493_v18 = vld [vmem:[%s5148_s7 + $0x494] sm:$0xf]  ;;  %v2957_v36 = vadd.f32 %v2956_v30, %v1955_v19  ;;  %v1956_v42 = vperm.slane %v5940_v11, 1 }
 0x376   : > { %3208 = vmatpush.bf16.msrb.mxu0 %v4108_v25  ;;  %v4525_v25 = vld [vmem:[%s5148_s7 + $0x594] sm:$0xf]  ;;  %v4132_v31 = vor.u32 %v4493_v18, %v4129_v21  ;;  %v2969_v38 = vpop.f32.mrf.mxu1 }
 0x377   : > { %3221 = vmatpush.bf16.msrb.mxu1 %v4172_v27  ;;  %v4257_v27 = vld [vmem:[%s5148_s7 + $0x598] sm:$0xf0]  ;;  %v2970_v51 = vadd.f32 %v2969_v38, %v2957_v36 }
 0x378   : > { %3234 = vmatpush.bf16.msrb.mxu2 %v4236_v29  ;;  %v4068_v29 = vor.u32 %v4477_v14, %v4065_v17  ;;  %v4260_v39 = vor.u32 %v4525_v25, %v4257_v27 }
 0x379   : > { %3247 = vmatpush.bf16.msrb.mxu3 %v4300_v33  ;;  %v4475_v33 = vld [vmem:[%s5148_s7 + $0x404] sm:$0xf]  ;;  %v2982_v55 = vpop.f32.mrf.mxu2 }
 0x37a   : > { %3209 = vmatpush.bf16.msrb.mxu0 %v4100_v40  ;;  %v4121_v40 = vld [vmem:[%s5148_s7 + $0x488] sm:$0xf0]  ;;  %v2983_v46 = vadd.f32 %v2982_v55, %v2970_v51 }
 0x37b   : > { %3222 = vmatpush.bf16.msrb.mxu1 %v4164_v37  ;;  %v4507_v37 = vld [vmem:[%s5148_s7 + $0x504] sm:$0xf]  ;;  %v4124_v53 = vor.u32 %v4491_v35, %v4121_v40 }
 0x37c   : > { %3235 = vmatpush.bf16.msrb.mxu2 %v4228_v47  ;;  %v4185_v47 = vld [vmem:[%s5148_s7 + $0x508] sm:$0xf0] }
 0x37d   : > { %3248 = vmatpush.bf16.msrb.mxu3 %v4292_v44  ;;  %v4060_v44 = vor.u32 %v4475_v33, %v4057_v34  ;;  %v4188_v45 = vor.u32 %v4507_v37, %v4185_v47 }
 0x37e   : > { %3210 = vmatpush.bf16.msrb.mxu0 %v4092_v57  ;;  %v2995_v57 = vpop.f32.mrf.mxu3  ;;  %v2971_v0 = vpop.f32.mrf.mxu1 }
 0x37f   : > { %3223 = vmatpush.bf16.msrb.mxu1 %v4156_v58  ;;  %v2996_v58 = vadd.f32 %v2995_v57, %v2983_v46  ;;  %v3261_v0 = vld [vmem:[%s5146_s6] sm:$0xf] }
 0x380   : > { %3236 = vmatpush.bf16.msrb.mxu2 %v4220_v61  ;;  %v2958_v61 = vpop.f32.mrf.mxu0  ;;  %vm3262_vm12 = vcmp.ge.s32.totalorder %v3261_v0, 1677722 }
 0x381   : > { %3249 = vmatpush.bf16.msrb.mxu3 %v4284_v52  ;;  %v2984_v48 = vpop.f32.mrf.mxu2 }
 0x382   : > { %3211 = vmatpush.bf16.msrb.mxu0 %v4084_v12 }
 0x383   : > { %3224 = vmatpush.bf16.msrb.mxu1 %v4148_v6 }
 0x384   : > { %3237 = vmatpush.bf16.msrb.mxu2 %v4212_v7 }
 0x385   : > { %3250 = vmatpush.bf16.msrb.mxu3 %v4276_v10 }
 0x386   : > { %3212 = vmatpush.bf16.msrb.mxu0 %v4076_v5  ;;  %v2997_v49 = vpop.f32.mrf.mxu3 }
 0x387   : > { %3225 = vmatpush.bf16.msrb.mxu1 %v4140_v15 }
 0x388   : > { %3238 = vmatpush.bf16.msrb.mxu2 %v4204_v16 }
 0x389   : > { %3251 = vmatpush.bf16.msrb.mxu3 %v4268_v20 }
 0x38a   : > { %3213 = vmatpush.bf16.msrb.mxu0 %v4068_v29 }
 0x38b   : > { %3226 = vmatpush.bf16.msrb.mxu1 %v4132_v31 }
 0x38c   : > { %3239 = vmatpush.bf16.msrb.mxu2 %v4196_v32 }
 0x38d   : > { %3252 = vmatpush.bf16.msrb.mxu3 %v4260_v39 }
 0x38e   : > { %3214 = vmatpush.bf16.msrb.mxu0 %v4060_v44  ;;  %v3008_v52 = vpop.f32.mrf.mxu0 }
 0x38f   : > { %3227 = vmatpush.bf16.msrb.mxu1 %v4124_v53  ;;  %v3009_v59 = vadd.f32 %v3008_v52, %v2996_v58  ;;  %v3021_v63 = vpop.f32.mrf.mxu1 }
 0x390   : > { %3240 = vmatpush.bf16.msrb.mxu2 %v4188_v45 }
 0x391   : > { %3253 = vmatpush.bf16.msrb.mxu3 %v4252_v56  ;;  %3215 = vmatmul.bf16.vlgmr.msrb.gmra.mxu0 %v5755_v60  ;;  %v3022_v9 = vadd.f32 %v3021_v63, %v3009_v59 }
 0x392   : > { %3228 = vmatmul.bf16.vlgmr.msrb.gmra.mxu1 %v5761_v2 }
 0x393   : > { %3241 = vmatmul.bf16.vlgmr.msrb.gmra.mxu2 %v5759_v1 }
 0x394   : > { %3254 = vmatmul.bf16.vlgmr.msrb.gmra.mxu3 %v5763_v23 }
 0x396   : > { %v3034_v3 = vpop.f32.mrf.mxu2  ;;  %v3010_v6 = vpop.f32.mrf.mxu0 }
 0x397   : > { %v3035_v24 = vadd.f32 %v3034_v3, %v3022_v9  ;;  %v3047_v12 = vpop.f32.mrf.mxu3  ;;  %v3023_v7 = vpop.f32.mrf.mxu1 }
 0x399   : > { %v3048_v4 = vadd.f32 %v3047_v12, %v3035_v24 }
 0x39e   : > { %v3036_v28 = vpop.f32.mrf.mxu2 }
 0x39f   : > { %v3049_v60 = vpop.f32.mrf.mxu3 }
 0x3ae   : > { %v3060_v41 = vpop.f32.mrf.mxu0 }
 0x3af   : > { %v3061_v2 = vadd.f32 %v3060_v41, %v3048_v4  ;;  %v3073_v8 = vpop.f32.mrf.mxu1 }
 0x3b1   : > { %v3074_v1 = vadd.f32 %v3073_v8, %v3061_v2 }
 0x3b6   : > { %v3086_v10 = vpop.f32.mrf.mxu2  ;;  %v3062_v54 = vpop.f32.mrf.mxu0 }
 0x3b7   : > { %v3087_v23 = vadd.f32 %v3086_v10, %v3074_v1  ;;  %v3099_v43 = vpop.f32.mrf.mxu3  ;;  %v3075_v62 = vpop.f32.mrf.mxu1 }
 0x3b9   : > { %v3100_v13 = vadd.f32 %v3099_v43, %v3087_v23 }
 0x3bb   : > { %v3259_v58 = vmax.f32 %v3100_v13, 0.0 }
 0x3bd   : > { %v3263_v52 = vmul.f32 1.25, %v3259_v58 }
 0x3be   : > { %v3088_v5 = vpop.f32.mrf.mxu2 }
 0x3bf   : > { %v3101_v14 = vpop.f32.mrf.mxu3 }
 0x3ce   : > { %v3112_v15 = vpop.f32.mrf.mxu0 }
 0x3cf   : > { %v3125_v16 = vpop.f32.mrf.mxu1  ;;  %v3113_v25 = vadd.f32 %v3112_v15, %v1956_v42 }
 0x3d1   : > { %v3126_v30 = vadd.f32 %v3125_v16, %v3113_v25 }
 0x3d6   : > { %v3138_v17 = vpop.f32.mrf.mxu2  ;;  %v3114_v19 = vpop.f32.mrf.mxu0 }
 0x3d7   : > { %v3151_v18 = vpop.f32.mrf.mxu3  ;;  %v3127_v20 = vpop.f32.mrf.mxu1  ;;  %v3139_v33 = vadd.f32 %v3138_v17, %v3126_v30 }
 0x3d9   : > { %v3152_v36 = vadd.f32 %v3151_v18, %v3139_v33 }
 0x3de   : > { %v3140_v21 = vpop.f32.mrf.mxu2 }
 0x3df   : > { %v3153_v22 = vpop.f32.mrf.mxu3 }
 0x3ee   : > { %v3164_v27 = vpop.f32.mrf.mxu0 }
 0x3ef   : > { %v3177_v29 = vpop.f32.mrf.mxu1  ;;  %v3165_v40 = vadd.f32 %v3164_v27, %v3152_v36 }
 0x3f1   : > { %v3178_v37 = vadd.f32 %v3177_v29, %v3165_v40 }
 0x3f6   : > { %v3190_v31 = vpop.f32.mrf.mxu2  ;;  %v3166_v34 = vpop.f32.mrf.mxu0 }
 0x3f7   : > { %v3203_v32 = vpop.f32.mrf.mxu3  ;;  %v3179_v35 = vpop.f32.mrf.mxu1  ;;  %v3191_v47 = vadd.f32 %v3190_v31, %v3178_v37 }
 0x3f9   : > { %v3204_v26 = vadd.f32 %v3203_v32, %v3191_v47 }
 0x3fe   : > { %v3192_v38 = vpop.f32.mrf.mxu2 }
 0x3ff   : > { %v3205_v39 = vpop.f32.mrf.mxu3 }
 0x40e   : > { %v3216_v50 = vpop.f32.mrf.mxu0 }
 0x40f   : > { %v3229_v11 = vpop.f32.mrf.mxu1  ;;  %v3217_v51 = vadd.f32 %v3216_v50, %v3204_v26 }
 0x411   : > { %v3230_v44 = vadd.f32 %v3229_v11, %v3217_v51 }
 0x416   : > { %v3242_v53 = vpop.f32.mrf.mxu2  ;;  %v3218_v56 = vpop.f32.mrf.mxu0 }
 0x417   : > { %v3243_v45 = vadd.f32 %v3242_v53, %v3230_v44  ;;  %v3255_v55 = vpop.f32.mrf.mxu3  ;;  %v3231_v46 = vpop.f32.mrf.mxu1 }
 0x419   : > { %v3256_v57 = vadd.f32 %v3255_v55, %v3243_v45 }
 0x41b   : > { %v3260_v61 = vmax.f32 %v3256_v57, 0.0 }
 0x41d   : > { %v3264_v48 = vmul.f32 1.25, %v3260_v61 }
 0x41e   : > { %v3244_v49 = vpop.f32.mrf.mxu2 }
 0x41f   : > { %v3267_v59 = vrot.slane %v3264_v48, 6  ;;  %v3257_v63 = vpop.f32.mrf.mxu3 }
 0x421   : > { %v3269_v9 = vsel %vm3268_vm11, %v3263_v52, %v3267_v59 }
 0x422   : > { %v3271_v3 = vsel %vm3262_vm12, %v3269_v9, 0.0 }
 0x423   : > { %3272 = vst [vmem:[%s5150_s8] sm:$0xf] %v3271_v3 }
 0x424   : > { %4617 = shalt.err (!%p4614_p9)
}
 0x425   : > { %4542 = dma.vmem_to_hbm [thread:$0]  (%p4726_p6), %s3288_s23, 64, %s3290_s16, %s3274_s22  }
 0x426 PF: > { %p4548_p10 = scmp.ge.s32.totalorder %s4652_s21, 2  ;;  %s3301_s12 = sand.u32 1, %s4640_s18  }
 0x427   : > { %s3302_s8 = scalar_lea.sflag [#allocation5], %s3301_s12 }
 0x428   : > { %p4545_p11 = pnand %p4548_p10, %p4730_p8 }
 0x42a   : > { %p4546_p12 = pneg %p4545_p11 }
 0x42c   : > { %4635 = dma.done.wait (%p4546_p12), %s3302_s8, 64  }
 0x42d   : > { %4637 = vsyncadd (%p4546_p12), %s3302_s8, 4294967232  ;;  %p15_p13 = scmp.ge.s32.totalorder %s4712_s24, 5   ;;  %s6010_s18 = smov %s4644_s19 }
 0x42e   : > { %s6011_s19 = smov %s4648_s20  ;;  %s6012_s20 = smov %s4724_s27 }
 0x42f   : > { %s6013_s21 = smov %s4712_s24  ;;  %17 = sbr.rel (!%p15_p13) target bundleno = 3 (0x3), region = 128 }
 0x434   :  { %3308 = vsyncpa [#allocation5], 1 }
 0x435   :  { %3310 = vsyncpa [#allocation5 + $0x1], 1 }

</bundles_post_ra>
